<compile_context>
chip_gen: v7x
topology: tpu7x:2x2x1
jax: 0.10.0
libtpu: 0.0.40
codegen_flags: <defaults>
</compile_context>

<pallas_src>
import functools

import jax
import jax.numpy as jnp
from jax.experimental import pallas as pl
from jax.experimental.pallas import tpu as pltpu

EPS = 1e-13  # matches the PyTorch reference module


def _round_up(x, m):
    return ((x + m - 1) // m) * m


def _tcn_fused_kernel(alphas_ref, x_ref, w1_ref, g1_ref, b1_ref, dw_ref,
                      g2_ref, b2_ref, w2_ref, o_ref, pad_ref,
                      *, kernel_size, dilations, hidden, max_pad):
    """All temporal blocks for one batch element.

    alphas_ref : SMEM [NB, 2]        PReLU alphas (a1, a2) per block
    x_ref      : VMEM [1, K, Cp]     input (channel-padded, padded lanes == 0)
    w1_ref     : VMEM [NB, Cp, Hp]   1x1 conv weights (zero padded)
    g1/b1      : VMEM [NB, 1, Hp]    gLN gamma/beta (zero padded)
    dw_ref     : VMEM [NB, k, Hp]    depthwise weights (zero padded)
    g2/b2      : VMEM [NB, 1, Hp]
    w2_ref     : VMEM [NB, Hp, Cp]   pointwise weights (zero padded)
    o_ref      : VMEM [1, K, Cp]
    pad_ref    : VMEM [max_pad + K, Hp]  scratch for causal depthwise taps
    """
    K = x_ref.shape[1]
    inv_cnt = 1.0 / float(K * hidden)   # gLN normalizes over real K*H entries

    # Zero the causal halo rows once; they are never overwritten afterwards.
    if max_pad > 0:
        pad_ref[0:max_pad, :] = jnp.zeros((max_pad, pad_ref.shape[1]),
                                          jnp.float32)

    def gln(v, gamma, beta):
        # One fused pass: sum + sum-of-squares (padded lanes are exactly 0 so
        # they do not perturb the sums); scalar rsqrt instead of a per-element
        # divide-by-sqrt.
        s = jnp.sum(v)
        ss = jnp.sum(v * v)
        mean = s * inv_cnt
        var = jnp.maximum(ss * inv_cnt - mean * mean, 0.0)
        inv = jax.lax.rsqrt(var + EPS)
        return gamma * ((v - mean) * inv) + beta

    h_in = x_ref[0]                                           # [K, Cp]

    for blk, dil in enumerate(dilations):
        a1 = alphas_ref[blk, 0]
        a2 = alphas_ref[blk, 1]

        # ---- 1x1 conv (Cin -> H) ----
        h = jnp.dot(h_in, w1_ref[blk],
                    preferred_element_type=jnp.float32)       # [K, Hp]

        # ---- PReLU + gLN ----
        h = jnp.where(h >= 0.0, h, a1 * h)
        h = gln(h, g1_ref[blk], b1_ref[blk])

        # ---- causal dilated depthwise conv (+ implicit Chomp1d) ----
        # y[t] = sum_j w[j] * h[t - (k-1-j)*d], zero for negative time.
        pad_ref[max_pad:max_pad + K, :] = h
        dw = dw_ref[blk]                                      # [k, Hp]
        y = jnp.zeros_like(h)
        for j in range(kernel_size):
            start = max_pad - (kernel_size - 1 - j) * dil     # static offset
            tap = pad_ref[start:start + K, :]                 # [K, Hp]
            y = y + dw[j:j + 1, :] * tap

        # ---- PReLU + gLN ----
        y = jnp.where(y >= 0.0, y, a2 * y)
        y = gln(y, g2_ref[blk], b2_ref[blk])

        # ---- pointwise conv (H -> Cin) + residual ----
        h_in = jnp.dot(y, w2_ref[blk],
                       preferred_element_type=jnp.float32) + h_in

    o_ref[0] = h_in.astype(o_ref.dtype)


def tcn_forward(x_mck, params, *, kernel, n_successive, n_block):
    """x_mck: [M, C, K] (PyTorch NCK layout) -> [M, C, K].

    TCN_activation='None' -> Identity on the output.
    """
    M, Cin, K = x_mck.shape
    blocks = [params[r][b] for r in range(n_successive) for b in range(n_block)]
    dilations = [2 ** b for _ in range(n_successive) for b in range(n_block)]
    NB = len(blocks)
    H = blocks[0]["w1"].shape[1]

    Cp = _round_up(Cin, 128)          # lane-dense channel padding
    Hp = _round_up(H, 128)
    max_pad = (kernel - 1) * max(dilations)

    def pad2(a, rows, cols):
        return jnp.pad(a, ((0, rows - a.shape[0]), (0, cols - a.shape[1])))

    # Stack + zero-pad weights for all blocks (zero padding keeps padded lanes
    # exactly zero throughout the network).
    w1_all = jnp.stack([pad2(p["w1"], Cp, Hp) for p in blocks])       # [NB,Cp,Hp]
    g1_all = jnp.stack([pad2(p["g1"], 1, Hp) for p in blocks])        # [NB,1,Hp]
    b1_all = jnp.stack([pad2(p["b1"], 1, Hp) for p in blocks])
    dw_all = jnp.stack([pad2(p["dw"], kernel, Hp) for p in blocks])   # [NB,k,Hp]
    g2_all = jnp.stack([pad2(p["g2"], 1, Hp) for p in blocks])
    b2_all = jnp.stack([pad2(p["b2"], 1, Hp) for p in blocks])
    w2_all = jnp.stack([pad2(p["w2"], Hp, Cp) for p in blocks])       # [NB,Hp,Cp]
    alphas = jnp.stack(
        [jnp.array([p["a1"][0, 0], p["a2"][0, 0]], jnp.float32)
         for p in blocks])                                            # [NB,2]

    # NCK -> [M, K, Cp] with zero-padded channels on the 128-lane axis.
    x_kc = jnp.transpose(x_mck, (0, 2, 1)).astype(jnp.float32)
    x_pad = jnp.pad(x_kc, ((0, 0), (0, 0), (0, Cp - Cin)))

    kernel_fn = functools.partial(
        _tcn_fused_kernel,
        kernel_size=kernel,
        dilations=tuple(dilations),
        hidden=H,
        max_pad=max_pad,
    )

    full = lambda arr: pl.BlockSpec(arr.shape, lambda m: (0,) * arr.ndim)

    out = pl.pallas_call(
        kernel_fn,
        out_shape=jax.ShapeDtypeStruct((M, K, Cp), jnp.float32),
        grid_spec=pltpu.PrefetchScalarGridSpec(
            num_scalar_prefetch=0,
            grid=(M,),
            in_specs=[
                pl.BlockSpec(memory_space=pltpu.MemorySpace.SMEM),    # alphas
                pl.BlockSpec((1, K, Cp), lambda m: (m, 0, 0)),        # x
                full(w1_all), full(g1_all), full(b1_all),
                full(dw_all), full(g2_all), full(b2_all), full(w2_all),
            ],
            out_specs=pl.BlockSpec((1, K, Cp), lambda m: (m, 0, 0)),
            scratch_shapes=[pltpu.VMEM((max_pad + K, Hp), jnp.float32)],
        ),
        compiler_params=pltpu.CompilerParams(
            dimension_semantics=("parallel",)),
    )(alphas, x_pad, w1_all, g1_all, b1_all, dw_all, g2_all, b2_all, w2_all)

    # Drop channel padding, back to NCK.
    return jnp.transpose(out[:, :, :Cin], (0, 2, 1))


# ------------------------- pure-JAX reference ------------------------------

def _gln_ref(v, gamma, beta):
    mean = jnp.mean(v, axis=(1, 2), keepdims=True)
    var = jnp.mean((v - mean) ** 2, axis=(1, 2), keepdims=True)
    return gamma * (v - mean) / jnp.sqrt(var + EPS) + beta


def _depthwise_causal_ref(h, dw, kernel, dil):
    # h: [M, K, H]; dw: [kernel, H]
    M, K, H = h.shape
    pad = (kernel - 1) * dil
    hp = jnp.pad(h, ((0, 0), (pad, 0), (0, 0)))
    y = jnp.zeros_like(h)
    for j in range(kernel):
        y = y + dw[j][None, None, :] * hp[:, j * dil:j * dil + K, :]
    return y


def tcn_reference(x_mck, params, *, kernel, n_successive, n_block):
    h = jnp.transpose(x_mck, (0, 2, 1)).astype(jnp.float32)   # [M, K, C]
    for r in range(n_successive):
        for b in range(n_block):
            p = params[r][b]
            d = 2 ** b
            res = h
            v = jnp.einsum("mkc,ch->mkh", h, p["w1"])
            v = jnp.where(v >= 0, v, p["a1"][0, 0] * v)
            v = _gln_ref(v, p["g1"], p["b1"])
            v = _depthwise_causal_ref(v, p["dw"], kernel, d)
            v = jnp.where(v >= 0, v, p["a2"][0, 0] * v)
            v = _gln_ref(v, p["g2"], p["b2"])
            h = jnp.einsum("mkh,hc->mkc", v, p["w2"]) + res
    return jnp.transpose(h, (0, 2, 1))


# --------------------------- synthetic params -------------------------------

def init_tcn_params(key, c_in, c_out, kernel, n_successive, n_block):
    """Deterministic synthetic parameters (matching the torch module's shapes)."""
    params = []
    for r in range(n_successive):
        blocks_p = []
        for b in range(n_block):
            key, k1, k2, k3, k4, k5 = jax.random.split(key, 6)
            blk = {
                # torch conv1x1 weight [c_out, c_in, 1] -> [c_in, c_out]
                "w1": jax.random.normal(k1, (c_in, c_out), jnp.float32) * 0.05,
                "a1": jnp.full((1, 1), 0.25, jnp.float32),       # PReLU default
                "g1": 1.0 + 0.1 * jax.random.normal(k4, (1, c_out), jnp.float32),
                "b1": 0.1 * jax.random.normal(k5, (1, c_out), jnp.float32),
                # torch depthwise weight [c_out, 1, kernel] -> [kernel, c_out]
                "dw": jax.random.normal(k2, (kernel, c_out), jnp.float32) * 0.1,
                "a2": jnp.full((1, 1), 0.25, jnp.float32),
                "g2": jnp.ones((1, c_out), jnp.float32),
                "b2": jnp.zeros((1, c_out), jnp.float32),
                # torch pointwise weight [c_in, c_out, 1] -> [c_out, c_in]
                "w2": jax.random.normal(k3, (c_out, c_in), jnp.float32) * 0.05,
            }
            blocks_p.append(blk)
        params.append(blocks_p)
    return params


if __name__ == "__main__":
    # Small, shape-consistent configuration of TCN(c_in, c_out, kernel, ...)
    M, C_IN, C_OUT, K_LEN = 2, 8, 32, 32
    KERNEL, N_SUCCESSIVE, N_BLOCK = 3, 2, 3   # dilations 1, 2, 4 per repeat

    key = jax.random.PRNGKey(0)
    key, kx = jax.random.split(key)
    x = jax.random.normal(kx, (M, C_IN, K_LEN), jnp.float32)   # [M, C, K] NCK

    params = init_tcn_params(key, C_IN, C_OUT, KERNEL, N_SUCCESSIVE, N_BLOCK)

    out = tcn_forward(x, params, kernel=KERNEL,
                      n_successive=N_SUCCESSIVE, n_block=N_BLOCK)
    out = jax.block_until_ready(out)

    assert out.shape == (M, C_IN, K_LEN)
    assert bool(jnp.all(jnp.isfinite(out)))

    ref = tcn_reference(x, params, kernel=KERNEL,
                        n_successive=N_SUCCESSIVE, n_block=N_BLOCK)
    ref = jax.block_until_ready(ref)
    max_err = float(jnp.max(jnp.abs(out - ref)))
    scale = float(jnp.max(jnp.abs(ref))) + 1.0
    assert max_err / scale < 5e-3, f"mismatch vs reference: {max_err}"

    print("KERNEL_OK")
</pallas_src>

<mosaic_0001>
module attributes {stable_mosaic.version = 11 : i64} {
  func.func @_tcn_fused_kernel(%arg0: i32, %arg1: memref<6x2xf32, #tpu.memory_space<smem>>, %arg2: memref<1x32x128xf32, #tpu.memory_space<vmem>>, %arg3: memref<6x128x128xf32, #tpu.memory_space<vmem>>, %arg4: memref<6x1x128xf32, #tpu.memory_space<vmem>>, %arg5: memref<6x1x128xf32, #tpu.memory_space<vmem>>, %arg6: memref<6x3x128xf32, #tpu.memory_space<vmem>>, %arg7: memref<6x1x128xf32, #tpu.memory_space<vmem>>, %arg8: memref<6x1x128xf32, #tpu.memory_space<vmem>>, %arg9: memref<6x128x128xf32, #tpu.memory_space<vmem>>, %arg10: memref<1x32x128xf32, #tpu.memory_space<vmem>>, %arg11: memref<40x128xf32, #tpu.memory_space<vmem>>) attributes {dimension_semantics = [#tpu.dimension_semantics<parallel>], iteration_bounds = array<i64: 2>, scalar_prefetch = 0 : i64, scratch_operands = 1 : i64, tpu.core_type = #tpu.core_type<tc>, window_params = [{transform_indices = @transform_0, window_bounds = array<i64: 6, 2>}, {transform_indices = @transform_1, window_bounds = array<i64: 1, 32, 128>}, {pipeline_mode = #tpu.pipeline_mode<synchronous>, transform_indices = @transform_2, window_bounds = array<i64: 6, 128, 128>}, {pipeline_mode = #tpu.pipeline_mode<synchronous>, transform_indices = @transform_3, window_bounds = array<i64: 6, 1, 128>}, {pipeline_mode = #tpu.pipeline_mode<synchronous>, transform_indices = @transform_4, window_bounds = array<i64: 6, 1, 128>}, {pipeline_mode = #tpu.pipeline_mode<synchronous>, transform_indices = @transform_5, window_bounds = array<i64: 6, 3, 128>}, {pipeline_mode = #tpu.pipeline_mode<synchronous>, transform_indices = @transform_6, window_bounds = array<i64: 6, 1, 128>}, {pipeline_mode = #tpu.pipeline_mode<synchronous>, transform_indices = @transform_7, window_bounds = array<i64: 6, 1, 128>}, {pipeline_mode = #tpu.pipeline_mode<synchronous>, transform_indices = @transform_8, window_bounds = array<i64: 6, 128, 128>}, {transform_indices = @transform_9, window_bounds = array<i64: 1, 32, 128>}]} {
    %cst = arith.constant 0.000000e+00 : f32
    %0 = vector.broadcast %cst : f32 to vector<8x128xf32>
    %c0 = arith.constant 0 : index
    %c0_0 = arith.constant 0 : index
    %1 = vector.load %arg11[%c0, %c0_0] : memref<40x128xf32, #tpu.memory_space<vmem>>, vector<8x128xf32>
    tpu.vector_store %arg11[%c0, %c0_0], %0 {strides = array<i32>} : memref<40x128xf32, #tpu.memory_space<vmem>>, vector<8x128xf32>,
    %c0_1 = arith.constant 0 : index
    %c0_2 = arith.constant 0 : index
    %c0_3 = arith.constant 0 : index
    %2 = vector.load %arg2[%c0_1, %c0_2, %c0_3] : memref<1x32x128xf32, #tpu.memory_space<vmem>>, vector<1x32x128xf32>
    %3 = vector.shape_cast %2 : vector<1x32x128xf32> to vector<32x128xf32>
    %c0_4 = arith.constant 0 : index
    %c0_5 = arith.constant 0 : index
    %4 = memref.load %arg1[%c0_4, %c0_5] : memref<6x2xf32, #tpu.memory_space<smem>>
    %c0_6 = arith.constant 0 : index
    %c1 = arith.constant 1 : index
    %5 = memref.load %arg1[%c0_6, %c1] : memref<6x2xf32, #tpu.memory_space<smem>>
    %c0_7 = arith.constant 0 : index
    %c0_8 = arith.constant 0 : index
    %c0_9 = arith.constant 0 : index
    %6 = vector.load %arg3[%c0_7, %c0_8, %c0_9] : memref<6x128x128xf32, #tpu.memory_space<vmem>>, vector<1x128x128xf32>
    %7 = vector.shape_cast %6 : vector<1x128x128xf32> to vector<128x128xf32>
    %cst_10 = arith.constant dense<0.000000e+00> : vector<32x128xf32>
    %8 = tpu.matmul %3, %7, %cst_10 {dimension_numbers = #tpu.dot_dimension_numbers<[1], [0], [0], [1], [0, 0, 1, 1], [], []>} : vector<32x128xf32>, vector<128x128xf32>, vector<32x128xf32> -> vector<32x128xf32>
    %cst_11 = arith.constant 0.000000e+00 : f32
    %9 = vector.broadcast %cst_11 : f32 to vector<32x128xf32>
    %10 = arith.cmpf oge, %8, %9 : vector<32x128xf32>
    %11 = vector.broadcast %4 : f32 to vector<32x128xf32>
    %12 = arith.mulf %11, %8 : vector<32x128xf32>
    %13 = arith.select %10, %8, %12 : vector<32x128xi1>, vector<32x128xf32>
    %c0_12 = arith.constant 0 : index
    %c0_13 = arith.constant 0 : index
    %c0_14 = arith.constant 0 : index
    %14 = vector.load %arg4[%c0_12, %c0_13, %c0_14] : memref<6x1x128xf32, #tpu.memory_space<vmem>>, vector<1x1x128xf32>
    %15 = vector.shape_cast %14 : vector<1x1x128xf32> to vector<1x128xf32>
    %c0_15 = arith.constant 0 : index
    %c0_16 = arith.constant 0 : index
    %c0_17 = arith.constant 0 : index
    %16 = vector.load %arg5[%c0_15, %c0_16, %c0_17] : memref<6x1x128xf32, #tpu.memory_space<vmem>>, vector<1x1x128xf32>
    %17 = vector.shape_cast %16 : vector<1x1x128xf32> to vector<1x128xf32>
    %18 = vector.shape_cast %13 : vector<32x128xf32> to vector<1x32x128xf32>
    %cst_18 = arith.constant dense<0.000000e+00> : vector<1xf32>
    %19 = vector.multi_reduction <add>, %18, %cst_18 [1, 2] : vector<1x32x128xf32> to vector<1xf32>
    %20 = vector.shape_cast %19 : vector<1xf32> to vector<1x1x1xf32>
    %21 = vector.extract %20[0, 0, 0] : f32 from vector<1x1x1xf32>
    %22 = arith.mulf %13, %13 : vector<32x128xf32>
    %23 = vector.shape_cast %22 : vector<32x128xf32> to vector<1x32x128xf32>
    %cst_19 = arith.constant dense<0.000000e+00> : vector<1xf32>
    %24 = vector.multi_reduction <add>, %23, %cst_19 [1, 2] : vector<1x32x128xf32> to vector<1xf32>
    %25 = vector.shape_cast %24 : vector<1xf32> to vector<1x1x1xf32>
    %26 = vector.extract %25[0, 0, 0] : f32 from vector<1x1x1xf32>
    %cst_20 = arith.constant 9.765625E-4 : f32
    %27 = arith.mulf %21, %cst_20 : f32
    %cst_21 = arith.constant 9.765625E-4 : f32
    %28 = arith.mulf %26, %cst_21 : f32
    %29 = arith.mulf %27, %27 : f32
    %30 = arith.subf %28, %29 : f32
    %cst_22 = arith.constant 0.000000e+00 : f32
    %31 = arith.maximumf %30, %cst_22 : f32
    %cst_23 = arith.constant 9.99999982E-14 : f32
    %32 = arith.addf %31, %cst_23 : f32
    %33 = math.rsqrt %32 : f32
    %34 = vector.broadcast %27 : f32 to vector<32x128xf32>
    %35 = arith.subf %13, %34 : vector<32x128xf32>
    %36 = vector.broadcast %33 : f32 to vector<32x128xf32>
    %37 = arith.mulf %35, %36 : vector<32x128xf32>
    %38 = vector.broadcast %15 : vector<1x128xf32> to vector<32x128xf32>
    %39 = arith.mulf %38, %37 : vector<32x128xf32>
    %40 = vector.broadcast %17 : vector<1x128xf32> to vector<32x128xf32>
    %41 = arith.addf %39, %40 : vector<32x128xf32>
    %c8 = arith.constant 8 : index
    %c0_24 = arith.constant 0 : index
    %42 = vector.load %arg11[%c8, %c0_24] : memref<40x128xf32, #tpu.memory_space<vmem>>, vector<32x128xf32>
    tpu.vector_store %arg11[%c8, %c0_24], %41 {strides = array<i32>} : memref<40x128xf32, #tpu.memory_space<vmem>>, vector<32x128xf32>,
    %c0_25 = arith.constant 0 : index
    %c0_26 = arith.constant 0 : index
    %c0_27 = arith.constant 0 : index
    %43 = vector.load %arg6[%c0_25, %c0_26, %c0_27] : memref<6x3x128xf32, #tpu.memory_space<vmem>>, vector<1x3x128xf32>
    %44 = vector.shape_cast %43 : vector<1x3x128xf32> to vector<3x128xf32>
    %cst_28 = arith.constant 0.000000e+00 : f32
    %45 = vector.broadcast %cst_28 : f32 to vector<32x128xf32>
    %c6 = arith.constant 6 : index
    %c0_29 = arith.constant 0 : index
    %46 = vector.load %arg11[%c6, %c0_29] : memref<40x128xf32, #tpu.memory_space<vmem>>, vector<32x128xf32>
    %47 = vector.extract_strided_slice %44 {offsets = [0, 0], sizes = [1, 128], strides = [1, 1]} : vector<3x128xf32> to vector<1x128xf32>
    %48 = vector.broadcast %47 : vector<1x128xf32> to vector<32x128xf32>
    %49 = arith.mulf %48, %46 : vector<32x128xf32>
    %50 = arith.addf %45, %49 : vector<32x128xf32>
    %c7 = arith.constant 7 : index
    %c0_30 = arith.constant 0 : index
    %51 = vector.load %arg11[%c7, %c0_30] : memref<40x128xf32, #tpu.memory_space<vmem>>, vector<32x128xf32>
    %52 = vector.extract_strided_slice %44 {offsets = [1, 0], sizes = [1, 128], strides = [1, 1]} : vector<3x128xf32> to vector<1x128xf32>
    %53 = vector.broadcast %52 : vector<1x128xf32> to vector<32x128xf32>
    %54 = arith.mulf %53, %51 : vector<32x128xf32>
    %55 = arith.addf %50, %54 : vector<32x128xf32>
    %c8_31 = arith.constant 8 : index
    %c0_32 = arith.constant 0 : index
    %56 = vector.load %arg11[%c8_31, %c0_32] : memref<40x128xf32, #tpu.memory_space<vmem>>, vector<32x128xf32>
    %57 = vector.extract_strided_slice %44 {offsets = [2, 0], sizes = [1, 128], strides = [1, 1]} : vector<3x128xf32> to vector<1x128xf32>
    %58 = vector.broadcast %57 : vector<1x128xf32> to vector<32x128xf32>
    %59 = arith.mulf %58, %56 : vector<32x128xf32>
    %60 = arith.addf %55, %59 : vector<32x128xf32>
    %cst_33 = arith.constant 0.000000e+00 : f32
    %61 = vector.broadcast %cst_33 : f32 to vector<32x128xf32>
    %62 = arith.cmpf oge, %60, %61 : vector<32x128xf32>
    %63 = vector.broadcast %5 : f32 to vector<32x128xf32>
    %64 = arith.mulf %63, %60 : vector<32x128xf32>
    %65 = arith.select %62, %60, %64 : vector<32x128xi1>, vector<32x128xf32>
    %c0_34 = arith.constant 0 : index
    %c0_35 = arith.constant 0 : index
    %c0_36 = arith.constant 0 : index
    %66 = vector.load %arg7[%c0_34, %c0_35, %c0_36] : memref<6x1x128xf32, #tpu.memory_space<vmem>>, vector<1x1x128xf32>
    %67 = vector.shape_cast %66 : vector<1x1x128xf32> to vector<1x128xf32>
    %c0_37 = arith.constant 0 : index
    %c0_38 = arith.constant 0 : index
    %c0_39 = arith.constant 0 : index
    %68 = vector.load %arg8[%c0_37, %c0_38, %c0_39] : memref<6x1x128xf32, #tpu.memory_space<vmem>>, vector<1x1x128xf32>
    %69 = vector.shape_cast %68 : vector<1x1x128xf32> to vector<1x128xf32>
    %70 = vector.shape_cast %65 : vector<32x128xf32> to vector<1x32x128xf32>
    %cst_40 = arith.constant dense<0.000000e+00> : vector<1xf32>
    %71 = vector.multi_reduction <add>, %70, %cst_40 [1, 2] : vector<1x32x128xf32> to vector<1xf32>
    %72 = vector.shape_cast %71 : vector<1xf32> to vector<1x1x1xf32>
    %73 = vector.extract %72[0, 0, 0] : f32 from vector<1x1x1xf32>
    %74 = arith.mulf %65, %65 : vector<32x128xf32>
    %75 = vector.shape_cast %74 : vector<32x128xf32> to vector<1x32x128xf32>
    %cst_41 = arith.constant dense<0.000000e+00> : vector<1xf32>
    %76 = vector.multi_reduction <add>, %75, %cst_41 [1, 2] : vector<1x32x128xf32> to vector<1xf32>
    %77 = vector.shape_cast %76 : vector<1xf32> to vector<1x1x1xf32>
    %78 = vector.extract %77[0, 0, 0] : f32 from vector<1x1x1xf32>
    %cst_42 = arith.constant 9.765625E-4 : f32
    %79 = arith.mulf %73, %cst_42 : f32
    %cst_43 = arith.constant 9.765625E-4 : f32
    %80 = arith.mulf %78, %cst_43 : f32
    %81 = arith.mulf %79, %79 : f32
    %82 = arith.subf %80, %81 : f32
    %cst_44 = arith.constant 0.000000e+00 : f32
    %83 = arith.maximumf %82, %cst_44 : f32
    %cst_45 = arith.constant 9.99999982E-14 : f32
    %84 = arith.addf %83, %cst_45 : f32
    %85 = math.rsqrt %84 : f32
    %86 = vector.broadcast %79 : f32 to vector<32x128xf32>
    %87 = arith.subf %65, %86 : vector<32x128xf32>
    %88 = vector.broadcast %85 : f32 to vector<32x128xf32>
    %89 = arith.mulf %87, %88 : vector<32x128xf32>
    %90 = vector.broadcast %67 : vector<1x128xf32> to vector<32x128xf32>
    %91 = arith.mulf %90, %89 : vector<32x128xf32>
    %92 = vector.broadcast %69 : vector<1x128xf32> to vector<32x128xf32>
    %93 = arith.addf %91, %92 : vector<32x128xf32>
    %c0_46 = arith.constant 0 : index
    %c0_47 = arith.constant 0 : index
    %c0_48 = arith.constant 0 : index
    %94 = vector.load %arg9[%c0_46, %c0_47, %c0_48] : memref<6x128x128xf32, #tpu.memory_space<vmem>>, vector<1x128x128xf32>
    %95 = vector.shape_cast %94 : vector<1x128x128xf32> to vector<128x128xf32>
    %cst_49 = arith.constant dense<0.000000e+00> : vector<32x128xf32>
    %96 = tpu.matmul %93, %95, %cst_49 {dimension_numbers = #tpu.dot_dimension_numbers<[1], [0], [0], [1], [0, 0, 1, 1], [], []>} : vector<32x128xf32>, vector<128x128xf32>, vector<32x128xf32> -> vector<32x128xf32>
    %97 = arith.addf %96, %3 : vector<32x128xf32>
    %c1_50 = arith.constant 1 : index
    %c0_51 = arith.constant 0 : index
    %98 = memref.load %arg1[%c1_50, %c0_51] : memref<6x2xf32, #tpu.memory_space<smem>>
    %c1_52 = arith.constant 1 : index
    %c1_53 = arith.constant 1 : index
    %99 = memref.load %arg1[%c1_52, %c1_53] : memref<6x2xf32, #tpu.memory_space<smem>>
    %c1_54 = arith.constant 1 : index
    %c0_55 = arith.constant 0 : index
    %c0_56 = arith.constant 0 : index
    %100 = vector.load %arg3[%c1_54, %c0_55, %c0_56] : memref<6x128x128xf32, #tpu.memory_space<vmem>>, vector<1x128x128xf32>
    %101 = vector.shape_cast %100 : vector<1x128x128xf32> to vector<128x128xf32>
    %cst_57 = arith.constant dense<0.000000e+00> : vector<32x128xf32>
    %102 = tpu.matmul %97, %101, %cst_57 {dimension_numbers = #tpu.dot_dimension_numbers<[1], [0], [0], [1], [0, 0, 1, 1], [], []>} : vector<32x128xf32>, vector<128x128xf32>, vector<32x128xf32> -> vector<32x128xf32>
    %cst_58 = arith.constant 0.000000e+00 : f32
    %103 = vector.broadcast %cst_58 : f32 to vector<32x128xf32>
    %104 = arith.cmpf oge, %102, %103 : vector<32x128xf32>
    %105 = vector.broadcast %98 : f32 to vector<32x128xf32>
    %106 = arith.mulf %105, %102 : vector<32x128xf32>
    %107 = arith.select %104, %102, %106 : vector<32x128xi1>, vector<32x128xf32>
    %c1_59 = arith.constant 1 : index
    %c0_60 = arith.constant 0 : index
    %c0_61 = arith.constant 0 : index
    %108 = vector.load %arg4[%c1_59, %c0_60, %c0_61] : memref<6x1x128xf32, #tpu.memory_space<vmem>>, vector<1x1x128xf32>
    %109 = vector.shape_cast %108 : vector<1x1x128xf32> to vector<1x128xf32>
    %c1_62 = arith.constant 1 : index
    %c0_63 = arith.constant 0 : index
    %c0_64 = arith.constant 0 : index
    %110 = vector.load %arg5[%c1_62, %c0_63, %c0_64] : memref<6x1x128xf32, #tpu.memory_space<vmem>>, vector<1x1x128xf32>
    %111 = vector.shape_cast %110 : vector<1x1x128xf32> to vector<1x128xf32>
    %112 = vector.shape_cast %107 : vector<32x128xf32> to vector<1x32x128xf32>
    %cst_65 = arith.constant dense<0.000000e+00> : vector<1xf32>
    %113 = vector.multi_reduction <add>, %112, %cst_65 [1, 2] : vector<1x32x128xf32> to vector<1xf32>
    %114 = vector.shape_cast %113 : vector<1xf32> to vector<1x1x1xf32>
    %115 = vector.extract %114[0, 0, 0] : f32 from vector<1x1x1xf32>
    %116 = arith.mulf %107, %107 : vector<32x128xf32>
    %117 = vector.shape_cast %116 : vector<32x128xf32> to vector<1x32x128xf32>
    %cst_66 = arith.constant dense<0.000000e+00> : vector<1xf32>
    %118 = vector.multi_reduction <add>, %117, %cst_66 [1, 2] : vector<1x32x128xf32> to vector<1xf32>
    %119 = vector.shape_cast %118 : vector<1xf32> to vector<1x1x1xf32>
    %120 = vector.extract %119[0, 0, 0] : f32 from vector<1x1x1xf32>
    %cst_67 = arith.constant 9.765625E-4 : f32
    %121 = arith.mulf %115, %cst_67 : f32
    %cst_68 = arith.constant 9.765625E-4 : f32
    %122 = arith.mulf %120, %cst_68 : f32
    %123 = arith.mulf %121, %121 : f32
    %124 = arith.subf %122, %123 : f32
    %cst_69 = arith.constant 0.000000e+00 : f32
    %125 = arith.maximumf %124, %cst_69 : f32
    %cst_70 = arith.constant 9.99999982E-14 : f32
    %126 = arith.addf %125, %cst_70 : f32
    %127 = math.rsqrt %126 : f32
    %128 = vector.broadcast %121 : f32 to vector<32x128xf32>
    %129 = arith.subf %107, %128 : vector<32x128xf32>
    %130 = vector.broadcast %127 : f32 to vector<32x128xf32>
    %131 = arith.mulf %129, %130 : vector<32x128xf32>
    %132 = vector.broadcast %109 : vector<1x128xf32> to vector<32x128xf32>
    %133 = arith.mulf %132, %131 : vector<32x128xf32>
    %134 = vector.broadcast %111 : vector<1x128xf32> to vector<32x128xf32>
    %135 = arith.addf %133, %134 : vector<32x128xf32>
    %c8_71 = arith.constant 8 : index
    %c0_72 = arith.constant 0 : index
    %136 = vector.load %arg11[%c8_71, %c0_72] : memref<40x128xf32, #tpu.memory_space<vmem>>, vector<32x128xf32>
    tpu.vector_store %arg11[%c8_71, %c0_72], %135 {strides = array<i32>} : memref<40x128xf32, #tpu.memory_space<vmem>>, vector<32x128xf32>,
    %c1_73 = arith.constant 1 : index
    %c0_74 = arith.constant 0 : index
    %c0_75 = arith.constant 0 : index
    %137 = vector.load %arg6[%c1_73, %c0_74, %c0_75] : memref<6x3x128xf32, #tpu.memory_space<vmem>>, vector<1x3x128xf32>
    %138 = vector.shape_cast %137 : vector<1x3x128xf32> to vector<3x128xf32>
    %cst_76 = arith.constant 0.000000e+00 : f32
    %139 = vector.broadcast %cst_76 : f32 to vector<32x128xf32>
    %c4 = arith.constant 4 : index
    %c0_77 = arith.constant 0 : index
    %140 = vector.load %arg11[%c4, %c0_77] : memref<40x128xf32, #tpu.memory_space<vmem>>, vector<32x128xf32>
    %141 = vector.extract_strided_slice %138 {offsets = [0, 0], sizes = [1, 128], strides = [1, 1]} : vector<3x128xf32> to vector<1x128xf32>
    %142 = vector.broadcast %141 : vector<1x128xf32> to vector<32x128xf32>
    %143 = arith.mulf %142, %140 : vector<32x128xf32>
    %144 = arith.addf %139, %143 : vector<32x128xf32>
    %c6_78 = arith.constant 6 : index
    %c0_79 = arith.constant 0 : index
    %145 = vector.load %arg11[%c6_78, %c0_79] : memref<40x128xf32, #tpu.memory_space<vmem>>, vector<32x128xf32>
    %146 = vector.extract_strided_slice %138 {offsets = [1, 0], sizes = [1, 128], strides = [1, 1]} : vector<3x128xf32> to vector<1x128xf32>
    %147 = vector.broadcast %146 : vector<1x128xf32> to vector<32x128xf32>
    %148 = arith.mulf %147, %145 : vector<32x128xf32>
    %149 = arith.addf %144, %148 : vector<32x128xf32>
    %c8_80 = arith.constant 8 : index
    %c0_81 = arith.constant 0 : index
    %150 = vector.load %arg11[%c8_80, %c0_81] : memref<40x128xf32, #tpu.memory_space<vmem>>, vector<32x128xf32>
    %151 = vector.extract_strided_slice %138 {offsets = [2, 0], sizes = [1, 128], strides = [1, 1]} : vector<3x128xf32> to vector<1x128xf32>
    %152 = vector.broadcast %151 : vector<1x128xf32> to vector<32x128xf32>
    %153 = arith.mulf %152, %150 : vector<32x128xf32>
    %154 = arith.addf %149, %153 : vector<32x128xf32>
    %cst_82 = arith.constant 0.000000e+00 : f32
    %155 = vector.broadcast %cst_82 : f32 to vector<32x128xf32>
    %156 = arith.cmpf oge, %154, %155 : vector<32x128xf32>
    %157 = vector.broadcast %99 : f32 to vector<32x128xf32>
    %158 = arith.mulf %157, %154 : vector<32x128xf32>
    %159 = arith.select %156, %154, %158 : vector<32x128xi1>, vector<32x128xf32>
    %c1_83 = arith.constant 1 : index
    %c0_84 = arith.constant 0 : index
    %c0_85 = arith.constant 0 : index
    %160 = vector.load %arg7[%c1_83, %c0_84, %c0_85] : memref<6x1x128xf32, #tpu.memory_space<vmem>>, vector<1x1x128xf32>
    %161 = vector.shape_cast %160 : vector<1x1x128xf32> to vector<1x128xf32>
    %c1_86 = arith.constant 1 : index
    %c0_87 = arith.constant 0 : index
    %c0_88 = arith.constant 0 : index
    %162 = vector.load %arg8[%c1_86, %c0_87, %c0_88] : memref<6x1x128xf32, #tpu.memory_space<vmem>>, vector<1x1x128xf32>
    %163 = vector.shape_cast %162 : vector<1x1x128xf32> to vector<1x128xf32>
    %164 = vector.shape_cast %159 : vector<32x128xf32> to vector<1x32x128xf32>
    %cst_89 = arith.constant dense<0.000000e+00> : vector<1xf32>
    %165 = vector.multi_reduction <add>, %164, %cst_89 [1, 2] : vector<1x32x128xf32> to vector<1xf32>
    %166 = vector.shape_cast %165 : vector<1xf32> to vector<1x1x1xf32>
    %167 = vector.extract %166[0, 0, 0] : f32 from vector<1x1x1xf32>
    %168 = arith.mulf %159, %159 : vector<32x128xf32>
    %169 = vector.shape_cast %168 : vector<32x128xf32> to vector<1x32x128xf32>
    %cst_90 = arith.constant dense<0.000000e+00> : vector<1xf32>
    %170 = vector.multi_reduction <add>, %169, %cst_90 [1, 2] : vector<1x32x128xf32> to vector<1xf32>
    %171 = vector.shape_cast %170 : vector<1xf32> to vector<1x1x1xf32>
    %172 = vector.extract %171[0, 0, 0] : f32 from vector<1x1x1xf32>
    %cst_91 = arith.constant 9.765625E-4 : f32
    %173 = arith.mulf %167, %cst_91 : f32
    %cst_92 = arith.constant 9.765625E-4 : f32
    %174 = arith.mulf %172, %cst_92 : f32
    %175 = arith.mulf %173, %173 : f32
    %176 = arith.subf %174, %175 : f32
    %cst_93 = arith.constant 0.000000e+00 : f32
    %177 = arith.maximumf %176, %cst_93 : f32
    %cst_94 = arith.constant 9.99999982E-14 : f32
    %178 = arith.addf %177, %cst_94 : f32
    %179 = math.rsqrt %178 : f32
    %180 = vector.broadcast %173 : f32 to vector<32x128xf32>
    %181 = arith.subf %159, %180 : vector<32x128xf32>
    %182 = vector.broadcast %179 : f32 to vector<32x128xf32>
    %183 = arith.mulf %181, %182 : vector<32x128xf32>
    %184 = vector.broadcast %161 : vector<1x128xf32> to vector<32x128xf32>
    %185 = arith.mulf %184, %183 : vector<32x128xf32>
    %186 = vector.broadcast %163 : vector<1x128xf32> to vector<32x128xf32>
    %187 = arith.addf %185, %186 : vector<32x128xf32>
    %c1_95 = arith.constant 1 : index
    %c0_96 = arith.constant 0 : index
    %c0_97 = arith.constant 0 : index
    %188 = vector.load %arg9[%c1_95, %c0_96, %c0_97] : memref<6x128x128xf32, #tpu.memory_space<vmem>>, vector<1x128x128xf32>
    %189 = vector.shape_cast %188 : vector<1x128x128xf32> to vector<128x128xf32>
    %cst_98 = arith.constant dense<0.000000e+00> : vector<32x128xf32>
    %190 = tpu.matmul %187, %189, %cst_98 {dimension_numbers = #tpu.dot_dimension_numbers<[1], [0], [0], [1], [0, 0, 1, 1], [], []>} : vector<32x128xf32>, vector<128x128xf32>, vector<32x128xf32> -> vector<32x128xf32>
    %191 = arith.addf %190, %97 : vector<32x128xf32>
    %c2 = arith.constant 2 : index
    %c0_99 = arith.constant 0 : index
    %192 = memref.load %arg1[%c2, %c0_99] : memref<6x2xf32, #tpu.memory_space<smem>>
    %c2_100 = arith.constant 2 : index
    %c1_101 = arith.constant 1 : index
    %193 = memref.load %arg1[%c2_100, %c1_101] : memref<6x2xf32, #tpu.memory_space<smem>>
    %c2_102 = arith.constant 2 : index
    %c0_103 = arith.constant 0 : index
    %c0_104 = arith.constant 0 : index
    %194 = vector.load %arg3[%c2_102, %c0_103, %c0_104] : memref<6x128x128xf32, #tpu.memory_space<vmem>>, vector<1x128x128xf32>
    %195 = vector.shape_cast %194 : vector<1x128x128xf32> to vector<128x128xf32>
    %cst_105 = arith.constant dense<0.000000e+00> : vector<32x128xf32>
    %196 = tpu.matmul %191, %195, %cst_105 {dimension_numbers = #tpu.dot_dimension_numbers<[1], [0], [0], [1], [0, 0, 1, 1], [], []>} : vector<32x128xf32>, vector<128x128xf32>, vector<32x128xf32> -> vector<32x128xf32>
    %cst_106 = arith.constant 0.000000e+00 : f32
    %197 = vector.broadcast %cst_106 : f32 to vector<32x128xf32>
    %198 = arith.cmpf oge, %196, %197 : vector<32x128xf32>
    %199 = vector.broadcast %192 : f32 to vector<32x128xf32>
    %200 = arith.mulf %199, %196 : vector<32x128xf32>
    %201 = arith.select %198, %196, %200 : vector<32x128xi1>, vector<32x128xf32>
    %c2_107 = arith.constant 2 : index
    %c0_108 = arith.constant 0 : index
    %c0_109 = arith.constant 0 : index
    %202 = vector.load %arg4[%c2_107, %c0_108, %c0_109] : memref<6x1x128xf32, #tpu.memory_space<vmem>>, vector<1x1x128xf32>
    %203 = vector.shape_cast %202 : vector<1x1x128xf32> to vector<1x128xf32>
    %c2_110 = arith.constant 2 : index
    %c0_111 = arith.constant 0 : index
    %c0_112 = arith.constant 0 : index
    %204 = vector.load %arg5[%c2_110, %c0_111, %c0_112] : memref<6x1x128xf32, #tpu.memory_space<vmem>>, vector<1x1x128xf32>
    %205 = vector.shape_cast %204 : vector<1x1x128xf32> to vector<1x128xf32>
    %206 = vector.shape_cast %201 : vector<32x128xf32> to vector<1x32x128xf32>
    %cst_113 = arith.constant dense<0.000000e+00> : vector<1xf32>
    %207 = vector.multi_reduction <add>, %206, %cst_113 [1, 2] : vector<1x32x128xf32> to vector<1xf32>
    %208 = vector.shape_cast %207 : vector<1xf32> to vector<1x1x1xf32>
    %209 = vector.extract %208[0, 0, 0] : f32 from vector<1x1x1xf32>
    %210 = arith.mulf %201, %201 : vector<32x128xf32>
    %211 = vector.shape_cast %210 : vector<32x128xf32> to vector<1x32x128xf32>
    %cst_114 = arith.constant dense<0.000000e+00> : vector<1xf32>
    %212 = vector.multi_reduction <add>, %211, %cst_114 [1, 2] : vector<1x32x128xf32> to vector<1xf32>
    %213 = vector.shape_cast %212 : vector<1xf32> to vector<1x1x1xf32>
    %214 = vector.extract %213[0, 0, 0] : f32 from vector<1x1x1xf32>
    %cst_115 = arith.constant 9.765625E-4 : f32
    %215 = arith.mulf %209, %cst_115 : f32
    %cst_116 = arith.constant 9.765625E-4 : f32
    %216 = arith.mulf %214, %cst_116 : f32
    %217 = arith.mulf %215, %215 : f32
    %218 = arith.subf %216, %217 : f32
    %cst_117 = arith.constant 0.000000e+00 : f32
    %219 = arith.maximumf %218, %cst_117 : f32
    %cst_118 = arith.constant 9.99999982E-14 : f32
    %220 = arith.addf %219, %cst_118 : f32
    %221 = math.rsqrt %220 : f32
    %222 = vector.broadcast %215 : f32 to vector<32x128xf32>
    %223 = arith.subf %201, %222 : vector<32x128xf32>
    %224 = vector.broadcast %221 : f32 to vector<32x128xf32>
    %225 = arith.mulf %223, %224 : vector<32x128xf32>
    %226 = vector.broadcast %203 : vector<1x128xf32> to vector<32x128xf32>
    %227 = arith.mulf %226, %225 : vector<32x128xf32>
    %228 = vector.broadcast %205 : vector<1x128xf32> to vector<32x128xf32>
    %229 = arith.addf %227, %228 : vector<32x128xf32>
    %c8_119 = arith.constant 8 : index
    %c0_120 = arith.constant 0 : index
    %230 = vector.load %arg11[%c8_119, %c0_120] : memref<40x128xf32, #tpu.memory_space<vmem>>, vector<32x128xf32>
    tpu.vector_store %arg11[%c8_119, %c0_120], %229 {strides = array<i32>} : memref<40x128xf32, #tpu.memory_space<vmem>>, vector<32x128xf32>,
    %c2_121 = arith.constant 2 : index
    %c0_122 = arith.constant 0 : index
    %c0_123 = arith.constant 0 : index
    %231 = vector.load %arg6[%c2_121, %c0_122, %c0_123] : memref<6x3x128xf32, #tpu.memory_space<vmem>>, vector<1x3x128xf32>
    %232 = vector.shape_cast %231 : vector<1x3x128xf32> to vector<3x128xf32>
    %cst_124 = arith.constant 0.000000e+00 : f32
    %233 = vector.broadcast %cst_124 : f32 to vector<32x128xf32>
    %c0_125 = arith.constant 0 : index
    %c0_126 = arith.constant 0 : index
    %234 = vector.load %arg11[%c0_125, %c0_126] : memref<40x128xf32, #tpu.memory_space<vmem>>, vector<32x128xf32>
    %235 = vector.extract_strided_slice %232 {offsets = [0, 0], sizes = [1, 128], strides = [1, 1]} : vector<3x128xf32> to vector<1x128xf32>
    %236 = vector.broadcast %235 : vector<1x128xf32> to vector<32x128xf32>
    %237 = arith.mulf %236, %234 : vector<32x128xf32>
    %238 = arith.addf %233, %237 : vector<32x128xf32>
    %c4_127 = arith.constant 4 : index
    %c0_128 = arith.constant 0 : index
    %239 = vector.load %arg11[%c4_127, %c0_128] : memref<40x128xf32, #tpu.memory_space<vmem>>, vector<32x128xf32>
    %240 = vector.extract_strided_slice %232 {offsets = [1, 0], sizes = [1, 128], strides = [1, 1]} : vector<3x128xf32> to vector<1x128xf32>
    %241 = vector.broadcast %240 : vector<1x128xf32> to vector<32x128xf32>
    %242 = arith.mulf %241, %239 : vector<32x128xf32>
    %243 = arith.addf %238, %242 : vector<32x128xf32>
    %c8_129 = arith.constant 8 : index
    %c0_130 = arith.constant 0 : index
    %244 = vector.load %arg11[%c8_129, %c0_130] : memref<40x128xf32, #tpu.memory_space<vmem>>, vector<32x128xf32>
    %245 = vector.extract_strided_slice %232 {offsets = [2, 0], sizes = [1, 128], strides = [1, 1]} : vector<3x128xf32> to vector<1x128xf32>
    %246 = vector.broadcast %245 : vector<1x128xf32> to vector<32x128xf32>
    %247 = arith.mulf %246, %244 : vector<32x128xf32>
    %248 = arith.addf %243, %247 : vector<32x128xf32>
    %cst_131 = arith.constant 0.000000e+00 : f32
    %249 = vector.broadcast %cst_131 : f32 to vector<32x128xf32>
    %250 = arith.cmpf oge, %248, %249 : vector<32x128xf32>
    %251 = vector.broadcast %193 : f32 to vector<32x128xf32>
    %252 = arith.mulf %251, %248 : vector<32x128xf32>
    %253 = arith.select %250, %248, %252 : vector<32x128xi1>, vector<32x128xf32>
    %c2_132 = arith.constant 2 : index
    %c0_133 = arith.constant 0 : index
    %c0_134 = arith.constant 0 : index
    %254 = vector.load %arg7[%c2_132, %c0_133, %c0_134] : memref<6x1x128xf32, #tpu.memory_space<vmem>>, vector<1x1x128xf32>
    %255 = vector.shape_cast %254 : vector<1x1x128xf32> to vector<1x128xf32>
    %c2_135 = arith.constant 2 : index
    %c0_136 = arith.constant 0 : index
    %c0_137 = arith.constant 0 : index
    %256 = vector.load %arg8[%c2_135, %c0_136, %c0_137] : memref<6x1x128xf32, #tpu.memory_space<vmem>>, vector<1x1x128xf32>
    %257 = vector.shape_cast %256 : vector<1x1x128xf32> to vector<1x128xf32>
    %258 = vector.shape_cast %253 : vector<32x128xf32> to vector<1x32x128xf32>
    %cst_138 = arith.constant dense<0.000000e+00> : vector<1xf32>
    %259 = vector.multi_reduction <add>, %258, %cst_138 [1, 2] : vector<1x32x128xf32> to vector<1xf32>
    %260 = vector.shape_cast %259 : vector<1xf32> to vector<1x1x1xf32>
    %261 = vector.extract %260[0, 0, 0] : f32 from vector<1x1x1xf32>
    %262 = arith.mulf %253, %253 : vector<32x128xf32>
    %263 = vector.shape_cast %262 : vector<32x128xf32> to vector<1x32x128xf32>
    %cst_139 = arith.constant dense<0.000000e+00> : vector<1xf32>
    %264 = vector.multi_reduction <add>, %263, %cst_139 [1, 2] : vector<1x32x128xf32> to vector<1xf32>
    %265 = vector.shape_cast %264 : vector<1xf32> to vector<1x1x1xf32>
    %266 = vector.extract %265[0, 0, 0] : f32 from vector<1x1x1xf32>
    %cst_140 = arith.constant 9.765625E-4 : f32
    %267 = arith.mulf %261, %cst_140 : f32
    %cst_141 = arith.constant 9.765625E-4 : f32
    %268 = arith.mulf %266, %cst_141 : f32
    %269 = arith.mulf %267, %267 : f32
    %270 = arith.subf %268, %269 : f32
    %cst_142 = arith.constant 0.000000e+00 : f32
    %271 = arith.maximumf %270, %cst_142 : f32
    %cst_143 = arith.constant 9.99999982E-14 : f32
    %272 = arith.addf %271, %cst_143 : f32
    %273 = math.rsqrt %272 : f32
    %274 = vector.broadcast %267 : f32 to vector<32x128xf32>
    %275 = arith.subf %253, %274 : vector<32x128xf32>
    %276 = vector.broadcast %273 : f32 to vector<32x128xf32>
    %277 = arith.mulf %275, %276 : vector<32x128xf32>
    %278 = vector.broadcast %255 : vector<1x128xf32> to vector<32x128xf32>
    %279 = arith.mulf %278, %277 : vector<32x128xf32>
    %280 = vector.broadcast %257 : vector<1x128xf32> to vector<32x128xf32>
    %281 = arith.addf %279, %280 : vector<32x128xf32>
    %c2_144 = arith.constant 2 : index
    %c0_145 = arith.constant 0 : index
    %c0_146 = arith.constant 0 : index
    %282 = vector.load %arg9[%c2_144, %c0_145, %c0_146] : memref<6x128x128xf32, #tpu.memory_space<vmem>>, vector<1x128x128xf32>
    %283 = vector.shape_cast %282 : vector<1x128x128xf32> to vector<128x128xf32>
    %cst_147 = arith.constant dense<0.000000e+00> : vector<32x128xf32>
    %284 = tpu.matmul %281, %283, %cst_147 {dimension_numbers = #tpu.dot_dimension_numbers<[1], [0], [0], [1], [0, 0, 1, 1], [], []>} : vector<32x128xf32>, vector<128x128xf32>, vector<32x128xf32> -> vector<32x128xf32>
    %285 = arith.addf %284, %191 : vector<32x128xf32>
    %c3 = arith.constant 3 : index
    %c0_148 = arith.constant 0 : index
    %286 = memref.load %arg1[%c3, %c0_148] : memref<6x2xf32, #tpu.memory_space<smem>>
    %c3_149 = arith.constant 3 : index
    %c1_150 = arith.constant 1 : index
    %287 = memref.load %arg1[%c3_149, %c1_150] : memref<6x2xf32, #tpu.memory_space<smem>>
    %c3_151 = arith.constant 3 : index
    %c0_152 = arith.constant 0 : index
    %c0_153 = arith.constant 0 : index
    %288 = vector.load %arg3[%c3_151, %c0_152, %c0_153] : memref<6x128x128xf32, #tpu.memory_space<vmem>>, vector<1x128x128xf32>
    %289 = vector.shape_cast %288 : vector<1x128x128xf32> to vector<128x128xf32>
    %cst_154 = arith.constant dense<0.000000e+00> : vector<32x128xf32>
    %290 = tpu.matmul %285, %289, %cst_154 {dimension_numbers = #tpu.dot_dimension_numbers<[1], [0], [0], [1], [0, 0, 1, 1], [], []>} : vector<32x128xf32>, vector<128x128xf32>, vector<32x128xf32> -> vector<32x128xf32>
    %cst_155 = arith.constant 0.000000e+00 : f32
    %291 = vector.broadcast %cst_155 : f32 to vector<32x128xf32>
    %292 = arith.cmpf oge, %290, %291 : vector<32x128xf32>
    %293 = vector.broadcast %286 : f32 to vector<32x128xf32>
    %294 = arith.mulf %293, %290 : vector<32x128xf32>
    %295 = arith.select %292, %290, %294 : vector<32x128xi1>, vector<32x128xf32>
    %c3_156 = arith.constant 3 : index
    %c0_157 = arith.constant 0 : index
    %c0_158 = arith.constant 0 : index
    %296 = vector.load %arg4[%c3_156, %c0_157, %c0_158] : memref<6x1x128xf32, #tpu.memory_space<vmem>>, vector<1x1x128xf32>
    %297 = vector.shape_cast %296 : vector<1x1x128xf32> to vector<1x128xf32>
    %c3_159 = arith.constant 3 : index
    %c0_160 = arith.constant 0 : index
    %c0_161 = arith.constant 0 : index
    %298 = vector.load %arg5[%c3_159, %c0_160, %c0_161] : memref<6x1x128xf32, #tpu.memory_space<vmem>>, vector<1x1x128xf32>
    %299 = vector.shape_cast %298 : vector<1x1x128xf32> to vector<1x128xf32>
    %300 = vector.shape_cast %295 : vector<32x128xf32> to vector<1x32x128xf32>
    %cst_162 = arith.constant dense<0.000000e+00> : vector<1xf32>
    %301 = vector.multi_reduction <add>, %300, %cst_162 [1, 2] : vector<1x32x128xf32> to vector<1xf32>
    %302 = vector.shape_cast %301 : vector<1xf32> to vector<1x1x1xf32>
    %303 = vector.extract %302[0, 0, 0] : f32 from vector<1x1x1xf32>
    %304 = arith.mulf %295, %295 : vector<32x128xf32>
    %305 = vector.shape_cast %304 : vector<32x128xf32> to vector<1x32x128xf32>
    %cst_163 = arith.constant dense<0.000000e+00> : vector<1xf32>
    %306 = vector.multi_reduction <add>, %305, %cst_163 [1, 2] : vector<1x32x128xf32> to vector<1xf32>
    %307 = vector.shape_cast %306 : vector<1xf32> to vector<1x1x1xf32>
    %308 = vector.extract %307[0, 0, 0] : f32 from vector<1x1x1xf32>
    %cst_164 = arith.constant 9.765625E-4 : f32
    %309 = arith.mulf %303, %cst_164 : f32
    %cst_165 = arith.constant 9.765625E-4 : f32
    %310 = arith.mulf %308, %cst_165 : f32
    %311 = arith.mulf %309, %309 : f32
    %312 = arith.subf %310, %311 : f32
    %cst_166 = arith.constant 0.000000e+00 : f32
    %313 = arith.maximumf %312, %cst_166 : f32
    %cst_167 = arith.constant 9.99999982E-14 : f32
    %314 = arith.addf %313, %cst_167 : f32
    %315 = math.rsqrt %314 : f32
    %316 = vector.broadcast %309 : f32 to vector<32x128xf32>
    %317 = arith.subf %295, %316 : vector<32x128xf32>
    %318 = vector.broadcast %315 : f32 to vector<32x128xf32>
    %319 = arith.mulf %317, %318 : vector<32x128xf32>
    %320 = vector.broadcast %297 : vector<1x128xf32> to vector<32x128xf32>
    %321 = arith.mulf %320, %319 : vector<32x128xf32>
    %322 = vector.broadcast %299 : vector<1x128xf32> to vector<32x128xf32>
    %323 = arith.addf %321, %322 : vector<32x128xf32>
    %c8_168 = arith.constant 8 : index
    %c0_169 = arith.constant 0 : index
    %324 = vector.load %arg11[%c8_168, %c0_169] : memref<40x128xf32, #tpu.memory_space<vmem>>, vector<32x128xf32>
    tpu.vector_store %arg11[%c8_168, %c0_169], %323 {strides = array<i32>} : memref<40x128xf32, #tpu.memory_space<vmem>>, vector<32x128xf32>,
    %c3_170 = arith.constant 3 : index
    %c0_171 = arith.constant 0 : index
    %c0_172 = arith.constant 0 : index
    %325 = vector.load %arg6[%c3_170, %c0_171, %c0_172] : memref<6x3x128xf32, #tpu.memory_space<vmem>>, vector<1x3x128xf32>
    %326 = vector.shape_cast %325 : vector<1x3x128xf32> to vector<3x128xf32>
    %cst_173 = arith.constant 0.000000e+00 : f32
    %327 = vector.broadcast %cst_173 : f32 to vector<32x128xf32>
    %c6_174 = arith.constant 6 : index
    %c0_175 = arith.constant 0 : index
    %328 = vector.load %arg11[%c6_174, %c0_175] : memref<40x128xf32, #tpu.memory_space<vmem>>, vector<32x128xf32>
    %329 = vector.extract_strided_slice %326 {offsets = [0, 0], sizes = [1, 128], strides = [1, 1]} : vector<3x128xf32> to vector<1x128xf32>
    %330 = vector.broadcast %329 : vector<1x128xf32> to vector<32x128xf32>
    %331 = arith.mulf %330, %328 : vector<32x128xf32>
    %332 = arith.addf %327, %331 : vector<32x128xf32>
    %c7_176 = arith.constant 7 : index
    %c0_177 = arith.constant 0 : index
    %333 = vector.load %arg11[%c7_176, %c0_177] : memref<40x128xf32, #tpu.memory_space<vmem>>, vector<32x128xf32>
    %334 = vector.extract_strided_slice %326 {offsets = [1, 0], sizes = [1, 128], strides = [1, 1]} : vector<3x128xf32> to vector<1x128xf32>
    %335 = vector.broadcast %334 : vector<1x128xf32> to vector<32x128xf32>
    %336 = arith.mulf %335, %333 : vector<32x128xf32>
    %337 = arith.addf %332, %336 : vector<32x128xf32>
    %c8_178 = arith.constant 8 : index
    %c0_179 = arith.constant 0 : index
    %338 = vector.load %arg11[%c8_178, %c0_179] : memref<40x128xf32, #tpu.memory_space<vmem>>, vector<32x128xf32>
    %339 = vector.extract_strided_slice %326 {offsets = [2, 0], sizes = [1, 128], strides = [1, 1]} : vector<3x128xf32> to vector<1x128xf32>
    %340 = vector.broadcast %339 : vector<1x128xf32> to vector<32x128xf32>
    %341 = arith.mulf %340, %338 : vector<32x128xf32>
    %342 = arith.addf %337, %341 : vector<32x128xf32>
    %cst_180 = arith.constant 0.000000e+00 : f32
    %343 = vector.broadcast %cst_180 : f32 to vector<32x128xf32>
    %344 = arith.cmpf oge, %342, %343 : vector<32x128xf32>
    %345 = vector.broadcast %287 : f32 to vector<32x128xf32>
    %346 = arith.mulf %345, %342 : vector<32x128xf32>
    %347 = arith.select %344, %342, %346 : vector<32x128xi1>, vector<32x128xf32>
    %c3_181 = arith.constant 3 : index
    %c0_182 = arith.constant 0 : index
    %c0_183 = arith.constant 0 : index
    %348 = vector.load %arg7[%c3_181, %c0_182, %c0_183] : memref<6x1x128xf32, #tpu.memory_space<vmem>>, vector<1x1x128xf32>
    %349 = vector.shape_cast %348 : vector<1x1x128xf32> to vector<1x128xf32>
    %c3_184 = arith.constant 3 : index
    %c0_185 = arith.constant 0 : index
    %c0_186 = arith.constant 0 : index
    %350 = vector.load %arg8[%c3_184, %c0_185, %c0_186] : memref<6x1x128xf32, #tpu.memory_space<vmem>>, vector<1x1x128xf32>
    %351 = vector.shape_cast %350 : vector<1x1x128xf32> to vector<1x128xf32>
    %352 = vector.shape_cast %347 : vector<32x128xf32> to vector<1x32x128xf32>
    %cst_187 = arith.constant dense<0.000000e+00> : vector<1xf32>
    %353 = vector.multi_reduction <add>, %352, %cst_187 [1, 2] : vector<1x32x128xf32> to vector<1xf32>
    %354 = vector.shape_cast %353 : vector<1xf32> to vector<1x1x1xf32>
    %355 = vector.extract %354[0, 0, 0] : f32 from vector<1x1x1xf32>
    %356 = arith.mulf %347, %347 : vector<32x128xf32>
    %357 = vector.shape_cast %356 : vector<32x128xf32> to vector<1x32x128xf32>
    %cst_188 = arith.constant dense<0.000000e+00> : vector<1xf32>
    %358 = vector.multi_reduction <add>, %357, %cst_188 [1, 2] : vector<1x32x128xf32> to vector<1xf32>
    %359 = vector.shape_cast %358 : vector<1xf32> to vector<1x1x1xf32>
    %360 = vector.extract %359[0, 0, 0] : f32 from vector<1x1x1xf32>
    %cst_189 = arith.constant 9.765625E-4 : f32
    %361 = arith.mulf %355, %cst_189 : f32
    %cst_190 = arith.constant 9.765625E-4 : f32
    %362 = arith.mulf %360, %cst_190 : f32
    %363 = arith.mulf %361, %361 : f32
    %364 = arith.subf %362, %363 : f32
    %cst_191 = arith.constant 0.000000e+00 : f32
    %365 = arith.maximumf %364, %cst_191 : f32
    %cst_192 = arith.constant 9.99999982E-14 : f32
    %366 = arith.addf %365, %cst_192 : f32
    %367 = math.rsqrt %366 : f32
    %368 = vector.broadcast %361 : f32 to vector<32x128xf32>
    %369 = arith.subf %347, %368 : vector<32x128xf32>
    %370 = vector.broadcast %367 : f32 to vector<32x128xf32>
    %371 = arith.mulf %369, %370 : vector<32x128xf32>
    %372 = vector.broadcast %349 : vector<1x128xf32> to vector<32x128xf32>
    %373 = arith.mulf %372, %371 : vector<32x128xf32>
    %374 = vector.broadcast %351 : vector<1x128xf32> to vector<32x128xf32>
    %375 = arith.addf %373, %374 : vector<32x128xf32>
    %c3_193 = arith.constant 3 : index
    %c0_194 = arith.constant 0 : index
    %c0_195 = arith.constant 0 : index
    %376 = vector.load %arg9[%c3_193, %c0_194, %c0_195] : memref<6x128x128xf32, #tpu.memory_space<vmem>>, vector<1x128x128xf32>
    %377 = vector.shape_cast %376 : vector<1x128x128xf32> to vector<128x128xf32>
    %cst_196 = arith.constant dense<0.000000e+00> : vector<32x128xf32>
    %378 = tpu.matmul %375, %377, %cst_196 {dimension_numbers = #tpu.dot_dimension_numbers<[1], [0], [0], [1], [0, 0, 1, 1], [], []>} : vector<32x128xf32>, vector<128x128xf32>, vector<32x128xf32> -> vector<32x128xf32>
    %379 = arith.addf %378, %285 : vector<32x128xf32>
    %c4_197 = arith.constant 4 : index
    %c0_198 = arith.constant 0 : index
    %380 = memref.load %arg1[%c4_197, %c0_198] : memref<6x2xf32, #tpu.memory_space<smem>>
    %c4_199 = arith.constant 4 : index
    %c1_200 = arith.constant 1 : index
    %381 = memref.load %arg1[%c4_199, %c1_200] : memref<6x2xf32, #tpu.memory_space<smem>>
    %c4_201 = arith.constant 4 : index
    %c0_202 = arith.constant 0 : index
    %c0_203 = arith.constant 0 : index
    %382 = vector.load %arg3[%c4_201, %c0_202, %c0_203] : memref<6x128x128xf32, #tpu.memory_space<vmem>>, vector<1x128x128xf32>
    %383 = vector.shape_cast %382 : vector<1x128x128xf32> to vector<128x128xf32>
    %cst_204 = arith.constant dense<0.000000e+00> : vector<32x128xf32>
    %384 = tpu.matmul %379, %383, %cst_204 {dimension_numbers = #tpu.dot_dimension_numbers<[1], [0], [0], [1], [0, 0, 1, 1], [], []>} : vector<32x128xf32>, vector<128x128xf32>, vector<32x128xf32> -> vector<32x128xf32>
    %cst_205 = arith.constant 0.000000e+00 : f32
    %385 = vector.broadcast %cst_205 : f32 to vector<32x128xf32>
    %386 = arith.cmpf oge, %384, %385 : vector<32x128xf32>
    %387 = vector.broadcast %380 : f32 to vector<32x128xf32>
    %388 = arith.mulf %387, %384 : vector<32x128xf32>
    %389 = arith.select %386, %384, %388 : vector<32x128xi1>, vector<32x128xf32>
    %c4_206 = arith.constant 4 : index
    %c0_207 = arith.constant 0 : index
    %c0_208 = arith.constant 0 : index
    %390 = vector.load %arg4[%c4_206, %c0_207, %c0_208] : memref<6x1x128xf32, #tpu.memory_space<vmem>>, vector<1x1x128xf32>
    %391 = vector.shape_cast %390 : vector<1x1x128xf32> to vector<1x128xf32>
    %c4_209 = arith.constant 4 : index
    %c0_210 = arith.constant 0 : index
    %c0_211 = arith.constant 0 : index
    %392 = vector.load %arg5[%c4_209, %c0_210, %c0_211] : memref<6x1x128xf32, #tpu.memory_space<vmem>>, vector<1x1x128xf32>
    %393 = vector.shape_cast %392 : vector<1x1x128xf32> to vector<1x128xf32>
    %394 = vector.shape_cast %389 : vector<32x128xf32> to vector<1x32x128xf32>
    %cst_212 = arith.constant dense<0.000000e+00> : vector<1xf32>
    %395 = vector.multi_reduction <add>, %394, %cst_212 [1, 2] : vector<1x32x128xf32> to vector<1xf32>
    %396 = vector.shape_cast %395 : vector<1xf32> to vector<1x1x1xf32>
    %397 = vector.extract %396[0, 0, 0] : f32 from vector<1x1x1xf32>
    %398 = arith.mulf %389, %389 : vector<32x128xf32>
    %399 = vector.shape_cast %398 : vector<32x128xf32> to vector<1x32x128xf32>
    %cst_213 = arith.constant dense<0.000000e+00> : vector<1xf32>
    %400 = vector.multi_reduction <add>, %399, %cst_213 [1, 2] : vector<1x32x128xf32> to vector<1xf32>
    %401 = vector.shape_cast %400 : vector<1xf32> to vector<1x1x1xf32>
    %402 = vector.extract %401[0, 0, 0] : f32 from vector<1x1x1xf32>
    %cst_214 = arith.constant 9.765625E-4 : f32
    %403 = arith.mulf %397, %cst_214 : f32
    %cst_215 = arith.constant 9.765625E-4 : f32
    %404 = arith.mulf %402, %cst_215 : f32
    %405 = arith.mulf %403, %403 : f32
    %406 = arith.subf %404, %405 : f32
    %cst_216 = arith.constant 0.000000e+00 : f32
    %407 = arith.maximumf %406, %cst_216 : f32
    %cst_217 = arith.constant 9.99999982E-14 : f32
    %408 = arith.addf %407, %cst_217 : f32
    %409 = math.rsqrt %408 : f32
    %410 = vector.broadcast %403 : f32 to vector<32x128xf32>
    %411 = arith.subf %389, %410 : vector<32x128xf32>
    %412 = vector.broadcast %409 : f32 to vector<32x128xf32>
    %413 = arith.mulf %411, %412 : vector<32x128xf32>
    %414 = vector.broadcast %391 : vector<1x128xf32> to vector<32x128xf32>
    %415 = arith.mulf %414, %413 : vector<32x128xf32>
    %416 = vector.broadcast %393 : vector<1x128xf32> to vector<32x128xf32>
    %417 = arith.addf %415, %416 : vector<32x128xf32>
    %c8_218 = arith.constant 8 : index
    %c0_219 = arith.constant 0 : index
    %418 = vector.load %arg11[%c8_218, %c0_219] : memref<40x128xf32, #tpu.memory_space<vmem>>, vector<32x128xf32>
    tpu.vector_store %arg11[%c8_218, %c0_219], %417 {strides = array<i32>} : memref<40x128xf32, #tpu.memory_space<vmem>>, vector<32x128xf32>,
    %c4_220 = arith.constant 4 : index
    %c0_221 = arith.constant 0 : index
    %c0_222 = arith.constant 0 : index
    %419 = vector.load %arg6[%c4_220, %c0_221, %c0_222] : memref<6x3x128xf32, #tpu.memory_space<vmem>>, vector<1x3x128xf32>
    %420 = vector.shape_cast %419 : vector<1x3x128xf32> to vector<3x128xf32>
    %cst_223 = arith.constant 0.000000e+00 : f32
    %421 = vector.broadcast %cst_223 : f32 to vector<32x128xf32>
    %c4_224 = arith.constant 4 : index
    %c0_225 = arith.constant 0 : index
    %422 = vector.load %arg11[%c4_224, %c0_225] : memref<40x128xf32, #tpu.memory_space<vmem>>, vector<32x128xf32>
    %423 = vector.extract_strided_slice %420 {offsets = [0, 0], sizes = [1, 128], strides = [1, 1]} : vector<3x128xf32> to vector<1x128xf32>
    %424 = vector.broadcast %423 : vector<1x128xf32> to vector<32x128xf32>
    %425 = arith.mulf %424, %422 : vector<32x128xf32>
    %426 = arith.addf %421, %425 : vector<32x128xf32>
    %c6_226 = arith.constant 6 : index
    %c0_227 = arith.constant 0 : index
    %427 = vector.load %arg11[%c6_226, %c0_227] : memref<40x128xf32, #tpu.memory_space<vmem>>, vector<32x128xf32>
    %428 = vector.extract_strided_slice %420 {offsets = [1, 0], sizes = [1, 128], strides = [1, 1]} : vector<3x128xf32> to vector<1x128xf32>
    %429 = vector.broadcast %428 : vector<1x128xf32> to vector<32x128xf32>
    %430 = arith.mulf %429, %427 : vector<32x128xf32>
    %431 = arith.addf %426, %430 : vector<32x128xf32>
    %c8_228 = arith.constant 8 : index
    %c0_229 = arith.constant 0 : index
    %432 = vector.load %arg11[%c8_228, %c0_229] : memref<40x128xf32, #tpu.memory_space<vmem>>, vector<32x128xf32>
    %433 = vector.extract_strided_slice %420 {offsets = [2, 0], sizes = [1, 128], strides = [1, 1]} : vector<3x128xf32> to vector<1x128xf32>
    %434 = vector.broadcast %433 : vector<1x128xf32> to vector<32x128xf32>
    %435 = arith.mulf %434, %432 : vector<32x128xf32>
    %436 = arith.addf %431, %435 : vector<32x128xf32>
    %cst_230 = arith.constant 0.000000e+00 : f32
    %437 = vector.broadcast %cst_230 : f32 to vector<32x128xf32>
    %438 = arith.cmpf oge, %436, %437 : vector<32x128xf32>
    %439 = vector.broadcast %381 : f32 to vector<32x128xf32>
    %440 = arith.mulf %439, %436 : vector<32x128xf32>
    %441 = arith.select %438, %436, %440 : vector<32x128xi1>, vector<32x128xf32>
    %c4_231 = arith.constant 4 : index
    %c0_232 = arith.constant 0 : index
    %c0_233 = arith.constant 0 : index
    %442 = vector.load %arg7[%c4_231, %c0_232, %c0_233] : memref<6x1x128xf32, #tpu.memory_space<vmem>>, vector<1x1x128xf32>
    %443 = vector.shape_cast %442 : vector<1x1x128xf32> to vector<1x128xf32>
    %c4_234 = arith.constant 4 : index
    %c0_235 = arith.constant 0 : index
    %c0_236 = arith.constant 0 : index
    %444 = vector.load %arg8[%c4_234, %c0_235, %c0_236] : memref<6x1x128xf32, #tpu.memory_space<vmem>>, vector<1x1x128xf32>
    %445 = vector.shape_cast %444 : vector<1x1x128xf32> to vector<1x128xf32>
    %446 = vector.shape_cast %441 : vector<32x128xf32> to vector<1x32x128xf32>
    %cst_237 = arith.constant dense<0.000000e+00> : vector<1xf32>
    %447 = vector.multi_reduction <add>, %446, %cst_237 [1, 2] : vector<1x32x128xf32> to vector<1xf32>
    %448 = vector.shape_cast %447 : vector<1xf32> to vector<1x1x1xf32>
    %449 = vector.extract %448[0, 0, 0] : f32 from vector<1x1x1xf32>
    %450 = arith.mulf %441, %441 : vector<32x128xf32>
    %451 = vector.shape_cast %450 : vector<32x128xf32> to vector<1x32x128xf32>
    %cst_238 = arith.constant dense<0.000000e+00> : vector<1xf32>
    %452 = vector.multi_reduction <add>, %451, %cst_238 [1, 2] : vector<1x32x128xf32> to vector<1xf32>
    %453 = vector.shape_cast %452 : vector<1xf32> to vector<1x1x1xf32>
    %454 = vector.extract %453[0, 0, 0] : f32 from vector<1x1x1xf32>
    %cst_239 = arith.constant 9.765625E-4 : f32
    %455 = arith.mulf %449, %cst_239 : f32
    %cst_240 = arith.constant 9.765625E-4 : f32
    %456 = arith.mulf %454, %cst_240 : f32
    %457 = arith.mulf %455, %455 : f32
    %458 = arith.subf %456, %457 : f32
    %cst_241 = arith.constant 0.000000e+00 : f32
    %459 = arith.maximumf %458, %cst_241 : f32
    %cst_242 = arith.constant 9.99999982E-14 : f32
    %460 = arith.addf %459, %cst_242 : f32
    %461 = math.rsqrt %460 : f32
    %462 = vector.broadcast %455 : f32 to vector<32x128xf32>
    %463 = arith.subf %441, %462 : vector<32x128xf32>
    %464 = vector.broadcast %461 : f32 to vector<32x128xf32>
    %465 = arith.mulf %463, %464 : vector<32x128xf32>
    %466 = vector.broadcast %443 : vector<1x128xf32> to vector<32x128xf32>
    %467 = arith.mulf %466, %465 : vector<32x128xf32>
    %468 = vector.broadcast %445 : vector<1x128xf32> to vector<32x128xf32>
    %469 = arith.addf %467, %468 : vector<32x128xf32>
    %c4_243 = arith.constant 4 : index
    %c0_244 = arith.constant 0 : index
    %c0_245 = arith.constant 0 : index
    %470 = vector.load %arg9[%c4_243, %c0_244, %c0_245] : memref<6x128x128xf32, #tpu.memory_space<vmem>>, vector<1x128x128xf32>
    %471 = vector.shape_cast %470 : vector<1x128x128xf32> to vector<128x128xf32>
    %cst_246 = arith.constant dense<0.000000e+00> : vector<32x128xf32>
    %472 = tpu.matmul %469, %471, %cst_246 {dimension_numbers = #tpu.dot_dimension_numbers<[1], [0], [0], [1], [0, 0, 1, 1], [], []>} : vector<32x128xf32>, vector<128x128xf32>, vector<32x128xf32> -> vector<32x128xf32>
    %473 = arith.addf %472, %379 : vector<32x128xf32>
    %c5 = arith.constant 5 : index
    %c0_247 = arith.constant 0 : index
    %474 = memref.load %arg1[%c5, %c0_247] : memref<6x2xf32, #tpu.memory_space<smem>>
    %c5_248 = arith.constant 5 : index
    %c1_249 = arith.constant 1 : index
    %475 = memref.load %arg1[%c5_248, %c1_249] : memref<6x2xf32, #tpu.memory_space<smem>>
    %c5_250 = arith.constant 5 : index
    %c0_251 = arith.constant 0 : index
    %c0_252 = arith.constant 0 : index
    %476 = vector.load %arg3[%c5_250, %c0_251, %c0_252] : memref<6x128x128xf32, #tpu.memory_space<vmem>>, vector<1x128x128xf32>
    %477 = vector.shape_cast %476 : vector<1x128x128xf32> to vector<128x128xf32>
    %cst_253 = arith.constant dense<0.000000e+00> : vector<32x128xf32>
    %478 = tpu.matmul %473, %477, %cst_253 {dimension_numbers = #tpu.dot_dimension_numbers<[1], [0], [0], [1], [0, 0, 1, 1], [], []>} : vector<32x128xf32>, vector<128x128xf32>, vector<32x128xf32> -> vector<32x128xf32>
    %cst_254 = arith.constant 0.000000e+00 : f32
    %479 = vector.broadcast %cst_254 : f32 to vector<32x128xf32>
    %480 = arith.cmpf oge, %478, %479 : vector<32x128xf32>
    %481 = vector.broadcast %474 : f32 to vector<32x128xf32>
    %482 = arith.mulf %481, %478 : vector<32x128xf32>
    %483 = arith.select %480, %478, %482 : vector<32x128xi1>, vector<32x128xf32>
    %c5_255 = arith.constant 5 : index
    %c0_256 = arith.constant 0 : index
    %c0_257 = arith.constant 0 : index
    %484 = vector.load %arg4[%c5_255, %c0_256, %c0_257] : memref<6x1x128xf32, #tpu.memory_space<vmem>>, vector<1x1x128xf32>
    %485 = vector.shape_cast %484 : vector<1x1x128xf32> to vector<1x128xf32>
    %c5_258 = arith.constant 5 : index
    %c0_259 = arith.constant 0 : index
    %c0_260 = arith.constant 0 : index
    %486 = vector.load %arg5[%c5_258, %c0_259, %c0_260] : memref<6x1x128xf32, #tpu.memory_space<vmem>>, vector<1x1x128xf32>
    %487 = vector.shape_cast %486 : vector<1x1x128xf32> to vector<1x128xf32>
    %488 = vector.shape_cast %483 : vector<32x128xf32> to vector<1x32x128xf32>
    %cst_261 = arith.constant dense<0.000000e+00> : vector<1xf32>
    %489 = vector.multi_reduction <add>, %488, %cst_261 [1, 2] : vector<1x32x128xf32> to vector<1xf32>
    %490 = vector.shape_cast %489 : vector<1xf32> to vector<1x1x1xf32>
    %491 = vector.extract %490[0, 0, 0] : f32 from vector<1x1x1xf32>
    %492 = arith.mulf %483, %483 : vector<32x128xf32>
    %493 = vector.shape_cast %492 : vector<32x128xf32> to vector<1x32x128xf32>
    %cst_262 = arith.constant dense<0.000000e+00> : vector<1xf32>
    %494 = vector.multi_reduction <add>, %493, %cst_262 [1, 2] : vector<1x32x128xf32> to vector<1xf32>
    %495 = vector.shape_cast %494 : vector<1xf32> to vector<1x1x1xf32>
    %496 = vector.extract %495[0, 0, 0] : f32 from vector<1x1x1xf32>
    %cst_263 = arith.constant 9.765625E-4 : f32
    %497 = arith.mulf %491, %cst_263 : f32
    %cst_264 = arith.constant 9.765625E-4 : f32
    %498 = arith.mulf %496, %cst_264 : f32
    %499 = arith.mulf %497, %497 : f32
    %500 = arith.subf %498, %499 : f32
    %cst_265 = arith.constant 0.000000e+00 : f32
    %501 = arith.maximumf %500, %cst_265 : f32
    %cst_266 = arith.constant 9.99999982E-14 : f32
    %502 = arith.addf %501, %cst_266 : f32
    %503 = math.rsqrt %502 : f32
    %504 = vector.broadcast %497 : f32 to vector<32x128xf32>
    %505 = arith.subf %483, %504 : vector<32x128xf32>
    %506 = vector.broadcast %503 : f32 to vector<32x128xf32>
    %507 = arith.mulf %505, %506 : vector<32x128xf32>
    %508 = vector.broadcast %485 : vector<1x128xf32> to vector<32x128xf32>
    %509 = arith.mulf %508, %507 : vector<32x128xf32>
    %510 = vector.broadcast %487 : vector<1x128xf32> to vector<32x128xf32>
    %511 = arith.addf %509, %510 : vector<32x128xf32>
    %c8_267 = arith.constant 8 : index
    %c0_268 = arith.constant 0 : index
    %512 = vector.load %arg11[%c8_267, %c0_268] : memref<40x128xf32, #tpu.memory_space<vmem>>, vector<32x128xf32>
    tpu.vector_store %arg11[%c8_267, %c0_268], %511 {strides = array<i32>} : memref<40x128xf32, #tpu.memory_space<vmem>>, vector<32x128xf32>,
    %c5_269 = arith.constant 5 : index
    %c0_270 = arith.constant 0 : index
    %c0_271 = arith.constant 0 : index
    %513 = vector.load %arg6[%c5_269, %c0_270, %c0_271] : memref<6x3x128xf32, #tpu.memory_space<vmem>>, vector<1x3x128xf32>
    %514 = vector.shape_cast %513 : vector<1x3x128xf32> to vector<3x128xf32>
    %cst_272 = arith.constant 0.000000e+00 : f32
    %515 = vector.broadcast %cst_272 : f32 to vector<32x128xf32>
    %c0_273 = arith.constant 0 : index
    %c0_274 = arith.constant 0 : index
    %516 = vector.load %arg11[%c0_273, %c0_274] : memref<40x128xf32, #tpu.memory_space<vmem>>, vector<32x128xf32>
    %517 = vector.extract_strided_slice %514 {offsets = [0, 0], sizes = [1, 128], strides = [1, 1]} : vector<3x128xf32> to vector<1x128xf32>
    %518 = vector.broadcast %517 : vector<1x128xf32> to vector<32x128xf32>
    %519 = arith.mulf %518, %516 : vector<32x128xf32>
    %520 = arith.addf %515, %519 : vector<32x128xf32>
    %c4_275 = arith.constant 4 : index
    %c0_276 = arith.constant 0 : index
    %521 = vector.load %arg11[%c4_275, %c0_276] : memref<40x128xf32, #tpu.memory_space<vmem>>, vector<32x128xf32>
    %522 = vector.extract_strided_slice %514 {offsets = [1, 0], sizes = [1, 128], strides = [1, 1]} : vector<3x128xf32> to vector<1x128xf32>
    %523 = vector.broadcast %522 : vector<1x128xf32> to vector<32x128xf32>
    %524 = arith.mulf %523, %521 : vector<32x128xf32>
    %525 = arith.addf %520, %524 : vector<32x128xf32>
    %c8_277 = arith.constant 8 : index
    %c0_278 = arith.constant 0 : index
    %526 = vector.load %arg11[%c8_277, %c0_278] : memref<40x128xf32, #tpu.memory_space<vmem>>, vector<32x128xf32>
    %527 = vector.extract_strided_slice %514 {offsets = [2, 0], sizes = [1, 128], strides = [1, 1]} : vector<3x128xf32> to vector<1x128xf32>
    %528 = vector.broadcast %527 : vector<1x128xf32> to vector<32x128xf32>
    %529 = arith.mulf %528, %526 : vector<32x128xf32>
    %530 = arith.addf %525, %529 : vector<32x128xf32>
    %cst_279 = arith.constant 0.000000e+00 : f32
    %531 = vector.broadcast %cst_279 : f32 to vector<32x128xf32>
    %532 = arith.cmpf oge, %530, %531 : vector<32x128xf32>
    %533 = vector.broadcast %475 : f32 to vector<32x128xf32>
    %534 = arith.mulf %533, %530 : vector<32x128xf32>
    %535 = arith.select %532, %530, %534 : vector<32x128xi1>, vector<32x128xf32>
    %c5_280 = arith.constant 5 : index
    %c0_281 = arith.constant 0 : index
    %c0_282 = arith.constant 0 : index
    %536 = vector.load %arg7[%c5_280, %c0_281, %c0_282] : memref<6x1x128xf32, #tpu.memory_space<vmem>>, vector<1x1x128xf32>
    %537 = vector.shape_cast %536 : vector<1x1x128xf32> to vector<1x128xf32>
    %c5_283 = arith.constant 5 : index
    %c0_284 = arith.constant 0 : index
    %c0_285 = arith.constant 0 : index
    %538 = vector.load %arg8[%c5_283, %c0_284, %c0_285] : memref<6x1x128xf32, #tpu.memory_space<vmem>>, vector<1x1x128xf32>
    %539 = vector.shape_cast %538 : vector<1x1x128xf32> to vector<1x128xf32>
    %540 = vector.shape_cast %535 : vector<32x128xf32> to vector<1x32x128xf32>
    %cst_286 = arith.constant dense<0.000000e+00> : vector<1xf32>
    %541 = vector.multi_reduction <add>, %540, %cst_286 [1, 2] : vector<1x32x128xf32> to vector<1xf32>
    %542 = vector.shape_cast %541 : vector<1xf32> to vector<1x1x1xf32>
    %543 = vector.extract %542[0, 0, 0] : f32 from vector<1x1x1xf32>
    %544 = arith.mulf %535, %535 : vector<32x128xf32>
    %545 = vector.shape_cast %544 : vector<32x128xf32> to vector<1x32x128xf32>
    %cst_287 = arith.constant dense<0.000000e+00> : vector<1xf32>
    %546 = vector.multi_reduction <add>, %545, %cst_287 [1, 2] : vector<1x32x128xf32> to vector<1xf32>
    %547 = vector.shape_cast %546 : vector<1xf32> to vector<1x1x1xf32>
    %548 = vector.extract %547[0, 0, 0] : f32 from vector<1x1x1xf32>
    %cst_288 = arith.constant 9.765625E-4 : f32
    %549 = arith.mulf %543, %cst_288 : f32
    %cst_289 = arith.constant 9.765625E-4 : f32
    %550 = arith.mulf %548, %cst_289 : f32
    %551 = arith.mulf %549, %549 : f32
    %552 = arith.subf %550, %551 : f32
    %cst_290 = arith.constant 0.000000e+00 : f32
    %553 = arith.maximumf %552, %cst_290 : f32
    %cst_291 = arith.constant 9.99999982E-14 : f32
    %554 = arith.addf %553, %cst_291 : f32
    %555 = math.rsqrt %554 : f32
    %556 = vector.broadcast %549 : f32 to vector<32x128xf32>
    %557 = arith.subf %535, %556 : vector<32x128xf32>
    %558 = vector.broadcast %555 : f32 to vector<32x128xf32>
    %559 = arith.mulf %557, %558 : vector<32x128xf32>
    %560 = vector.broadcast %537 : vector<1x128xf32> to vector<32x128xf32>
    %561 = arith.mulf %560, %559 : vector<32x128xf32>
    %562 = vector.broadcast %539 : vector<1x128xf32> to vector<32x128xf32>
    %563 = arith.addf %561, %562 : vector<32x128xf32>
    %c5_292 = arith.constant 5 : index
    %c0_293 = arith.constant 0 : index
    %c0_294 = arith.constant 0 : index
    %564 = vector.load %arg9[%c5_292, %c0_293, %c0_294] : memref<6x128x128xf32, #tpu.memory_space<vmem>>, vector<1x128x128xf32>
    %565 = vector.shape_cast %564 : vector<1x128x128xf32> to vector<128x128xf32>
    %cst_295 = arith.constant dense<0.000000e+00> : vector<32x128xf32>
    %566 = tpu.matmul %563, %565, %cst_295 {dimension_numbers = #tpu.dot_dimension_numbers<[1], [0], [0], [1], [0, 0, 1, 1], [], []>} : vector<32x128xf32>, vector<128x128xf32>, vector<32x128xf32> -> vector<32x128xf32>
    %567 = arith.addf %566, %473 : vector<32x128xf32>
    %c0_296 = arith.constant 0 : index
    %c0_297 = arith.constant 0 : index
    %c0_298 = arith.constant 0 : index
    %568 = vector.load %arg10[%c0_296, %c0_297, %c0_298] : memref<1x32x128xf32, #tpu.memory_space<vmem>>, vector<1x32x128xf32>
    %569 = vector.shape_cast %568 : vector<1x32x128xf32> to vector<32x128xf32>
    %570 = vector.shape_cast %567 : vector<32x128xf32> to vector<1x32x128xf32>
    tpu.vector_store %arg10[%c0_296, %c0_297, %c0_298], %570 {strides = array<i32>} : memref<1x32x128xf32, #tpu.memory_space<vmem>>, vector<1x32x128xf32>,
    return
  }
  func.func @transform_0(%arg0: i32) -> (i32, i32) {
    %c0_i32 = arith.constant 0 : i32
    %c0_i32_0 = arith.constant 0 : i32
    %c0_i32_1 = arith.constant 0 : i32
    return %c0_i32, %c0_i32_0 : i32, i32
  }
  func.func @transform_1(%arg0: i32) -> (i32, i32, i32) {
    %c0_i32 = arith.constant 0 : i32
    %c0_i32_0 = arith.constant 0 : i32
    %c0_i32_1 = arith.constant 0 : i32
    return %arg0, %c0_i32, %c0_i32_0 : i32, i32, i32
  }
  func.func @transform_2(%arg0: i32) -> (i32, i32, i32) {
    %c0_i32 = arith.constant 0 : i32
    %c0_i32_0 = arith.constant 0 : i32
    %c0_i32_1 = arith.constant 0 : i32
    %c0_i32_2 = arith.constant 0 : i32
    return %c0_i32, %c0_i32_0, %c0_i32_1 : i32, i32, i32
  }
  func.func @transform_3(%arg0: i32) -> (i32, i32, i32) {
    %c0_i32 = arith.constant 0 : i32
    %c0_i32_0 = arith.constant 0 : i32
    %c0_i32_1 = arith.constant 0 : i32
    %c0_i32_2 = arith.constant 0 : i32
    return %c0_i32, %c0_i32_0, %c0_i32_1 : i32, i32, i32
  }
  func.func @transform_4(%arg0: i32) -> (i32, i32, i32) {
    %c0_i32 = arith.constant 0 : i32
    %c0_i32_0 = arith.constant 0 : i32
    %c0_i32_1 = arith.constant 0 : i32
    %c0_i32_2 = arith.constant 0 : i32
    return %c0_i32, %c0_i32_0, %c0_i32_1 : i32, i32, i32
  }
  func.func @transform_5(%arg0: i32) -> (i32, i32, i32) {
    %c0_i32 = arith.constant 0 : i32
    %c0_i32_0 = arith.constant 0 : i32
    %c0_i32_1 = arith.constant 0 : i32
    %c0_i32_2 = arith.constant 0 : i32
    return %c0_i32, %c0_i32_0, %c0_i32_1 : i32, i32, i32
  }
  func.func @transform_6(%arg0: i32) -> (i32, i32, i32) {
    %c0_i32 = arith.constant 0 : i32
    %c0_i32_0 = arith.constant 0 : i32
    %c0_i32_1 = arith.constant 0 : i32
    %c0_i32_2 = arith.constant 0 : i32
    return %c0_i32, %c0_i32_0, %c0_i32_1 : i32, i32, i32
  }
  func.func @transform_7(%arg0: i32) -> (i32, i32, i32) {
    %c0_i32 = arith.constant 0 : i32
    %c0_i32_0 = arith.constant 0 : i32
    %c0_i32_1 = arith.constant 0 : i32
    %c0_i32_2 = arith.constant 0 : i32
    return %c0_i32, %c0_i32_0, %c0_i32_1 : i32, i32, i32
  }
  func.func @transform_8(%arg0: i32) -> (i32, i32, i32) {
    %c0_i32 = arith.constant 0 : i32
    %c0_i32_0 = arith.constant 0 : i32
    %c0_i32_1 = arith.constant 0 : i32
    %c0_i32_2 = arith.constant 0 : i32
    return %c0_i32, %c0_i32_0, %c0_i32_1 : i32, i32, i32
  }
  func.func @transform_9(%arg0: i32) -> (i32, i32, i32) {
    %c0_i32 = arith.constant 0 : i32
    %c0_i32_0 = arith.constant 0 : i32
    %c0_i32_1 = arith.constant 0 : i32
    return %arg0, %c0_i32, %c0_i32_0 : i32, i32, i32
  }
}

</mosaic_0001>

<bundles_post_ra>
// kernel: tpu_custom_call.1
= control target key start
LH: loop header
LB: loop body
LE: loop exit
PB: predicated region body
PF: predicated region fallthrough
CT: control target
= control target key end

     0   :  { %s5434_s0 = inlined_call_operand.vmem [shape: f32[6,2], index: 0, kind: input, shape index: {}]   ;;  %s5435_s1 = inlined_call_operand.hbm [shape: f32[2,32,128], index: 1, kind: input, shape index: {}]   ;;  %s5436_s2 = inlined_call_operand.hbm [shape: f32[6,128,128], index: 2, kind: input, shape index: {}]   ;;  %s5437_s3 = inlined_call_operand.hbm [shape: f32[6,1,128], index: 3, kind: input, shape index: {}]   ;;  %s5438_s4 = inlined_call_operand.hbm [shape: f32[6,1,128], index: 4, kind: input, shape index: {}]   ;;  %s5439_s5 = inlined_call_operand.vmem [shape: f32[6,3,128], index: 5, kind: input, shape index: {}]   ;;  %s5440_s6 = inlined_call_operand.vmem [shape: f32[6,1,128], index: 6, kind: input, shape index: {}]   ;;  %s5441_s7 = inlined_call_operand.vmem [shape: f32[6,1,128], index: 7, kind: input, shape index: {}]   ;;  %s5442_s8 = inlined_call_operand.hbm [shape: f32[6,128,128], index: 8, kind: input, shape index: {}]   ;;  %s5443_s9 = inlined_call_operand.hbm [shape: f32[2,32,128], index: 9, kind: output, shape index: {}]  }
   0x1   :  { %5452 = sst [smem:[#allocation20_spill]] %s5434_s0 }
   0x2   :  { %5453 = sst [smem:[#allocation21_spill]] %s5436_s2 }
   0x3   :  { %5454 = sst [smem:[#allocation22_spill]] %s5437_s3 }
   0x4   :  { %14 = vsyncpa [#allocation6], 0 }
   0x5   :  { %15 = vsyncpa [#allocation4], 0 }
   0x6   :  { %17 = vsyncpa [#allocation4 + $0x1], 0 }
   0x7   :  { %18 = vsyncpa [#allocation9], 0 }
   0x8   :  { %19 = vsyncpa [#allocation12], 0 }
   0x9   :  { %20 = vsyncpa [#allocation5], 0 }
   0xa   :  { %22 = vsyncpa [#allocation5 + $0x1], 0  ;;  %s4791_s30 = smov 0   ;;  %s4793_s10 = smov 0  }
   0xb   :  { %s4795_s11 = smov 0   ;;  %s4797_s12 = smov 0  }
   0xc LB: > { %s4726_s13 = smov [#allocation8]   ;;  %s4812_s15 = sadd.s32 4294967295, %s4724_s12   ;;  %s4724_s12 = sphi %s4797_s12, %s5482_s12   ;;  %s4720_s11 = sphi %s4795_s11, %s5481_s11   ;;  %s4716_s10 = sphi %s4793_s10, %s5480_s10   ;;  %s4712_s30 = sphi %s4791_s30, %s5479_s30  }
   0xd   : > { %s276_s14 = sshll.u32 %s4726_s13, 4  ;;  %p3131_p0 = scmp.ge.s32.totalorder %s4724_s12, 1  ;;  %s4817_s14 = int_to_ptr.vmem [resolvable:$true] %s276_s14 }
   0xe   : > { %p5449_p1 = scmp.eq.s32.totalorder %s4812_s15, 0  ;;  %p253_p2 = scmp.lt.s32.totalorder %s4724_s12, 3 }
   0xf   : > { %s4727_s18 = smov [#allocation11]   ;;  %s5457_s0 = sld [smem:[#allocation20_spill]] }
  0x10   : > { %p4819_p3 = pnand %p3131_p0, %p253_p2  ;;  %s302_s19 = sshll.u32 %s4727_s18, 4  ;;  %s4832_s19 = int_to_ptr.vmem [resolvable:$true] %s302_s19 }
  0x11   : > { %s5458_s2 = sld [smem:[#allocation21_spill]] }
  0x12   : > { %s5455_s16 = scalar_select %p4819_p3, 1, 0 }
  0x13   : > { %p4382_p5 = pneg %p4819_p3 }
  0x15   : > { %p4828_p6 = pnand %p4382_p5, %p5449_p1  ;;  %s266_s22 = sshll.u32 %s5457_s0, 4  ;;  %s4837_s22 = int_to_ptr.vmem [resolvable:$true] %s266_s22 }
  0x17   : > { %s4489_s25 = scalar_lea.hbm %s5458_s2, 12288  ;;  %p4847_p8 = pneg %p4828_p6 }
  0x18   : > { %p4490_p7 = scmp.ne.s32.totalorder %s5458_s2, %s4489_s25  ;;  %p4496_p11 = scmp.lt.u32.totalorder %s4489_s25, %s5458_s2 }
  0x1a   : > { %p4492_p9 = pnand %p4847_p8, %p4490_p7 }
  0x1c   : > { %p4493_p10 = pneg %p4492_p9 }
  0x1e   : > { %p4498_p12 = pnand %p4496_p11, %p4493_p10 }
  0x20   : > { %4501 = shalt.err (!%p4498_p12)
}
  0x21   : > { %s4502_s18 = scalar_lea.vmem %s4817_s14, 12288  ;;  %p4510_p5 = scmp.lt.s32.totalorder %s4817_s14, %s4817_s14 }
  0x22   : > { %p4503_p13 = scmp.ne.s32.totalorder %s4817_s14, %s4502_s18  ;;  %p4511_p4 = scmp.lt.s32.totalorder %s4502_s18, %s4502_s18 }
  0x24   : > { %p4505_p0 = pnand %p4503_p13, %p4847_p8  ;;  %p4512_p7 = por %p4511_p4, %p4510_p5 }
  0x26   : > { %p4506_p2 = pneg %p4505_p0 }
  0x28   : > { %p4513_p9 = pnand %p4512_p7, %p4506_p2 }
  0x2a   : > { %4516 = shalt.err (!%p4513_p9)
}
  0x2b   : > { %s5444_s20 = smov 128   ;;  %s5446_s21 = smov 8  }
  0x2c   : > { %4388 = dma.hbm_to_vmem [thread:$0]  (!%p4828_p6), %s5458_s2, 12288, %s4817_s14, [#allocation9], %s5444_s20, %s5444_s20, %s5446_s21  }
  0x2d   : > { %s4517_s27 = scalar_lea.hbm %s5438_s4, 96 }
  0x2e   : > { %p4518_p4 = scmp.ne.s32.totalorder %s5438_s4, %s4517_s27  ;;  %p4524_p12 = scmp.lt.u32.totalorder %s4517_s27, %s5438_s4 }
  0x30   : > { %p4520_p10 = pnand %p4518_p4, %p4847_p8 }
  0x32   : > { %p4521_p11 = pneg %p4520_p10 }
  0x34   : > { %p4526_p13 = pnand %p4524_p12, %p4521_p11 }
  0x36   : > { %4529 = shalt.err (!%p4526_p13)
}
  0x37   : > { %s4530_s14 = scalar_lea.vmem %s4832_s19, 96  ;;  %p4538_p7 = scmp.lt.s32.totalorder %s4832_s19, %s4832_s19 }
  0x38   : > { %p4531_p0 = scmp.ne.s32.totalorder %s4832_s19, %s4530_s14  ;;  %p4539_p9 = scmp.lt.s32.totalorder %s4530_s14, %s4530_s14 }
  0x3a   : > { %p4533_p2 = pnand %p4531_p0, %p4847_p8  ;;  %p4540_p4 = por %p4539_p9, %p4538_p7 }
  0x3c   : > { %p4534_p5 = pneg %p4533_p2 }
  0x3e   : > { %p4541_p10 = pnand %p4540_p4, %p4534_p5 }
  0x40   : > { %4544 = shalt.err (!%p4541_p10)
}
  0x41   : > { %s5448_s23 = smov 16   ;;  %s4731_s0 = smov 1  }
  0x42   : > { %4394 = dma.hbm_to_vmem [thread:$0]  (!%p4828_p6), %s5438_s4, 96, %s4832_s19, [#allocation12], %s5448_s23, %s5448_s23, %s4731_s0  }
  0x43   : > { %s4545_s26 = scalar_lea.vmem %s4837_s22, 128  ;;  %p4553_p0 = scmp.lt.s32.totalorder %s4837_s22, %s4837_s22 }
  0x44   : > { %p4546_p11 = scmp.ne.s32.totalorder %s4837_s22, %s4545_s26  ;;  %p4554_p2 = scmp.lt.s32.totalorder %s4545_s26, %s4545_s26 }
  0x46   : > { %p4548_p12 = pnand %p4546_p11, %p4847_p8  ;;  %p4555_p5 = por %p4554_p2, %p4553_p0 }
  0x48   : > { %p4549_p13 = pneg %p4548_p12 }
  0x4a   : > { %p4556_p7 = pnand %p4555_p5, %p4549_p13 }
  0x4c   : > { %4559 = shalt.err (!%p4556_p7)
}
  0x4d   : > { %s4732_s27 = smov [#allocation3]   ;;  %s4733_s29 = smov [#allocation10]  }
  0x4e   : > { %4385 = dma.vmem_to_smem (!%p4828_p6), %s4837_s22, 128, %s4732_s27, [#allocation6]  }
  0x4f   : > { %s289_s13 = sshll.u32 %s4733_s29, 4  ;;  %s4734_s19 = smov [#allocation13]   ;;  %s290_s13 = int_to_ptr.vmem [resolvable:$true] %s289_s13 }
  0x50   : > { %s324_s18 = sshll.u32 %s4734_s19, 4  ;;  %s5460_s3 = sld [smem:[#allocation22_spill]]  ;;  %s325_s18 = int_to_ptr.vmem [resolvable:$true] %s324_s18 }
  0x56   : > { %s4560_s25 = scalar_lea.hbm %s5460_s3, 96 }
  0x57   : > { %p4561_p9 = scmp.ne.s32.totalorder %s5460_s3, %s4560_s25  ;;  %p4567_p11 = scmp.lt.u32.totalorder %s4560_s25, %s5460_s3 }
  0x59   : > { %p4563_p4 = pnand %p4561_p9, %p4847_p8 }
  0x5b   : > { %p4564_p10 = pneg %p4563_p4 }
  0x5d   : > { %p4569_p12 = pnand %p4567_p11, %p4564_p10 }
  0x5f   : > { %4572 = shalt.err (!%p4569_p12)
}
  0x60   : > { %s4573_s22 = scalar_lea.vmem %s290_s13, 96  ;;  %p4581_p5 = scmp.lt.s32.totalorder %s290_s13, %s290_s13 }
  0x61   : > { %p4574_p13 = scmp.ne.s32.totalorder %s290_s13, %s4573_s22  ;;  %p4582_p7 = scmp.lt.s32.totalorder %s4573_s22, %s4573_s22 }
  0x63   : > { %p4576_p0 = pnand %p4574_p13, %p4847_p8  ;;  %p4583_p1 = por %p4582_p7, %p4581_p5 }
  0x65   : > { %p4577_p2 = pneg %p4576_p0 }
  0x67   : > { %p4584_p3 = pnand %p4583_p1, %p4577_p2 }
  0x69   : > { %4587 = shalt.err (!%p4584_p3)
}
  0x6a   : > { %s5461_s20 = smov 16   ;;  %s4588_s19 = scalar_lea.hbm %s5442_s8, 12288 }
  0x6b   : > { %4391 = dma.hbm_to_vmem [thread:$0]  (!%p4828_p6), %s5460_s3, 96, %s290_s13, [#allocation9], %s5461_s20, %s5461_s20, %s4731_s0  }
  0x6c   : > { %p4589_p1 = scmp.ne.s32.totalorder %s5442_s8, %s4588_s19  ;;  %p4595_p4 = scmp.lt.u32.totalorder %s4588_s19, %s5442_s8 }
  0x6e   : > { %p4591_p3 = pnand %p4589_p1, %p4847_p8 }
  0x70   : > { %p4592_p9 = pneg %p4591_p3 }
  0x72   : > { %p4597_p10 = pnand %p4595_p4, %p4592_p9 }
  0x74   : > { %4600 = shalt.err (!%p4597_p10)
}
  0x75   : > { %s4601_s22 = scalar_lea.vmem %s325_s18, 12288  ;;  %p4609_p0 = scmp.lt.s32.totalorder %s325_s18, %s325_s18 }
  0x76   : > { %p4602_p11 = scmp.ne.s32.totalorder %s325_s18, %s4601_s22  ;;  %p4610_p2 = scmp.lt.s32.totalorder %s4601_s22, %s4601_s22 }
  0x78   : > { %p4604_p12 = pnand %p4602_p11, %p4847_p8  ;;  %p4611_p5 = por %p4610_p2, %p4609_p0 }
  0x7a   : > { %p4605_p13 = pneg %p4604_p12 }
  0x7c   : > { %p4612_p7 = pnand %p4611_p5, %p4605_p13 }
  0x7e   : > { %4615 = shalt.err (!%p4612_p7)
}
  0x7f   : > { %s5462_s0 = smov 8   ;;  %s5463_s13 = smov 128  }
  0x80   : > { %4397 = dma.hbm_to_vmem [thread:$0]  (!%p4828_p6), %s5442_s8, 12288, %s325_s18, [#allocation12], %s5463_s13, %s5463_s13, %s5462_s0  }
  0x81   : > { %s3130_s17 = sadd.s32 4294967294, %s4724_s12   ;;  %s4950_s28 = sadd.s32 1, %s4724_s12  }
  0x82   : > { %s56_s23 = sadd.s32 1, %s4720_s11  ;;  %s53_s27 = ssub.s32 %s4724_s12, %s4950_s28 }
  0x83   : > { %p63_p8 = scmp.ne.s32.totalorder %s4720_s11, %s4716_s10  ;;  %p54_p1 = scmp.eq.s32.totalorder %s53_s27, 0 }
  0x84   : > { %p64_p3 = scmp.eq.s32.totalorder %s4724_s12, 0  ;;  %p69_p9 = scmp.ne.s32.totalorder %s4716_s10, %s4712_s30 }
  0x85   : > { %p240_p4 = scmp.eq.s32.totalorder %s4812_s15, 1  ;;  %p5464_p11 = scmp.eq.s32.totalorder %s4812_s15, 0 }
  0x86   : > { %s4962_s29 = scalar_select %p54_p1, %s4720_s11, %s56_s23  }
  0x87   : > { %p65_p10 = por %p64_p3, %p63_p8  ;;  %p4966_p12 = por %p5464_p11, %p69_p9 }
  0x88   : > { %p4970_p6 = por %p240_p4, %p63_p8  ;;  %p246_p13 = scmp.eq.s32.totalorder %s3130_s17, 1 }
  0x89   : > { %p4411_p0 = scmp.lt.s32.totalorder %s4724_s12, 2  ;;  %s338_s14 = sand.u32 1, %s4720_s11  }
  0x8a   : > { %s5466_s18 = scalar_select %p4970_p6, 1, 0 }
  0x8b   : > { %p4976_p2 = por %p246_p13, %p69_p9  ;;  %s3138_s25 = sshll.u32 %s338_s14, 5 }
  0x8c   : > { %s3204_s26 = sshll.u32 %s4724_s12, 9  ;;  %s342_s23 = scalar_lea.vmem [#allocation7], %s3138_s25 }
  0x8d   : > { %s5467_s24 = scalar_select %p4976_p2, 1, 0 }
  0x8e   : > { %s4984_s21 = scalar_lea.hbm %s5435_s1, %s3204_s26  ;;  %s349_s27 = sshll.u32 %s342_s23, 4  ;;  %s4990_s27 = int_to_ptr.vmem [resolvable:$true] %s349_s27 }
  0x8f   : > { %p4986_p5 = pnand %p4411_p0, %p65_p10  ;;  %s4992_s2 = scalar_lea.sflag [#allocation4], %s338_s14 }
  0x90   : > { %s4616_s3 = scalar_lea.hbm %s4984_s21, 512  ;;  %s4621_s22 = scalar_lea.hbm %s5435_s1, 1024 }
  0x91   : > { %p4617_p7 = scmp.ne.s32.totalorder %s4984_s21, %s4616_s3  ;;  %p4618_p8 = pneg %p4986_p5 }
  0x92   : > { %p4622_p9 = scmp.lt.u32.totalorder %s4984_s21, %s5435_s1  ;;  %p4623_p4 = scmp.lt.u32.totalorder %s4621_s22, %s4616_s3 }
  0x93   : > { %p4619_p1 = pnand %p4618_p8, %p4617_p7  ;;  %p4625_p11 = scmp.lt.u32.totalorder %s4616_s3, %s4984_s21 }
  0x94   : > { %p4624_p10 = por %p4623_p4, %p4622_p9 }
  0x95   : > { %p4620_p3 = pneg %p4619_p1 }
  0x96   : > { %p4626_p13 = por %p4625_p11, %p4624_p10 }
  0x98   : > { %p4627_p0 = pnand %p4626_p13, %p4620_p3 }
  0x9a   : > { %4630 = shalt.err (!%p4627_p0)
}
  0x9b   : > { %s4631_s14 = scalar_lea.vmem %s4990_s27, 512  ;;  %s4735_s25 = smov [#allocation7]  }
  0x9c   : > { %p4632_p7 = scmp.ne.s32.totalorder %s4990_s27, %s4631_s14  ;;  %s4636_s26 = sshll.u32 %s4735_s25, 4  ;;  %s4637_s26 = int_to_ptr.vmem [resolvable:$false] %s4636_s26 }
  0x9d   : > { %s4638_s20 = scalar_lea.vmem %s4637_s26, 1024  ;;  %p4639_p6 = scmp.lt.s32.totalorder %s4990_s27, %s4637_s26 }
  0x9e   : > { %p4634_p1 = pnand %p4632_p7, %p4618_p8  ;;  %p4640_p9 = scmp.lt.s32.totalorder %s4638_s20, %s4631_s14 }
  0xa0   : > { %p4635_p2 = pneg %p4634_p1  ;;  %p4641_p4 = por %p4640_p9, %p4639_p6 }
  0xa2   : > { %p4642_p10 = pnand %p4641_p4, %p4635_p2 }
  0xa4   : > { %4645 = shalt.err (!%p4642_p10)
}
  0xa5   : > { %4401 = dma.hbm_to_vmem [thread:$0]  (!%p4986_p5), %s4984_s21, 512, %s4990_s27, %s4992_s2, %s5463_s13, %s5463_s13, %s5462_s0  }
  0xa6   : > { %p5469_p8 = scmp.ne.s32.totalorder %s5455_s16, 0 }
  0xa7   : > { %p5470_p3 = scmp.eq.s32.totalorder (!%p5469_p8), %s4812_s15, 0 }
  0xa8   : > { %361 = sbr.rel (%p5469_p8) target bundleno = 6432 (0x1920), region = 56 }
  0xaf   : > { %4691 = dma.done.wait (%p5470_p3), [#allocation6], 128   ;;  %p5471_p11 = pmov %p5470_p3 }
  0xb0   : > { %s5030_s3 = sand.u32 1, %s4716_s10  }
  0xb1   : > { %4693 = vsyncadd (%p5471_p11), [#allocation6], 4294967168  ;;  %s3143_s17 = sshll.u32 %s5030_s3, 5  ;;  %s368_s22 = scalar_lea.sflag [#allocation4], %s5030_s3 }
  0xb2   : > { %s5036_s2 = scalar_lea.vmem [#allocation7], %s3143_s17 }
  0xb3   : > { %4695 = dma.done.wait (%p4966_p12), %s368_s22, 512  }
  0xb4   : > { %4697 = vsyncadd (%p4966_p12), %s368_s22, 4294966784  ;;  %p5472_p6 = pmov %p5470_p3 }
  0xb5   : > { %p5473_p2 = pmov %p5470_p3 }
  0xb6   : > { %4699 = dma.done.wait (%p5472_p6), [#allocation9], 12384  }
  0xb7   : > { %4701 = vsyncadd (%p5473_p2), [#allocation9], 4294954912  ;;  %p5474_p5 = pmov %p5473_p2 }
  0xb8   : > { %p5475_p13 = pmov %p5473_p2 }
  0xb9   : > { %4703 = dma.done.wait (%p5474_p5), [#allocation12], 12384  }
  0xba   : > { %4705 = vsyncadd (%p5475_p13), [#allocation12], 4294954912 }
  0xbb   : > { %392 = sfence }
  0xbc   : > { %v430_v0 = vld [vmem:[#allocation8] sm:$0xff]  ;;  %v431_v1 = vld [vmem:[#allocation8 + $0x8] sm:$0xff]  ;;  %v432_v2 = vld [vmem:[#allocation8 + $0x10] sm:$0xff]  ;;  %s428_s16 = sld [smem:[#allocation3]]  ;;  %v4736_v63 = vmov 0.0   ;;  %s4737_s14 = smov 0.0  }
  0xbd   : > { %v3902_v3 = vpack.c.bf16 %v431_v1, %v430_v0  ;;  %v433_v4 = vld [vmem:[#allocation8 + $0x18] sm:$0xff]  ;;  %v434_v6 = vld [vmem:[#allocation8 + $0x20] sm:$0xff]  ;;  %v435_v7 = vld [vmem:[#allocation8 + $0x28] sm:$0xff]  ;;  %423 = vst [vmem:[#allocation2] sm:$0xff] %v4736_v63  ;;  %s3149_s22 = sld [smem:[#allocation3 + $0x1]]  ;;  %p5476_p0 = scmp.ne.s32.totalorder %s5466_s18, 0 }
  0xbe   : > { %v3906_v5 = vpack.c.bf16 %v433_v4, %v432_v2  ;;  %v3910_v8 = vpack.c.bf16 %v435_v7, %v434_v6  ;;  %v436_v9 = vld [vmem:[#allocation8 + $0x30] sm:$0xff]  ;;  %v437_v10 = vld [vmem:[#allocation8 + $0x38] sm:$0xff]  ;;  %v438_v12 = vld [vmem:[#allocation8 + $0x40] sm:$0xff] }
  0xbf   : > { %3903 = vmatprep.subr.bf16.mxu0 %v3902_v3  ;;  %v3914_v11 = vpack.c.bf16 %v437_v10, %v436_v9  ;;  %v439_v13 = vld [vmem:[#allocation8 + $0x48] sm:$0xff]  ;;  %v440_v15 = vld [vmem:[#allocation8 + $0x50] sm:$0xff]  ;;  %v441_v16 = vld [vmem:[#allocation8 + $0x58] sm:$0xff]  ;;  %v622_v9 = vlaneseq }
  0xc0   : > { %3905 = vmatpush3.bf16.msra.mxu0 %v3902_v3  ;;  %v3918_v14 = vpack.c.bf16 %v439_v13, %v438_v12  ;;  %v3922_v17 = vpack.c.bf16 %v441_v16, %v440_v15  ;;  %v442_v18 = vld [vmem:[#allocation8 + $0x60] sm:$0xff]  ;;  %v443_v19 = vld [vmem:[#allocation8 + $0x68] sm:$0xff]  ;;  %v444_v21 = vld [vmem:[#allocation8 + $0x70] sm:$0xff] }
  0xc1   : > { %3907 = vmatprep.subr.bf16.mxu0 %v3906_v5  ;;  %v3926_v20 = vpack.c.bf16 %v443_v19, %v442_v18  ;;  %v445_v22 = vld [vmem:[#allocation8 + $0x78] sm:$0xff]  ;;  %v5051_v24 = vld [vmem:[%s5036_s2 + $0x8] sm:$0xff]  ;;  %v3150_v7 = vld [vmem:[#allocation10] ss:$0 sm:$0xff]  ;;  %v623_v19 = vshrl.u32 %v622_v9, 7 }
  0xc2   : > { %v3930_v23 = vpack.c.bf16 %v445_v22, %v444_v21  ;;  %v5055_v25 = vld [vmem:[%s5036_s2 + $0x18] sm:$0xff]  ;;  %v535_v26 = vstv %s428_s16 }
  0xc4   : > { %3909 = vmatpush3.bf16.msra.mxu0 %v3906_v5 }
  0xc5   : > { %3911 = vmatprep.subr.bf16.mxu0 %v3910_v8 }
  0xc8   : > { %3913 = vmatpush3.bf16.msra.mxu0 %v3910_v8 }
  0xc9   : > { %3915 = vmatprep.subr.bf16.mxu0 %v3914_v11 }
  0xcc   : > { %3917 = vmatpush3.bf16.msra.mxu0 %v3914_v11 }
  0xcd   : > { %3919 = vmatprep.subr.bf16.mxu0 %v3918_v14 }
  0xd0   : > { %3921 = vmatpush3.bf16.msra.mxu0 %v3918_v14  ;;  %v3151_v14 = vld [vmem:[#allocation11] ss:$0 sm:$0xff] }
  0xd1   : > { %3923 = vmatprep.subr.bf16.mxu0 %v3922_v17 }
  0xd4   : > { %3925 = vmatpush3.bf16.msra.mxu0 %v3922_v17 }
  0xd5   : > { %3927 = vmatprep.subr.bf16.mxu0 %v3926_v20 }
  0xd8   : > { %3929 = vmatpush3.bf16.msra.mxu0 %v3926_v20 }
  0xd9   : > { %3931 = vmatprep.subr.bf16.mxu0 %v3930_v23 }
  0xdc   : > { %3933 = vmatpush3.bf16.msra.mxu0 %v3930_v23 }
  0xdf   : > { %3479 = vmatmul.mubr.f32.vlgmr.msra.gmra.mrb[0].mxu0 %v5051_v24 }
  0xe3   : > { %3482 = vmatmul.mubr.f32.gmra.mrb[2].mxu0 %v5055_v25 }
 0x1b2   : > { %v3480_v27 = vpop.f32.mrb[0].mxu0 }
 0x1b3   : > { %vm532_vm0 = vcmp.ge.f32.partialorder %v3480_v27, 0.0  ;;  %v537_v28 = vmul.f32 %v3480_v27, %v535_v26  ;;  %v512_v29 = vpop.f32.mrb[1].mxu0 }
 0x1b4   : > { %vm531_vm1 = vcmp.ge.f32.partialorder %v512_v29, 0.0  ;;  %v536_v30 = vmul.f32 %v535_v26, %v512_v29 }
 0x1b5   : > { %v5058_v31 = vsel %vm532_vm0, %v3480_v27, %v537_v28  ;;  %v5067_v27 = vsub.s32 1, %v623_v19  ;;  %v5069_v28 = vsub.s32 2, %v623_v19 }
 0x1b6   : > { %v540_v32 = vsel %vm531_vm1, %v512_v29, %v536_v30  ;;  %v3483_v33 = vpop.f32.mrb[2].mxu0  ;;  %v559_v34 = vmul.f32 %v5058_v31, %v5058_v31  ;;  %v617_v29 = vld [vmem:[%s5439_s5] sm:$0x7] }
 0x1b7   : > { %v558_v35 = vmul.f32 %v540_v32, %v540_v32  ;;  %v522_v36 = vpop.f32.mrb[3].mxu0  ;;  %v539_v37 = vmul.f32 %v3483_v33, %v535_v26  ;;  %vm534_vm3 = vcmp.ge.f32.partialorder %v3483_v33, 0.0  ;;  %v546_v39 = vadd.f32 %v5058_v31, %v540_v32 }
 0x1b8   : > { %vm533_vm2 = vcmp.ge.f32.partialorder %v522_v36, 0.0  ;;  %v538_v38 = vmul.f32 %v535_v26, %v522_v36  ;;  %v5065_v26 = vsub.s32 0, %v623_v19 }
 0x1b9   : > { %v562_v43 = vadd.f32 %v559_v34, %v558_v35  ;;  %v543_v44 = vsel %vm534_vm3, %v3483_v33, %v539_v37 }
 0x1ba   : > { %v542_v40 = vsel %vm533_vm2, %v522_v36, %v538_v38  ;;  %v561_v47 = vmul.f32 %v543_v44, %v543_v44  ;;  %v625_v30 = vrot.slane %v617_v29, %v5065_v26 }
 0x1bb   : > { %v547_v41 = vadd.f32 %v546_v39, %v542_v40  ;;  %v560_v42 = vmul.f32 %v542_v40, %v542_v40 }
 0x1bd   : > { %v548_v45 = vadd.f32 %v547_v41, %v543_v44  ;;  %v563_v46 = vadd.f32 %v562_v43, %v560_v42 }
 0x1bf   : > { %549 = vadd.xlane.f32.xlu0 %v548_v45  ;;  %v564_v48 = vadd.f32 %v563_v46, %v561_v47 }
 0x1c3   : > { %565 = vadd.xlane.f32.xlu0 %v564_v48 }
 0x24c   : > { %v550_v49 = vpop.xlane.xlu0 %549 }
 0x24d   : > { %v551_v50 = vrot.slane %v550_v49, 4 }
 0x24f   : > { %v552_v51 = vadd.f32 %v551_v50, %v550_v49 }
 0x250   : > { %v566_v52 = vpop.xlane.xlu0 %565 }
 0x251   : > { %v553_v53 = vrot.slane %v552_v51, 2  ;;  %v567_v54 = vrot.slane %v566_v52, 4 }
 0x253   : > { %v568_v55 = vadd.f32 %v567_v54, %v566_v52  ;;  %v554_v56 = vadd.f32 %v553_v53, %v552_v51  ;;  %v670_v54 = vstv %s3149_s22 }
 0x255   : > { %v569_v57 = vrot.slane %v568_v55, 2  ;;  %v555_v58 = vrot.slane %v554_v56, 1 }
 0x257   : > { %v556_v59 = vadd.f32 %v555_v58, %v554_v56  ;;  %v570_v60 = vadd.f32 %v569_v57, %v568_v55 }
 0x259   : > { %4286 = vpush %v556_v59  ;;  %v571_v61 = vrot.slane %v570_v60, 1 }
 0x25b   : > { %v572_v62 = vadd.f32 %v571_v61, %v570_v60 }
 0x25d   : > { %4288 = vpush %v572_v62 }
 0x28a   : > { %s4287_s0 = spop %4286 }
 0x28b   : > { %s574_s13 = smul.f32 0.0009765625, %s4287_s0 }
 0x28d   : > { %s576_s19 = smul.f32 %s574_s13, %s574_s13  ;;  %v583_v2 = vstv %s574_s13 }
 0x28e   : > { %s4289_s21 = spop %4288  ;;  %v584_v3 = vsub.f32 %v540_v32, %v583_v2  ;;  %v585_v4 = vsub.f32 %v5058_v31, %v583_v2  ;;  %v586_v5 = vsub.f32 %v542_v40, %v583_v2  ;;  %v587_v6 = vsub.f32 %v543_v44, %v583_v2 }
 0x28f   : > { %s575_s27 = smul.f32 0.0009765625, %s4289_s21  ;;  %v641_v31 = vrot.slane %v617_v29, %v5067_v27  ;;  %v657_v32 = vrot.slane %v617_v29, %v5069_v28 }
 0x291   : > { %s577_s23 = ssub.f32 %s575_s27, %s576_s19 }
 0x293   : > { %s578_s25 = smax.f32 %s4737_s14, %s577_s23 }
 0x294   : > { %s579_s26 = sadd.f32 1e-13, %s578_s25 }
 0x296   : > { %v580_v0 = vstv %s579_s26 }
 0x297   : > { %4463 = vrsqrt.f32 %v580_v0 }
 0x2a1   : > { %v4464_v1 = vpop.eup %4463 }
 0x2a2   : > { %4290 = vpush %v4464_v1 }
 0x2d3   : > { %s4291_s20 = spop %4290 }
 0x2d4   : > { %v588_v8 = vstv %s4291_s20 }
 0x2d5   : > { %v589_v10 = vmul.f32 %v588_v8, %v584_v3  ;;  %v590_v11 = vmul.f32 %v588_v8, %v585_v4  ;;  %v591_v12 = vmul.f32 %v588_v8, %v586_v5  ;;  %v592_v13 = vmul.f32 %v588_v8, %v587_v6 }
 0x2d7   : > { %v599_v15 = vmul.f32 %v3150_v7, %v589_v10  ;;  %v600_v16 = vmul.f32 %v3150_v7, %v590_v11  ;;  %v601_v17 = vmul.f32 %v3150_v7, %v591_v12  ;;  %v602_v18 = vmul.f32 %v3150_v7, %v592_v13 }
 0x2d9   : > { %v609_v20 = vadd.f32 %v3151_v14, %v599_v15  ;;  %v610_v21 = vadd.f32 %v3151_v14, %v600_v16  ;;  %v611_v22 = vadd.f32 %v3151_v14, %v601_v17  ;;  %v612_v23 = vadd.f32 %v3151_v14, %v602_v18  ;;  %v748_v16 = vld [vmem:[#allocation13] sm:$0xff]  ;;  %v749_v17 = vld [vmem:[#allocation13 + $0x8] sm:$0xff]  ;;  %v750_v18 = vld [vmem:[#allocation13 + $0x10] sm:$0xff] }
 0x2da   : > { %v3934_v19 = vpack.c.bf16 %v749_v17, %v748_v16  ;;  %v864_v17 = vld [vmem:[#allocation8 + $0xe0] sm:$0xff] }
 0x2db   : > { %613 = vst [vmem:[#allocation2 + $0x8] sm:$0xff] %v609_v20  ;;  %614 = vst [vmem:[#allocation2 + $0x10] sm:$0xff] %v610_v21  ;;  %v659_v50 = vmul.f32 %v657_v32, %v610_v21  ;;  %v658_v52 = vmul.f32 %v657_v32, %v609_v20  ;;  %v660_v53 = vmul.f32 %v657_v32, %v611_v22  ;;  %v751_v20 = vld [vmem:[#allocation13 + $0x18] sm:$0xff] }
 0x2dc   : > { %615 = vst [vmem:[#allocation2 + $0x18] sm:$0xff] %v611_v22  ;;  %616 = vst [vmem:[#allocation2 + $0x20] sm:$0xff] %v612_v23  ;;  %v661_v57 = vmul.f32 %v657_v32, %v612_v23  ;;  %v3938_v21 = vpack.c.bf16 %v751_v20, %v750_v18  ;;  %v752_v22 = vld [vmem:[#allocation13 + $0x20] sm:$0xff]  ;;  %v753_v23 = vld [vmem:[#allocation13 + $0x28] sm:$0xff]  ;;  %3935 = vmatprep.subr.bf16.mxu1 %v3934_v19 }
 0x2dd   : > { %3937 = vmatpush3.bf16.msra.mxu1 %v3934_v19  ;;  %v3942_v29 = vpack.c.bf16 %v753_v23, %v752_v22  ;;  %v865_v18 = vld [vmem:[#allocation8 + $0xe8] sm:$0xff] }
 0x2de   : > { %3939 = vmatprep.subr.bf16.mxu1 %v3938_v21  ;;  %v3990_v19 = vpack.c.bf16 %v865_v18, %v864_v17 }
 0x2e1   : > { %3941 = vmatpush3.bf16.msra.mxu1 %v3938_v21 }
 0x2e2   : > { %v619_v33 = vld [vmem:[#allocation2 + $0xe] sm:$0xff]  ;;  %v618_v37 = vld [vmem:[#allocation2 + $0x6] sm:$0xff]  ;;  %3943 = vmatprep.subr.bf16.mxu1 %v3942_v29 }
 0x2e3   : > { %v620_v34 = vld [vmem:[#allocation2 + $0x16] sm:$0xff]  ;;  %v621_v38 = vld [vmem:[#allocation2 + $0x1e] sm:$0xff]  ;;  %v627_v39 = vmul.f32 %v625_v30, %v619_v33  ;;  %v626_v42 = vmul.f32 %v625_v30, %v618_v37  ;;  %v634_v44 = vld [vmem:[#allocation2 + $0x7] sm:$0xff] }
 0x2e4   : > { %v635_v35 = vld [vmem:[#allocation2 + $0xf] sm:$0xff]  ;;  %v636_v36 = vld [vmem:[#allocation2 + $0x17] sm:$0xff]  ;;  %v628_v40 = vmul.f32 %v625_v30, %v620_v34  ;;  %v629_v43 = vmul.f32 %v625_v30, %v621_v38  ;;  %v637_v45 = vld [vmem:[#allocation2 + $0x1f] sm:$0xff]  ;;  %v642_v47 = vmul.f32 %v641_v31, %v634_v44 }
 0x2e5   : > { %v643_v41 = vmul.f32 %v641_v31, %v635_v35  ;;  %v644_v46 = vmul.f32 %v641_v31, %v636_v36  ;;  %v645_v48 = vmul.f32 %v641_v31, %v637_v45  ;;  %v754_v30 = vld [vmem:[#allocation13 + $0x30] sm:$0xff]  ;;  %v755_v31 = vld [vmem:[#allocation13 + $0x38] sm:$0xff]  ;;  %v756_v33 = vld [vmem:[#allocation13 + $0x40] sm:$0xff]  ;;  %3945 = vmatpush3.bf16.msra.mxu1 %v3942_v29 }
 0x2e6   : > { %v646_v55 = vadd.f32 %v642_v47, %v626_v42  ;;  %v3946_v32 = vpack.c.bf16 %v755_v31, %v754_v30  ;;  %v757_v34 = vld [vmem:[#allocation13 + $0x48] sm:$0xff]  ;;  %v758_v36 = vld [vmem:[#allocation13 + $0x50] sm:$0xff]  ;;  %v759_v37 = vld [vmem:[#allocation13 + $0x58] sm:$0xff] }
 0x2e7   : > { %v647_v49 = vadd.f32 %v643_v41, %v627_v39  ;;  %v648_v51 = vadd.f32 %v644_v46, %v628_v40  ;;  %v649_v56 = vadd.f32 %v645_v48, %v629_v43  ;;  %v3950_v35 = vpack.c.bf16 %v757_v34, %v756_v33  ;;  %v760_v45 = vld [vmem:[#allocation13 + $0x60] sm:$0xff]  ;;  %v761_v46 = vld [vmem:[#allocation13 + $0x68] sm:$0xff]  ;;  %v3152_v33 = vld [vmem:[%s5440_s6] ss:$0 sm:$0xff] }
 0x2e8   : > { %v662_v60 = vadd.f32 %v658_v52, %v646_v55  ;;  %3947 = vmatprep.subr.bf16.mxu1 %v3946_v32  ;;  %v3954_v38 = vpack.c.bf16 %v759_v37, %v758_v36  ;;  %v3958_v47 = vpack.c.bf16 %v761_v46, %v760_v45  ;;  %v762_v52 = vld [vmem:[#allocation13 + $0x70] sm:$0xff] }
 0x2e9   : > { %v663_v58 = vadd.f32 %v659_v50, %v647_v49  ;;  %v664_v59 = vadd.f32 %v660_v53, %v648_v51  ;;  %v665_v61 = vadd.f32 %v661_v57, %v649_v56  ;;  %3949 = vmatpush3.bf16.msra.mxu1 %v3946_v32  ;;  %v763_v53 = vld [vmem:[#allocation13 + $0x78] sm:$0xff] }
 0x2ea   : > { %vm666_vm6 = vcmp.ge.f32.partialorder %v662_v60, 0.0  ;;  %v671_v0 = vmul.f32 %v670_v54, %v662_v60  ;;  %3951 = vmatprep.subr.bf16.mxu1 %v3950_v35  ;;  %v424_v46 = vld [vmem:[%s5036_s2] sm:$0xff] }
 0x2eb   : > { %vm667_vm4 = vcmp.ge.f32.partialorder %v663_v58, 0.0  ;;  %v672_v62 = vmul.f32 %v670_v54, %v663_v58  ;;  %vm668_vm5 = vcmp.ge.f32.partialorder %v664_v59, 0.0  ;;  %v673_v63 = vmul.f32 %v670_v54, %v664_v59  ;;  %3478 = vmatprep.mubr.f32.mxu0 %v424_v46 }
 0x2ec   : > { %v674_v2 = vmul.f32 %v670_v54, %v665_v61  ;;  %v5079_v3 = vsel %vm666_vm6, %v662_v60, %v671_v0  ;;  %vm669_vm7 = vcmp.ge.f32.partialorder %v665_v61, 0.0  ;;  %v3962_v54 = vpack.c.bf16 %v763_v53, %v762_v52  ;;  %v853_v60 = vld [vmem:[#allocation8 + $0x88] sm:$0xff] }
 0x2ed   : > { %v5077_v1 = vsel %vm667_vm4, %v663_v58, %v672_v62  ;;  %v5081_v4 = vsel %vm668_vm5, %v664_v59, %v673_v63  ;;  %v693_v7 = vmul.f32 %v5079_v3, %v5079_v3  ;;  %3953 = vmatpush3.bf16.msra.mxu1 %v3950_v35  ;;  %v852_v59 = vld [vmem:[#allocation8 + $0x80] sm:$0xff]  ;;  %v855_v63 = vld [vmem:[#allocation8 + $0x98] sm:$0xff] }
 0x2ee   : > { %v694_v5 = vmul.f32 %v5077_v1, %v5077_v1  ;;  %v681_v6 = vadd.f32 %v5077_v1, %v5079_v3  ;;  %v695_v9 = vmul.f32 %v5081_v4, %v5081_v4  ;;  %v5092_v11 = vsel %vm669_vm7, %v665_v61, %v674_v2  ;;  %3955 = vmatprep.subr.bf16.mxu1 %v3954_v38  ;;  %v854_v61 = vld [vmem:[#allocation8 + $0x90] sm:$0xff]  ;;  %v856_v2 = vld [vmem:[#allocation8 + $0xa0] sm:$0xff] }
 0x2ef   : > { %v696_v14 = vmul.f32 %v5092_v11, %v5092_v11  ;;  %v3966_v62 = vpack.c.bf16 %v853_v60, %v852_v59  ;;  %v3970_v0 = vpack.c.bf16 %v855_v63, %v854_v61 }
 0x2f0   : > { %v682_v8 = vadd.f32 %v681_v6, %v5081_v4  ;;  %v697_v10 = vadd.f32 %v694_v5, %v693_v7  ;;  %v857_v5 = vld [vmem:[#allocation8 + $0xa8] sm:$0xff]  ;;  %v858_v7 = vld [vmem:[#allocation8 + $0xb0] sm:$0xff] }
 0x2f1   : > { %3957 = vmatpush3.bf16.msra.mxu1 %v3954_v38  ;;  %3967 = vmatprep.subr.bf16.mxu0 %v3966_v62  ;;  %v3974_v6 = vpack.c.bf16 %v857_v5, %v856_v2  ;;  %v3153_v38 = vld [vmem:[%s5441_s7] ss:$0 sm:$0xff] }
 0x2f2   : > { %v683_v12 = vadd.f32 %v682_v8, %v5092_v11  ;;  %v698_v13 = vadd.f32 %v697_v10, %v695_v9  ;;  %3959 = vmatprep.subr.bf16.mxu1 %v3958_v47  ;;  %3969 = vmatpush3.bf16.msra.mxu0 %v3966_v62  ;;  %v859_v8 = vld [vmem:[#allocation8 + $0xb8] sm:$0xff]  ;;  %v860_v10 = vld [vmem:[#allocation8 + $0xc0] sm:$0xff] }
 0x2f3   : > { %3971 = vmatprep.subr.bf16.mxu0 %v3970_v0  ;;  %v3978_v9 = vpack.c.bf16 %v859_v8, %v858_v7 }
 0x2f4   : > { %684 = vadd.xlane.f32.xlu1 %v683_v12  ;;  %v699_v15 = vadd.f32 %v698_v13, %v696_v14  ;;  %v861_v12 = vld [vmem:[#allocation8 + $0xc8] sm:$0xff]  ;;  %v862_v14 = vld [vmem:[#allocation8 + $0xd0] sm:$0xff] }
 0x2f5   : > { %3961 = vmatpush3.bf16.msra.mxu1 %v3958_v47  ;;  %v3982_v13 = vpack.c.bf16 %v861_v12, %v860_v10  ;;  %v426_v47 = vld [vmem:[%s5036_s2 + $0x10] sm:$0xff]  ;;  %s3154_s2 = sld [smem:[#allocation3 + $0x80]] }
 0x2f6   : > { %3963 = vmatprep.subr.bf16.mxu1 %v3962_v54  ;;  %3973 = vmatpush3.bf16.msra.mxu0 %v3970_v0 }
 0x2f7   : > { %3975 = vmatprep.subr.bf16.mxu0 %v3974_v6  ;;  %3481 = vmatprep.mubr.f32.mxu0 %v426_v47 }
 0x2f8   : > { %700 = vadd.xlane.f32.xlu1 %v699_v15  ;;  %v863_v15 = vld [vmem:[#allocation8 + $0xd8] sm:$0xff] }
 0x2f9   : > { %3965 = vmatpush3.bf16.msra.mxu1 %v3962_v54  ;;  %v3986_v16 = vpack.c.bf16 %v863_v15, %v862_v14 }
 0x2fa   : > { %3977 = vmatpush3.bf16.msra.mxu0 %v3974_v6 }
 0x2fb   : > { %3979 = vmatprep.subr.bf16.mxu0 %v3978_v9 }
 0x2fe   : > { %3981 = vmatpush3.bf16.msra.mxu0 %v3978_v9 }
 0x2ff   : > { %3983 = vmatprep.subr.bf16.mxu0 %v3982_v13 }
 0x302   : > { %3985 = vmatpush3.bf16.msra.mxu0 %v3982_v13 }
 0x303   : > { %3987 = vmatprep.subr.bf16.mxu0 %v3986_v16 }
 0x306   : > { %3989 = vmatpush3.bf16.msra.mxu0 %v3986_v16 }
 0x307   : > { %3991 = vmatprep.subr.bf16.mxu0 %v3990_v19 }
 0x30a   : > { %3993 = vmatpush3.bf16.msra.mxu0 %v3990_v19 }
 0x381   : > { %v685_v39 = vpop.xlane.xlu1 %684 }
 0x382   : > { %v686_v40 = vrot.slane %v685_v39, 4 }
 0x384   : > { %v687_v41 = vadd.f32 %v686_v40, %v685_v39 }
 0x385   : > { %v701_v42 = vpop.xlane.xlu1 %700 }
 0x386   : > { %v688_v43 = vrot.slane %v687_v41, 2  ;;  %v702_v44 = vrot.slane %v701_v42, 4 }
 0x388   : > { %v703_v48 = vadd.f32 %v702_v44, %v701_v42  ;;  %v689_v49 = vadd.f32 %v688_v43, %v687_v41  ;;  %v866_v43 = vld [vmem:[#allocation8 + $0xf0] sm:$0xff]  ;;  %v867_v44 = vld [vmem:[#allocation8 + $0xf8] sm:$0xff] }
 0x389   : > { %v3994_v45 = vpack.c.bf16 %v867_v44, %v866_v43 }
 0x38a   : > { %v704_v50 = vrot.slane %v703_v48, 2  ;;  %v690_v51 = vrot.slane %v689_v49, 1 }
 0x38b   : > { %3995 = vmatprep.subr.bf16.mxu0 %v3994_v45 }
 0x38c   : > { %v691_v55 = vadd.f32 %v690_v51, %v689_v49  ;;  %v705_v56 = vadd.f32 %v704_v50, %v703_v48  ;;  %3997 = vmatpush3.bf16.msra.mxu0 %v3994_v45  ;;  %v3157_v45 = vld [vmem:[#allocation11 + $0x1] ss:$0 sm:$0xff] }
 0x38e   : > { %4292 = vpush %v691_v55  ;;  %v706_v57 = vrot.slane %v705_v56, 1 }
 0x390   : > { %v707_v58 = vadd.f32 %v706_v57, %v705_v56  ;;  %v957_v56 = vstv %s3154_s2 }
 0x392   : > { %4294 = vpush %v707_v58 }
 0x3bf   : > { %s4293_s13 = spop %4292 }
 0x3c0   : > { %s709_s19 = smul.f32 0.0009765625, %s4293_s13  ;;  %s3155_s13 = sld [smem:[#allocation3 + $0x81]] }
 0x3c2   : > { %s711_s21 = smul.f32 %s709_s19, %s709_s19  ;;  %v718_v22 = vstv %s709_s19 }
 0x3c3   : > { %s4295_s27 = spop %4294  ;;  %v720_v23 = vsub.f32 %v5077_v1, %v718_v22  ;;  %v721_v29 = vsub.f32 %v5081_v4, %v718_v22  ;;  %v719_v30 = vsub.f32 %v5079_v3, %v718_v22  ;;  %v722_v31 = vsub.f32 %v5092_v11, %v718_v22 }
 0x3c4   : > { %s710_s23 = smul.f32 0.0009765625, %s4295_s27 }
 0x3c6   : > { %s712_s25 = ssub.f32 %s710_s23, %s711_s21 }
 0x3c8   : > { %s713_s26 = smax.f32 %s4737_s14, %s712_s25 }
 0x3c9   : > { %s714_s20 = sadd.f32 1e-13, %s713_s26 }
 0x3cb   : > { %v715_v20 = vstv %s714_s20 }
 0x3cc   : > { %4465 = vrsqrt.f32 %v715_v20 }
 0x3d6   : > { %v4466_v21 = vpop.eup %4465 }
 0x3d7   : > { %4296 = vpush %v4466_v21 }
 0x408   : > { %s4297_s22 = spop %4296 }
 0x409   : > { %v723_v32 = vstv %s4297_s22 }
 0x40a   : > { %v725_v34 = vmul.f32 %v723_v32, %v720_v23  ;;  %v726_v35 = vmul.f32 %v723_v32, %v721_v29  ;;  %v724_v36 = vmul.f32 %v723_v32, %v719_v30  ;;  %v727_v37 = vmul.f32 %v723_v32, %v722_v31 }
 0x40c   : > { %v734_v1 = vmul.f32 %v3152_v33, %v724_v36  ;;  %v735_v4 = vmul.f32 %v3152_v33, %v725_v34  ;;  %v736_v39 = vmul.f32 %v3152_v33, %v726_v35  ;;  %v737_v40 = vmul.f32 %v3152_v33, %v727_v37 }
 0x40e   : > { %v744_v3 = vadd.f32 %v3153_v38, %v734_v1  ;;  %v745_v11 = vadd.f32 %v3153_v38, %v735_v4  ;;  %v746_v41 = vadd.f32 %v3153_v38, %v736_v39  ;;  %v747_v42 = vadd.f32 %v3153_v38, %v737_v40 }
 0x410   : > { %3516 = vmatprep.mubr.f32.mxu1 %v744_v3 }
 0x411   : > { %3517 = vmatmul.mubr.f32.vlgmr.msra.gmra.mrb[0].mxu1 %v745_v11  ;;  %v3156_v11 = vld [vmem:[#allocation10 + $0x1] ss:$0 sm:$0xff] }
 0x412   : > { %3519 = vmatprep.mubr.f32.mxu1 %v746_v41 }
 0x415   : > { %3520 = vmatmul.mubr.f32.gmra.mrb[2].mxu1 %v747_v42 }
 0x4e4   : > { %v3518_v48 = vpop.f32.mrb[0].mxu1 }
 0x4e5   : > { %v830_v49 = vpop.f32.mrb[1].mxu1  ;;  %v5113_v51 = vadd.f32 %v3518_v48, %v5051_v24 }
 0x4e6   : > { %v5110_v50 = vadd.f32 %v830_v49, %v424_v46 }
 0x4e8   : > { %v3521_v52 = vpop.f32.mrb[2].mxu1  ;;  %3554 = vmatprep.mubr.f32.mxu0 %v5110_v50 }
 0x4e9   : > { %v840_v53 = vpop.f32.mrb[3].mxu1  ;;  %3555 = vmatmul.mubr.f32.vlgmr.msra.gmra.mrb[4].mxu0 %v5113_v51  ;;  %v5120_v55 = vadd.f32 %v3521_v52, %v5055_v25 }
 0x4ea   : > { %v5117_v54 = vadd.f32 %v840_v53, %v426_v47 }
 0x4ec   : > { %3557 = vmatprep.mubr.f32.mxu0 %v5117_v54 }
 0x4ed   : > { %3558 = vmatmul.mubr.f32.gmra.mrb[6].mxu0 %v5120_v55 }
 0x5bc   : > { %v3556_v57 = vpop.f32.mrb[4].mxu0 }
 0x5bd   : > { %vm954_vm8 = vcmp.ge.f32.partialorder %v3556_v57, 0.0  ;;  %v959_v24 = vmul.f32 %v3556_v57, %v957_v56  ;;  %v934_v58 = vpop.f32.mrb[5].mxu0 }
 0x5be   : > { %vm953_vm9 = vcmp.ge.f32.partialorder %v934_v58, 0.0  ;;  %v958_v59 = vmul.f32 %v957_v56, %v934_v58 }
 0x5bf   : > { %v963_v60 = vsel %vm954_vm8, %v3556_v57, %v959_v24  ;;  %v3158_v24 = vld [vmem:[%s5439_s5 + $0x4] sm:$0x7] }
 0x5c0   : > { %v962_v61 = vsel %vm953_vm9, %v934_v58, %v958_v59  ;;  %v3559_v62 = vpop.f32.mrb[6].mxu0  ;;  %v983_v63 = vmul.f32 %v963_v60, %v963_v60  ;;  %v1050_v58 = vrot.slane %v3158_v24, %v5065_v26  ;;  %v1066_v59 = vrot.slane %v3158_v24, %v5067_v27 }
 0x5c1   : > { %v982_v0 = vmul.f32 %v962_v61, %v962_v61  ;;  %vm956_vm10 = vcmp.ge.f32.partialorder %v3559_v62, 0.0  ;;  %v961_v25 = vmul.f32 %v3559_v62, %v957_v56  ;;  %v944_v2 = vpop.f32.mrb[7].mxu0  ;;  %v970_v6 = vadd.f32 %v963_v60, %v962_v61 }
 0x5c2   : > { %vm955_vm11 = vcmp.ge.f32.partialorder %v944_v2, 0.0  ;;  %v960_v5 = vmul.f32 %v957_v56, %v944_v2 }
 0x5c3   : > { %v965_v7 = vsel %vm956_vm10, %v3559_v62, %v961_v25  ;;  %v986_v12 = vadd.f32 %v983_v63, %v982_v0  ;;  %v1082_v63 = vrot.slane %v3158_v24, %v5069_v28  ;;  %v1180_v24 = vld [vmem:[#allocation13 + $0xa0] sm:$0xff] }
 0x5c4   : > { %v964_v8 = vsel %vm955_vm11, %v944_v2, %v960_v5  ;;  %v985_v14 = vmul.f32 %v965_v7, %v965_v7 }
 0x5c5   : > { %v971_v9 = vadd.f32 %v970_v6, %v964_v8  ;;  %v984_v10 = vmul.f32 %v964_v8, %v964_v8 }
 0x5c7   : > { %v972_v13 = vadd.f32 %v971_v9, %v965_v7  ;;  %v987_v15 = vadd.f32 %v986_v12, %v984_v10 }
 0x5c9   : > { %973 = vadd.xlane.f32.xlu0 %v972_v13  ;;  %v988_v16 = vadd.f32 %v987_v15, %v985_v14 }
 0x5cb   : > { %989 = vadd.xlane.f32.xlu1 %v988_v16  ;;  %v1095_v16 = vstv %s3155_s13 }
 0x656   : > { %v974_v17 = vpop.xlane.xlu0 %973 }
 0x657   : > { %v975_v18 = vrot.slane %v974_v17, 4 }
 0x658   : > { %v990_v19 = vpop.xlane.xlu1 %989 }
 0x659   : > { %v976_v20 = vadd.f32 %v975_v18, %v974_v17  ;;  %v991_v21 = vrot.slane %v990_v19, 4 }
 0x65b   : > { %v977_v22 = vrot.slane %v976_v20, 2  ;;  %v992_v23 = vadd.f32 %v991_v21, %v990_v19 }
 0x65d   : > { %v993_v29 = vrot.slane %v992_v23, 2  ;;  %v978_v30 = vadd.f32 %v977_v22, %v976_v20 }
 0x65f   : > { %v979_v31 = vrot.slane %v978_v30, 1  ;;  %v994_v32 = vadd.f32 %v993_v29, %v992_v23 }
 0x661   : > { %v980_v33 = vadd.f32 %v979_v31, %v978_v30  ;;  %v995_v34 = vrot.slane %v994_v32, 1 }
 0x663   : > { %4298 = vpush %v980_v33  ;;  %v996_v35 = vadd.f32 %v995_v34, %v994_v32 }
 0x665   : > { %4300 = vpush %v996_v35 }
 0x694   : > { %s4299_s21 = spop %4298 }
 0x695   : > { %s998_s27 = smul.f32 0.0009765625, %s4299_s21 }
 0x696   : > { %s4301_s23 = spop %4300 }
 0x697   : > { %s1000_s25 = smul.f32 %s998_s27, %s998_s27  ;;  %v1007_v38 = vstv %s998_s27 }
 0x698   : > { %s999_s26 = smul.f32 0.0009765625, %s4301_s23  ;;  %v1008_v1 = vsub.f32 %v962_v61, %v1007_v38  ;;  %v1009_v4 = vsub.f32 %v963_v60, %v1007_v38  ;;  %v1010_v39 = vsub.f32 %v964_v8, %v1007_v38  ;;  %v1011_v3 = vsub.f32 %v965_v7, %v1007_v38 }
 0x69a   : > { %s1001_s20 = ssub.f32 %s999_s26, %s1000_s25 }
 0x69c   : > { %s1002_s22 = smax.f32 %s4737_s14, %s1001_s20 }
 0x69d   : > { %s1003_s16 = sadd.f32 1e-13, %s1002_s22 }
 0x69f   : > { %v1004_v36 = vstv %s1003_s16 }
 0x6a0   : > { %4467 = vrsqrt.f32 %v1004_v36 }
 0x6aa   : > { %v4468_v37 = vpop.eup %4467 }
 0x6ab   : > { %4302 = vpush %v4468_v37 }
 0x6dc   : > { %s4303_s0 = spop %4302 }
 0x6dd   : > { %v1012_v40 = vstv %s4303_s0 }
 0x6de   : > { %v1013_v41 = vmul.f32 %v1012_v40, %v1008_v1  ;;  %v1014_v42 = vmul.f32 %v1012_v40, %v1009_v4  ;;  %v1015_v43 = vmul.f32 %v1012_v40, %v1010_v39  ;;  %v1016_v44 = vmul.f32 %v1012_v40, %v1011_v3 }
 0x6e0   : > { %v1023_v46 = vmul.f32 %v3156_v11, %v1013_v41  ;;  %v1024_v47 = vmul.f32 %v3156_v11, %v1014_v42  ;;  %v1025_v48 = vmul.f32 %v3156_v11, %v1015_v43  ;;  %v1026_v49 = vmul.f32 %v3156_v11, %v1016_v44 }
 0x6e2   : > { %v1033_v52 = vadd.f32 %v3157_v45, %v1023_v46  ;;  %v1034_v53 = vadd.f32 %v3157_v45, %v1024_v47  ;;  %v1035_v56 = vadd.f32 %v3157_v45, %v1025_v48  ;;  %v1036_v57 = vadd.f32 %v3157_v45, %v1026_v49  ;;  %v1176_v48 = vld [vmem:[#allocation13 + $0x80] sm:$0xff]  ;;  %v1177_v49 = vld [vmem:[#allocation13 + $0x88] sm:$0xff] }
 0x6e4   : > { %1037 = vst [vmem:[#allocation2 + $0x8] sm:$0xff] %v1033_v52  ;;  %1038 = vst [vmem:[#allocation2 + $0x10] sm:$0xff] %v1034_v53  ;;  %v1083_v19 = vmul.f32 %v1082_v63, %v1033_v52  ;;  %v1084_v20 = vmul.f32 %v1082_v63, %v1034_v53  ;;  %v1085_v23 = vmul.f32 %v1082_v63, %v1035_v56  ;;  %v1178_v52 = vld [vmem:[#allocation13 + $0x90] sm:$0xff] }
 0x6e5   : > { %1039 = vst [vmem:[#allocation2 + $0x18] sm:$0xff] %v1035_v56  ;;  %1040 = vst [vmem:[#allocation2 + $0x20] sm:$0xff] %v1036_v57  ;;  %v1086_v29 = vmul.f32 %v1082_v63, %v1036_v57  ;;  %v3998_v53 = vpack.c.bf16 %v1177_v49, %v1176_v48  ;;  %v1179_v56 = vld [vmem:[#allocation13 + $0x98] sm:$0xff]  ;;  %v1184_v63 = vld [vmem:[#allocation13 + $0xc0] sm:$0xff] }
 0x6e6   : > { %v4002_v57 = vpack.c.bf16 %v1179_v56, %v1178_v52  ;;  %v1290_v48 = vld [vmem:[#allocation8 + $0x150] sm:$0xff]  ;;  %v1291_v49 = vld [vmem:[#allocation8 + $0x158] sm:$0xff]  ;;  %v1293_v56 = vld [vmem:[#allocation8 + $0x168] sm:$0xff] }
 0x6e7   : > { %3999 = vmatprep.subr.bf16.mxu1 %v3998_v53  ;;  %v4050_v52 = vpack.c.bf16 %v1291_v49, %v1290_v48 }
 0x6e8   : > { %4001 = vmatpush3.bf16.msra.mxu1 %v3998_v53  ;;  %v1292_v53 = vld [vmem:[#allocation8 + $0x160] sm:$0xff] }
 0x6e9   : > { %4003 = vmatprep.subr.bf16.mxu1 %v4002_v57 }
 0x6eb   : > { %v1043_v60 = vld [vmem:[#allocation2 + $0x4] sm:$0xff]  ;;  %v1044_v61 = vld [vmem:[#allocation2 + $0xc] sm:$0xff] }
 0x6ec   : > { %v1045_v62 = vld [vmem:[#allocation2 + $0x14] sm:$0xff]  ;;  %v1046_v0 = vld [vmem:[#allocation2 + $0x1c] sm:$0xff]  ;;  %v1051_v25 = vmul.f32 %v1050_v58, %v1043_v60  ;;  %v1052_v2 = vmul.f32 %v1050_v58, %v1044_v61  ;;  %v1059_v6 = vld [vmem:[#allocation2 + $0x6] sm:$0xff]  ;;  %4005 = vmatpush3.bf16.msra.mxu1 %v4002_v57  ;;  %v4054_v57 = vpack.c.bf16 %v1293_v56, %v1292_v53 }
 0x6ed   : > { %v1053_v5 = vmul.f32 %v1050_v58, %v1045_v62  ;;  %v1060_v7 = vld [vmem:[#allocation2 + $0xe] sm:$0xff]  ;;  %v1054_v8 = vmul.f32 %v1050_v58, %v1046_v0  ;;  %v1061_v9 = vld [vmem:[#allocation2 + $0x16] sm:$0xff]  ;;  %v1062_v10 = vld [vmem:[#allocation2 + $0x1e] sm:$0xff]  ;;  %v1067_v12 = vmul.f32 %v1066_v59, %v1059_v6 }
 0x6ee   : > { %v1068_v13 = vmul.f32 %v1066_v59, %v1060_v7  ;;  %v1069_v14 = vmul.f32 %v1066_v59, %v1061_v9  ;;  %v1070_v15 = vmul.f32 %v1066_v59, %v1062_v10  ;;  %v1181_v58 = vld [vmem:[#allocation13 + $0xa8] sm:$0xff]  ;;  %v1182_v60 = vld [vmem:[#allocation13 + $0xb0] sm:$0xff]  ;;  %v1183_v61 = vld [vmem:[#allocation13 + $0xb8] sm:$0xff] }
 0x6ef   : > { %v1071_v17 = vadd.f32 %v1067_v12, %v1051_v25  ;;  %v4006_v59 = vpack.c.bf16 %v1181_v58, %v1180_v24  ;;  %v4010_v62 = vpack.c.bf16 %v1183_v61, %v1182_v60  ;;  %v1185_v0 = vld [vmem:[#allocation13 + $0xc8] sm:$0xff] }
 0x6f0   : > { %v1072_v18 = vadd.f32 %v1068_v13, %v1052_v2  ;;  %v1073_v21 = vadd.f32 %v1069_v14, %v1053_v5  ;;  %v1074_v22 = vadd.f32 %v1070_v15, %v1054_v8  ;;  %v4014_v25 = vpack.c.bf16 %v1185_v0, %v1184_v63  ;;  %v1186_v2 = vld [vmem:[#allocation13 + $0xd0] sm:$0xff]  ;;  %v1187_v5 = vld [vmem:[#allocation13 + $0xd8] sm:$0xff]  ;;  %v1188_v13 = vld [vmem:[#allocation13 + $0xe0] sm:$0xff] }
 0x6f1   : > { %v1087_v30 = vadd.f32 %v1083_v19, %v1071_v17  ;;  %4007 = vmatprep.subr.bf16.mxu1 %v4006_v59  ;;  %v4018_v6 = vpack.c.bf16 %v1187_v5, %v1186_v2  ;;  %v1189_v14 = vld [vmem:[#allocation13 + $0xe8] sm:$0xff]  ;;  %v3161_v63 = vld [vmem:[%s5440_s6 + $0x1] ss:$0 sm:$0xff] }
 0x6f2   : > { %v1088_v31 = vadd.f32 %v1084_v20, %v1072_v18  ;;  %v1089_v32 = vadd.f32 %v1085_v23, %v1073_v21  ;;  %v1090_v33 = vadd.f32 %v1086_v29, %v1074_v22  ;;  %4009 = vmatpush3.bf16.msra.mxu1 %v4006_v59  ;;  %v1190_v20 = vld [vmem:[#allocation13 + $0xf0] sm:$0xff]  ;;  %v1191_v21 = vld [vmem:[#allocation13 + $0xf8] sm:$0xff] }
 0x6f3   : > { %vm1091_vm12 = vcmp.ge.f32.partialorder %v1087_v30, 0.0  ;;  %v1096_v34 = vmul.f32 %v1095_v16, %v1087_v30  ;;  %4011 = vmatprep.subr.bf16.mxu1 %v4010_v62  ;;  %v4026_v23 = vpack.c.bf16 %v1191_v21, %v1190_v20 }
 0x6f4   : > { %vm1092_vm13 = vcmp.ge.f32.partialorder %v1088_v31, 0.0  ;;  %v1097_v35 = vmul.f32 %v1095_v16, %v1088_v31  ;;  %vm1093_vm14 = vcmp.ge.f32.partialorder %v1089_v32, 0.0  ;;  %v1098_v36 = vmul.f32 %v1095_v16, %v1089_v32 }
 0x6f5   : > { %v1099_v37 = vmul.f32 %v1095_v16, %v1090_v33  ;;  %vm1094_vm15 = vcmp.ge.f32.partialorder %v1090_v33, 0.0  ;;  %v5131_v38 = vsel %vm1091_vm12, %v1087_v30, %v1096_v34  ;;  %v4022_v16 = vpack.c.bf16 %v1189_v14, %v1188_v13  ;;  %v1281_v34 = vld [vmem:[#allocation8 + $0x108] sm:$0xff]  ;;  %v1294_v14 = vld [vmem:[#allocation8 + $0x170] sm:$0xff] }
 0x6f6   : > { %v5133_v1 = vsel %vm1092_vm13, %v1088_v31, %v1097_v35  ;;  %v5135_v4 = vsel %vm1093_vm14, %v1089_v32, %v1098_v36  ;;  %v1120_v3 = vmul.f32 %v5131_v38, %v5131_v38  ;;  %4013 = vmatpush3.bf16.msra.mxu1 %v4010_v62  ;;  %v1282_v35 = vld [vmem:[#allocation8 + $0x110] sm:$0xff] }
 0x6f7   : > { %v1108_v39 = vadd.f32 %v5133_v1, %v5131_v38  ;;  %v1121_v11 = vmul.f32 %v5133_v1, %v5133_v1  ;;  %v5143_v40 = vsel %vm1094_vm15, %v1090_v33, %v1099_v37  ;;  %v1122_v42 = vmul.f32 %v5135_v4, %v5135_v4  ;;  %4015 = vmatprep.subr.bf16.mxu1 %v4014_v25  ;;  %v1280_v33 = vld [vmem:[#allocation8 + $0x100] sm:$0xff]  ;;  %v1283_v37 = vld [vmem:[#allocation8 + $0x118] sm:$0xff] }
 0x6f8   : > { %v1123_v45 = vmul.f32 %v5143_v40, %v5143_v40  ;;  %v4030_v36 = vpack.c.bf16 %v1281_v34, %v1280_v33 }
 0x6f9   : > { %v1109_v41 = vadd.f32 %v1108_v39, %v5135_v4  ;;  %v1124_v43 = vadd.f32 %v1121_v11, %v1120_v3  ;;  %v4034_v39 = vpack.c.bf16 %v1283_v37, %v1282_v35  ;;  %v1284_v3 = vld [vmem:[#allocation8 + $0x120] sm:$0xff]  ;;  %v1285_v11 = vld [vmem:[#allocation8 + $0x128] sm:$0xff] }
 0x6fa   : > { %4017 = vmatpush3.bf16.msra.mxu1 %v4014_v25  ;;  %4031 = vmatprep.subr.bf16.mxu0 %v4030_v36 }
 0x6fb   : > { %v1110_v44 = vadd.f32 %v1109_v41, %v5143_v40  ;;  %v1125_v46 = vadd.f32 %v1124_v43, %v1122_v42  ;;  %4019 = vmatprep.subr.bf16.mxu1 %v4018_v6  ;;  %4033 = vmatpush3.bf16.msra.mxu0 %v4030_v36  ;;  %v4038_v41 = vpack.c.bf16 %v1285_v11, %v1284_v3  ;;  %v1286_v42 = vld [vmem:[#allocation8 + $0x130] sm:$0xff]  ;;  %v1287_v43 = vld [vmem:[#allocation8 + $0x138] sm:$0xff] }
 0x6fc   : > { %4035 = vmatprep.subr.bf16.mxu0 %v4034_v39 }
 0x6fd   : > { %1111 = vadd.xlane.f32.xlu0 %v1110_v44  ;;  %v1126_v47 = vadd.f32 %v1125_v46, %v1123_v45  ;;  %v4042_v44 = vpack.c.bf16 %v1287_v43, %v1286_v42  ;;  %v1288_v45 = vld [vmem:[#allocation8 + $0x140] sm:$0xff]  ;;  %v1289_v46 = vld [vmem:[#allocation8 + $0x148] sm:$0xff] }
 0x6fe   : > { %4021 = vmatpush3.bf16.msra.mxu1 %v4018_v6 }
 0x6ff   : > { %1127 = vadd.xlane.f32.xlu1 %v1126_v47  ;;  %4023 = vmatprep.subr.bf16.mxu1 %v4022_v16  ;;  %v4046_v47 = vpack.c.bf16 %v1289_v46, %v1288_v45 }
 0x700   : > { %4037 = vmatpush3.bf16.msra.mxu0 %v4034_v39 }
 0x701   : > { %4039 = vmatprep.subr.bf16.mxu0 %v4038_v41 }
 0x702   : > { %4025 = vmatpush3.bf16.msra.mxu1 %v4022_v16 }
 0x703   : > { %4027 = vmatprep.subr.bf16.mxu1 %v4026_v23 }
 0x704   : > { %4041 = vmatpush3.bf16.msra.mxu0 %v4038_v41 }
 0x705   : > { %4043 = vmatprep.subr.bf16.mxu0 %v4042_v44 }
 0x706   : > { %4029 = vmatpush3.bf16.msra.mxu1 %v4026_v23 }
 0x708   : > { %4045 = vmatpush3.bf16.msra.mxu0 %v4042_v44 }
 0x709   : > { %4047 = vmatprep.subr.bf16.mxu0 %v4046_v47 }
 0x70c   : > { %4049 = vmatpush3.bf16.msra.mxu0 %v4046_v47 }
 0x70d   : > { %4051 = vmatprep.subr.bf16.mxu0 %v4050_v52 }
 0x710   : > { %4053 = vmatpush3.bf16.msra.mxu0 %v4050_v52 }
 0x711   : > { %4055 = vmatprep.subr.bf16.mxu0 %v4054_v57 }
 0x714   : > { %4057 = vmatpush3.bf16.msra.mxu0 %v4054_v57 }
 0x78a   : > { %v1112_v7 = vpop.xlane.xlu0 %1111 }
 0x78b   : > { %v1113_v8 = vrot.slane %v1112_v7, 4 }
 0x78c   : > { %v1128_v10 = vpop.xlane.xlu1 %1127 }
 0x78d   : > { %v1114_v9 = vadd.f32 %v1113_v8, %v1112_v7  ;;  %v1129_v12 = vrot.slane %v1128_v10, 4  ;;  %v3162_v8 = vld [vmem:[%s5441_s7 + $0x1] ss:$0 sm:$0xff] }
 0x78f   : > { %v1115_v15 = vrot.slane %v1114_v9, 2  ;;  %v1130_v17 = vadd.f32 %v1129_v12, %v1128_v10 }
 0x791   : > { %v1116_v18 = vadd.f32 %v1115_v15, %v1114_v9  ;;  %v1131_v19 = vrot.slane %v1130_v17, 2  ;;  %v1295_v15 = vld [vmem:[#allocation8 + $0x178] sm:$0xff] }
 0x792   : > { %v4058_v16 = vpack.c.bf16 %v1295_v15, %v1294_v14  ;;  %v3166_v14 = vld [vmem:[#allocation11 + $0x2] ss:$0 sm:$0xff] }
 0x793   : > { %v1117_v22 = vrot.slane %v1116_v18, 1  ;;  %v1132_v29 = vadd.f32 %v1131_v19, %v1130_v17 }
 0x794   : > { %4059 = vmatprep.subr.bf16.mxu0 %v4058_v16 }
 0x795   : > { %v1118_v30 = vadd.f32 %v1117_v22, %v1116_v18  ;;  %v1133_v31 = vrot.slane %v1132_v29, 1  ;;  %4061 = vmatpush3.bf16.msra.mxu0 %v4058_v16 }
 0x797   : > { %4304 = vpush %v1118_v30  ;;  %v1134_v32 = vadd.f32 %v1133_v31, %v1132_v29 }
 0x799   : > { %4306 = vpush %v1134_v32 }
 0x7c8   : > { %s4305_s21 = spop %4304 }
 0x7c9   : > { %s1136_s27 = smul.f32 0.0009765625, %s4305_s21 }
 0x7ca   : > { %s4307_s25 = spop %4306 }
 0x7cb   : > { %s1138_s23 = smul.f32 %s1136_s27, %s1136_s27  ;;  %v1145_v59 = vstv %s1136_s27  ;;  %s3163_s27 = sld [smem:[#allocation3 + $0x100]] }
 0x7cc   : > { %s1137_s26 = smul.f32 0.0009765625, %s4307_s25  ;;  %v1146_v60 = vsub.f32 %v5131_v38, %v1145_v59  ;;  %v1147_v61 = vsub.f32 %v5133_v1, %v1145_v59  ;;  %v1148_v62 = vsub.f32 %v5135_v4, %v1145_v59  ;;  %v1149_v0 = vsub.f32 %v5143_v40, %v1145_v59 }
 0x7ce   : > { %s1139_s20 = ssub.f32 %s1137_s26, %s1138_s23 }
 0x7d0   : > { %s1140_s22 = smax.f32 %s4737_s14, %s1139_s20 }
 0x7d1   : > { %s1141_s16 = sadd.f32 1e-13, %s1140_s22 }
 0x7d3   : > { %v1142_v24 = vstv %s1141_s16 }
 0x7d4   : > { %4469 = vrsqrt.f32 %v1142_v24 }
 0x7de   : > { %v4470_v58 = vpop.eup %4469 }
 0x7df   : > { %4308 = vpush %v4470_v58 }
 0x810   : > { %s4309_s0 = spop %4308 }
 0x811   : > { %v1150_v25 = vstv %s4309_s0 }
 0x812   : > { %v1151_v2 = vmul.f32 %v1150_v25, %v1146_v60  ;;  %v1152_v5 = vmul.f32 %v1150_v25, %v1147_v61  ;;  %v1153_v6 = vmul.f32 %v1150_v25, %v1148_v62  ;;  %v1154_v7 = vmul.f32 %v1150_v25, %v1149_v0 }
 0x814   : > { %v1162_v38 = vmul.f32 %v3161_v63, %v1152_v5  ;;  %v1161_v9 = vmul.f32 %v3161_v63, %v1151_v2  ;;  %v1163_v1 = vmul.f32 %v3161_v63, %v1153_v6  ;;  %v1164_v12 = vmul.f32 %v3161_v63, %v1154_v7 }
 0x816   : > { %v1171_v10 = vadd.f32 %v3162_v8, %v1161_v9  ;;  %v1172_v4 = vadd.f32 %v3162_v8, %v1162_v38  ;;  %v1173_v13 = vadd.f32 %v3162_v8, %v1163_v1  ;;  %v1174_v40 = vadd.f32 %v3162_v8, %v1164_v12  ;;  %v3165_v1 = vld [vmem:[#allocation10 + $0x2] ss:$0 sm:$0xff] }
 0x818   : > { %3592 = vmatprep.mubr.f32.mxu1 %v1171_v10 }
 0x819   : > { %3593 = vmatmul.mubr.f32.vlgmr.msra.gmra.mrb[4].mxu1 %v1172_v4 }
 0x81a   : > { %3595 = vmatprep.mubr.f32.mxu1 %v1173_v13 }
 0x81d   : > { %3596 = vmatmul.mubr.f32.gmra.mrb[6].mxu1 %v1174_v40 }
 0x8ec   : > { %v3594_v17 = vpop.f32.mrb[4].mxu1 }
 0x8ed   : > { %v1258_v18 = vpop.f32.mrb[5].mxu1  ;;  %v5166_v20 = vadd.f32 %v3594_v17, %v5113_v51 }
 0x8ee   : > { %v5163_v19 = vadd.f32 %v1258_v18, %v5110_v50  ;;  %v1385_v50 = vstv %s3163_s27  ;;  %s3164_s27 = sld [smem:[#allocation3 + $0x101]] }
 0x8f0   : > { %v3597_v21 = vpop.f32.mrb[6].mxu1  ;;  %3630 = vmatprep.mubr.f32.mxu0 %v5163_v19 }
 0x8f1   : > { %v1268_v22 = vpop.f32.mrb[7].mxu1  ;;  %3631 = vmatmul.mubr.f32.vlgmr.msra.gmra.mrb[8].mxu0 %v5166_v20  ;;  %v5174_v29 = vadd.f32 %v3597_v21, %v5120_v55 }
 0x8f2   : > { %v5171_v23 = vadd.f32 %v1268_v22, %v5117_v54 }
 0x8f4   : > { %3633 = vmatprep.mubr.f32.mxu0 %v5171_v23 }
 0x8f5   : > { %3634 = vmatmul.mubr.f32.gmra.mrb[10].mxu0 %v5174_v29 }
 0x9c4   : > { %v3632_v51 = vpop.f32.mrb[8].mxu0 }
 0x9c5   : > { %vm1382_vm0 = vcmp.ge.f32.partialorder %v3632_v51, 0.0  ;;  %v1387_v30 = vmul.f32 %v3632_v51, %v1385_v50  ;;  %v1362_v31 = vpop.f32.mrb[9].mxu0 }
 0x9c6   : > { %vm1381_vm1 = vcmp.ge.f32.partialorder %v1362_v31, 0.0  ;;  %v1386_v32 = vmul.f32 %v1385_v50, %v1362_v31 }
 0x9c7   : > { %v1391_v33 = vsel %vm1382_vm0, %v3632_v51, %v1387_v30  ;;  %v3167_v30 = vld [vmem:[%s5439_s5 + $0x8] sm:$0x7] }
 0x9c8   : > { %v1390_v34 = vsel %vm1381_vm1, %v1362_v31, %v1386_v32  ;;  %v3635_v35 = vpop.f32.mrb[10].mxu0  ;;  %v1411_v54 = vmul.f32 %v1391_v33, %v1391_v33  ;;  %v1478_v31 = vrot.slane %v3167_v30, %v5065_v26  ;;  %v1494_v32 = vrot.slane %v3167_v30, %v5067_v27 }
 0x9c9   : > { %v1410_v36 = vmul.f32 %v1390_v34, %v1390_v34  ;;  %vm1384_vm2 = vcmp.ge.f32.partialorder %v3635_v35, 0.0  ;;  %v1389_v55 = vmul.f32 %v3635_v35, %v1385_v50  ;;  %v1372_v37 = vpop.f32.mrb[11].mxu0  ;;  %v1398_v3 = vadd.f32 %v1391_v33, %v1390_v34 }
 0x9ca   : > { %vm1383_vm3 = vcmp.ge.f32.partialorder %v1372_v37, 0.0  ;;  %v1388_v39 = vmul.f32 %v1385_v50, %v1372_v37 }
 0x9cb   : > { %v1393_v11 = vsel %vm1384_vm2, %v3635_v35, %v1389_v55  ;;  %v1414_v44 = vadd.f32 %v1411_v54, %v1410_v36 }
 0x9cc   : > { %v1392_v41 = vsel %vm1383_vm3, %v1372_v37, %v1388_v39  ;;  %v1413_v46 = vmul.f32 %v1393_v11, %v1393_v11 }
 0x9cd   : > { %v1399_v42 = vadd.f32 %v1398_v3, %v1392_v41  ;;  %v1412_v43 = vmul.f32 %v1392_v41, %v1392_v41 }
 0x9cf   : > { %v1400_v45 = vadd.f32 %v1399_v42, %v1393_v11  ;;  %v1415_v47 = vadd.f32 %v1414_v44, %v1412_v43 }
 0x9d1   : > { %1401 = vadd.xlane.f32.xlu0 %v1400_v45  ;;  %v1416_v48 = vadd.f32 %v1415_v47, %v1413_v46 }
 0x9d3   : > { %1417 = vadd.xlane.f32.xlu1 %v1416_v48 }
 0xa5e   : > { %v1402_v49 = vpop.xlane.xlu0 %1401 }
 0xa5f   : > { %v1403_v52 = vrot.slane %v1402_v49, 4 }
 0xa60   : > { %v1418_v53 = vpop.xlane.xlu1 %1417 }
 0xa61   : > { %v1404_v56 = vadd.f32 %v1403_v52, %v1402_v49  ;;  %v1419_v57 = vrot.slane %v1418_v53, 4 }
 0xa63   : > { %v1405_v24 = vrot.slane %v1404_v56, 2  ;;  %v1420_v58 = vadd.f32 %v1419_v57, %v1418_v53  ;;  %v1523_v57 = vstv %s3164_s27  ;;  %s3173_s27 = sld [smem:[#allocation3 + $0x181]] }
 0xa65   : > { %v1421_v59 = vrot.slane %v1420_v58, 2  ;;  %v1406_v60 = vadd.f32 %v1405_v24, %v1404_v56 }
 0xa67   : > { %v1407_v61 = vrot.slane %v1406_v60, 1  ;;  %v1422_v62 = vadd.f32 %v1421_v59, %v1420_v58 }
 0xa69   : > { %v1408_v63 = vadd.f32 %v1407_v61, %v1406_v60  ;;  %v1423_v0 = vrot.slane %v1422_v62, 1 }
 0xa6b   : > { %4310 = vpush %v1408_v63  ;;  %v1424_v25 = vadd.f32 %v1423_v0, %v1422_v62 }
 0xa6d   : > { %4312 = vpush %v1424_v25 }
 0xa9c   : > { %s4311_s23 = spop %4310 }
 0xa9d   : > { %s1426_s25 = smul.f32 0.0009765625, %s4311_s23 }
 0xa9e   : > { %s4313_s26 = spop %4312 }
 0xa9f   : > { %s1428_s20 = smul.f32 %s1426_s25, %s1426_s25  ;;  %v1435_v6 = vstv %s1426_s25 }
 0xaa0   : > { %s1427_s22 = smul.f32 0.0009765625, %s4313_s26  ;;  %v1436_v7 = vsub.f32 %v1390_v34, %v1435_v6  ;;  %v1437_v8 = vsub.f32 %v1391_v33, %v1435_v6  ;;  %v1438_v38 = vsub.f32 %v1392_v41, %v1435_v6  ;;  %v1439_v9 = vsub.f32 %v1393_v11, %v1435_v6  ;;  %v4487_v34 = vld [vmem:[#allocation2] sm:$0xff] }
 0xaa1   : > { %v1510_v33 = vrot.slane %v3167_v30, %v5069_v28  ;;  %v1479_v35 = vmul.f32 %v4487_v34, %v1478_v31  ;;  %v1610_v30 = vld [vmem:[#allocation13 + $0x130] sm:$0xff]  ;;  %v1613_v34 = vld [vmem:[#allocation13 + $0x148] sm:$0xff] }
 0xaa2   : > { %s1429_s16 = ssub.f32 %s1427_s22, %s1428_s20 }
 0xaa4   : > { %s1430_s0 = smax.f32 %s4737_s14, %s1429_s16 }
 0xaa5   : > { %s1431_s13 = sadd.f32 1e-13, %s1430_s0 }
 0xaa7   : > { %v1432_v2 = vstv %s1431_s13 }
 0xaa8   : > { %4471 = vrsqrt.f32 %v1432_v2 }
 0xab2   : > { %v4472_v5 = vpop.eup %4471 }
 0xab3   : > { %4314 = vpush %v4472_v5 }
 0xae4   : > { %s4315_s19 = spop %4314 }
 0xae5   : > { %v1440_v10 = vstv %s4315_s19 }
 0xae6   : > { %v1441_v4 = vmul.f32 %v1440_v10, %v1436_v7  ;;  %v1442_v12 = vmul.f32 %v1440_v10, %v1437_v8  ;;  %v1443_v13 = vmul.f32 %v1440_v10, %v1438_v38  ;;  %v1444_v40 = vmul.f32 %v1440_v10, %v1439_v9 }
 0xae8   : > { %v1451_v15 = vmul.f32 %v3165_v1, %v1441_v4  ;;  %v1452_v16 = vmul.f32 %v3165_v1, %v1442_v12  ;;  %v1453_v17 = vmul.f32 %v3165_v1, %v1443_v13  ;;  %v1454_v18 = vmul.f32 %v3165_v1, %v1444_v40 }
 0xaea   : > { %v1461_v21 = vadd.f32 %v3166_v14, %v1451_v15  ;;  %v1462_v22 = vadd.f32 %v3166_v14, %v1452_v16  ;;  %v1463_v50 = vadd.f32 %v3166_v14, %v1453_v17  ;;  %v1464_v51 = vadd.f32 %v3166_v14, %v1454_v18  ;;  %v1604_v14 = vld [vmem:[#allocation13 + $0x100] sm:$0xff]  ;;  %v1605_v15 = vld [vmem:[#allocation13 + $0x108] sm:$0xff]  ;;  %v1606_v16 = vld [vmem:[#allocation13 + $0x110] sm:$0xff] }
 0xaeb   : > { %v4062_v17 = vpack.c.bf16 %v1605_v15, %v1604_v14  ;;  %v1607_v18 = vld [vmem:[#allocation13 + $0x118] sm:$0xff]  ;;  %v1718_v14 = vld [vmem:[#allocation8 + $0x1d0] sm:$0xff]  ;;  %v1719_v15 = vld [vmem:[#allocation8 + $0x1d8] sm:$0xff] }
 0xaec   : > { %1468 = vst [vmem:[#allocation2 + $0x20] sm:$0xff] %v1464_v51  ;;  %1465 = vst [vmem:[#allocation2 + $0x8] sm:$0xff] %v1461_v21  ;;  %v1480_v54 = vmul.f32 %v1478_v31, %v1461_v21  ;;  %v1481_v39 = vmul.f32 %v1478_v31, %v1462_v22  ;;  %v1482_v43 = vmul.f32 %v1478_v31, %v1463_v50  ;;  %v1611_v31 = vld [vmem:[#allocation13 + $0x138] sm:$0xff] }
 0xaed   : > { %1466 = vst [vmem:[#allocation2 + $0x10] sm:$0xff] %v1462_v22  ;;  %1467 = vst [vmem:[#allocation2 + $0x18] sm:$0xff] %v1463_v50  ;;  %v1511_v45 = vmul.f32 %v1510_v33, %v1461_v21  ;;  %v1512_v46 = vmul.f32 %v1510_v33, %v1462_v22  ;;  %v1513_v52 = vmul.f32 %v1510_v33, %v1463_v50  ;;  %v1608_v22 = vld [vmem:[#allocation13 + $0x120] sm:$0xff]  ;;  %v1609_v50 = vld [vmem:[#allocation13 + $0x128] sm:$0xff]  ;;  %4063 = vmatprep.subr.bf16.mxu1 %v4062_v17 }
 0xaee   : > { %v1514_v56 = vmul.f32 %v1510_v33, %v1464_v51  ;;  %v4066_v21 = vpack.c.bf16 %v1607_v18, %v1606_v16  ;;  %4065 = vmatpush3.bf16.msra.mxu1 %v4062_v17  ;;  %v4070_v51 = vpack.c.bf16 %v1609_v50, %v1608_v22  ;;  %v1612_v33 = vld [vmem:[#allocation13 + $0x140] sm:$0xff]  ;;  %v4114_v16 = vpack.c.bf16 %v1719_v15, %v1718_v14  ;;  %v1720_v17 = vld [vmem:[#allocation8 + $0x1e0] sm:$0xff] }
 0xaef   : > { %v1721_v18 = vld [vmem:[#allocation8 + $0x1e8] sm:$0xff] }
 0xaf0   : > { %4067 = vmatprep.subr.bf16.mxu1 %v4066_v21 }
 0xaf2   : > { %4069 = vmatpush3.bf16.msra.mxu1 %v4066_v21  ;;  %v4118_v21 = vpack.c.bf16 %v1721_v18, %v1720_v17 }
 0xaf3   : > { %v1487_v36 = vld [vmem:[#allocation2 + $0x4] sm:$0xff]  ;;  %4071 = vmatprep.subr.bf16.mxu1 %v4070_v51 }
 0xaf4   : > { %v1488_v55 = vld [vmem:[#allocation2 + $0xc] sm:$0xff]  ;;  %v1489_v37 = vld [vmem:[#allocation2 + $0x14] sm:$0xff]  ;;  %v1490_v3 = vld [vmem:[#allocation2 + $0x1c] sm:$0xff]  ;;  %v1495_v11 = vmul.f32 %v1494_v32, %v1487_v36 }
 0xaf5   : > { %v1496_v41 = vmul.f32 %v1494_v32, %v1488_v55  ;;  %v1497_v42 = vmul.f32 %v1494_v32, %v1489_v37  ;;  %v1498_v44 = vmul.f32 %v1494_v32, %v1490_v3  ;;  %v4074_v32 = vpack.c.bf16 %v1611_v31, %v1610_v30  ;;  %v1615_v36 = vld [vmem:[#allocation13 + $0x158] sm:$0xff] }
 0xaf6   : > { %v1499_v47 = vadd.f32 %v1495_v11, %v1479_v35  ;;  %4073 = vmatpush3.bf16.msra.mxu1 %v4070_v51  ;;  %v4078_v35 = vpack.c.bf16 %v1613_v34, %v1612_v33  ;;  %v3170_v33 = vld [vmem:[%s5440_s6 + $0x2] ss:$0 sm:$0xff] }
 0xaf7   : > { %v1500_v48 = vadd.f32 %v1496_v41, %v1480_v54  ;;  %v1501_v49 = vadd.f32 %v1497_v42, %v1481_v39  ;;  %v1502_v53 = vadd.f32 %v1498_v44, %v1482_v43  ;;  %4075 = vmatprep.subr.bf16.mxu1 %v4074_v32  ;;  %v1614_v54 = vld [vmem:[#allocation13 + $0x150] sm:$0xff]  ;;  %v1616_v42 = vld [vmem:[#allocation13 + $0x160] sm:$0xff]  ;;  %v1617_v43 = vld [vmem:[#allocation13 + $0x168] sm:$0xff] }
 0xaf8   : > { %v1515_v24 = vadd.f32 %v1511_v45, %v1499_v47  ;;  %v4082_v55 = vpack.c.bf16 %v1615_v36, %v1614_v54 }
 0xaf9   : > { %v1516_v58 = vadd.f32 %v1512_v46, %v1500_v48  ;;  %v1517_v59 = vadd.f32 %v1513_v52, %v1501_v49  ;;  %v1518_v60 = vadd.f32 %v1514_v56, %v1502_v53  ;;  %v4086_v46 = vpack.c.bf16 %v1617_v43, %v1616_v42  ;;  %v1618_v49 = vld [vmem:[#allocation13 + $0x170] sm:$0xff]  ;;  %v1619_v52 = vld [vmem:[#allocation13 + $0x178] sm:$0xff]  ;;  %v1722_v43 = vld [vmem:[#allocation8 + $0x1f0] sm:$0xff] }
 0xafa   : > { %vm1519_vm4 = vcmp.ge.f32.partialorder %v1515_v24, 0.0  ;;  %v1524_v61 = vmul.f32 %v1523_v57, %v1515_v24  ;;  %4077 = vmatpush3.bf16.msra.mxu1 %v4074_v32 }
 0xafb   : > { %vm1520_vm5 = vcmp.ge.f32.partialorder %v1516_v58, 0.0  ;;  %vm1521_vm6 = vcmp.ge.f32.partialorder %v1517_v59, 0.0  ;;  %v1525_v62 = vmul.f32 %v1523_v57, %v1516_v58  ;;  %v1526_v63 = vmul.f32 %v1523_v57, %v1517_v59  ;;  %4079 = vmatprep.subr.bf16.mxu1 %v4078_v35 }
 0xafc   : > { %v1527_v0 = vmul.f32 %v1523_v57, %v1518_v60  ;;  %vm1522_vm7 = vcmp.ge.f32.partialorder %v1518_v60, 0.0  ;;  %v5185_v25 = vsel %vm1519_vm4, %v1515_v24, %v1524_v61  ;;  %v4090_v57 = vpack.c.bf16 %v1619_v52, %v1618_v49  ;;  %v1709_v61 = vld [vmem:[#allocation8 + $0x188] sm:$0xff] }
 0xafd   : > { %v5187_v2 = vsel %vm1520_vm5, %v1516_v58, %v1525_v62  ;;  %v5189_v5 = vsel %vm1521_vm6, %v1517_v59, %v1526_v63  ;;  %v1548_v6 = vmul.f32 %v5185_v25, %v5185_v25  ;;  %v1710_v62 = vld [vmem:[#allocation8 + $0x190] sm:$0xff] }
 0xafe   : > { %v1536_v7 = vadd.f32 %v5187_v2, %v5185_v25  ;;  %v1549_v8 = vmul.f32 %v5187_v2, %v5187_v2  ;;  %v5197_v38 = vsel %vm1522_vm7, %v1518_v60, %v1527_v0  ;;  %v1550_v1 = vmul.f32 %v5189_v5, %v5189_v5  ;;  %4081 = vmatpush3.bf16.msra.mxu1 %v4078_v35  ;;  %v1708_v60 = vld [vmem:[#allocation8 + $0x180] sm:$0xff]  ;;  %v1711_v0 = vld [vmem:[#allocation8 + $0x198] sm:$0xff] }
 0xaff   : > { %v1551_v12 = vmul.f32 %v5197_v38, %v5197_v38  ;;  %4083 = vmatprep.subr.bf16.mxu1 %v4082_v55  ;;  %v4094_v63 = vpack.c.bf16 %v1709_v61, %v1708_v60 }
 0xb00   : > { %v1537_v9 = vadd.f32 %v1536_v7, %v5189_v5  ;;  %v1552_v10 = vadd.f32 %v1549_v8, %v1548_v6  ;;  %v4098_v6 = vpack.c.bf16 %v1711_v0, %v1710_v62  ;;  %v1712_v7 = vld [vmem:[#allocation8 + $0x1a0] sm:$0xff]  ;;  %v1713_v8 = vld [vmem:[#allocation8 + $0x1a8] sm:$0xff] }
 0xb01   : > { %4095 = vmatprep.subr.bf16.mxu0 %v4094_v63 }
 0xb02   : > { %v1538_v4 = vadd.f32 %v1537_v9, %v5197_v38  ;;  %v1553_v13 = vadd.f32 %v1552_v10, %v1550_v1  ;;  %4085 = vmatpush3.bf16.msra.mxu1 %v4082_v55  ;;  %4097 = vmatpush3.bf16.msra.mxu0 %v4094_v63  ;;  %v4102_v9 = vpack.c.bf16 %v1713_v8, %v1712_v7  ;;  %v1714_v1 = vld [vmem:[#allocation8 + $0x1b0] sm:$0xff]  ;;  %v1715_v10 = vld [vmem:[#allocation8 + $0x1b8] sm:$0xff] }
 0xb03   : > { %4087 = vmatprep.subr.bf16.mxu1 %v4086_v46  ;;  %4099 = vmatprep.subr.bf16.mxu0 %v4098_v6 }
 0xb04   : > { %1539 = vadd.xlane.f32.xlu0 %v1538_v4  ;;  %v1554_v40 = vadd.f32 %v1553_v13, %v1551_v12  ;;  %v4106_v4 = vpack.c.bf16 %v1715_v10, %v1714_v1  ;;  %v1716_v12 = vld [vmem:[#allocation8 + $0x1c0] sm:$0xff]  ;;  %v1717_v13 = vld [vmem:[#allocation8 + $0x1c8] sm:$0xff] }
 0xb06   : > { %1555 = vadd.xlane.f32.xlu1 %v1554_v40  ;;  %4089 = vmatpush3.bf16.msra.mxu1 %v4086_v46  ;;  %v4110_v40 = vpack.c.bf16 %v1717_v13, %v1716_v12 }
 0xb07   : > { %4091 = vmatprep.subr.bf16.mxu1 %v4090_v57  ;;  %4101 = vmatpush3.bf16.msra.mxu0 %v4098_v6 }
 0xb08   : > { %4103 = vmatprep.subr.bf16.mxu0 %v4102_v9 }
 0xb0a   : > { %4093 = vmatpush3.bf16.msra.mxu1 %v4090_v57 }
 0xb0b   : > { %4105 = vmatpush3.bf16.msra.mxu0 %v4102_v9 }
 0xb0c   : > { %4107 = vmatprep.subr.bf16.mxu0 %v4106_v4 }
 0xb0f   : > { %4109 = vmatpush3.bf16.msra.mxu0 %v4106_v4 }
 0xb10   : > { %4111 = vmatprep.subr.bf16.mxu0 %v4110_v40 }
 0xb13   : > { %4113 = vmatpush3.bf16.msra.mxu0 %v4110_v40 }
 0xb14   : > { %4115 = vmatprep.subr.bf16.mxu0 %v4114_v16 }
 0xb17   : > { %4117 = vmatpush3.bf16.msra.mxu0 %v4114_v16 }
 0xb18   : > { %4119 = vmatprep.subr.bf16.mxu0 %v4118_v21 }
 0xb1b   : > { %4121 = vmatpush3.bf16.msra.mxu0 %v4118_v21 }
 0xb91   : > { %v1540_v37 = vpop.xlane.xlu0 %1539 }
 0xb92   : > { %v1541_v39 = vrot.slane %v1540_v37, 4 }
 0xb93   : > { %v1556_v3 = vpop.xlane.xlu1 %1555 }
 0xb94   : > { %v1542_v11 = vadd.f32 %v1541_v39, %v1540_v37  ;;  %v1557_v41 = vrot.slane %v1556_v3, 4  ;;  %v3171_v39 = vld [vmem:[%s5441_s7 + $0x2] ss:$0 sm:$0xff] }
 0xb96   : > { %v1543_v44 = vrot.slane %v1542_v11, 2  ;;  %v1558_v45 = vadd.f32 %v1557_v41, %v1556_v3 }
 0xb98   : > { %v1559_v47 = vrot.slane %v1558_v45, 2  ;;  %v1544_v48 = vadd.f32 %v1543_v44, %v1542_v11  ;;  %v1723_v44 = vld [vmem:[#allocation8 + $0x1f8] sm:$0xff] }
 0xb9a   : > { %v1545_v53 = vrot.slane %v1544_v48, 1  ;;  %v1560_v56 = vadd.f32 %v1559_v47, %v1558_v45  ;;  %v4122_v45 = vpack.c.bf16 %v1723_v44, %v1722_v43  ;;  %v3175_v43 = vld [vmem:[#allocation11 + $0x3] ss:$0 sm:$0xff] }
 0xb9c   : > { %v1546_v24 = vadd.f32 %v1545_v53, %v1544_v48  ;;  %v1561_v58 = vrot.slane %v1560_v56, 1  ;;  %4123 = vmatprep.subr.bf16.mxu0 %v4122_v45 }
 0xb9d   : > { %4125 = vmatpush3.bf16.msra.mxu0 %v4122_v45 }
 0xb9e   : > { %4316 = vpush %v1546_v24  ;;  %v1562_v59 = vadd.f32 %v1561_v58, %v1560_v56 }
 0xba0   : > { %4318 = vpush %v1562_v59 }
 0xbcf   : > { %s4317_s23 = spop %4316 }
 0xbd0   : > { %s1564_s25 = smul.f32 0.0009765625, %s4317_s23 }
 0xbd1   : > { %s4319_s26 = spop %4318 }
 0xbd2   : > { %s1566_s20 = smul.f32 %s1564_s25, %s1564_s25  ;;  %v1573_v51 = vstv %s1564_s25  ;;  %s3172_s25 = sld [smem:[#allocation3 + $0x180]] }
 0xbd3   : > { %s1565_s22 = smul.f32 0.0009765625, %s4319_s26  ;;  %v1574_v30 = vsub.f32 %v5185_v25, %v1573_v51  ;;  %v1575_v31 = vsub.f32 %v5187_v2, %v1573_v51  ;;  %v1576_v32 = vsub.f32 %v5189_v5, %v1573_v51  ;;  %v1577_v34 = vsub.f32 %v5197_v38, %v1573_v51 }
 0xbd5   : > { %s1567_s16 = ssub.f32 %s1565_s22, %s1566_s20 }
 0xbd7   : > { %s1568_s0 = smax.f32 %s4737_s14, %s1567_s16 }
 0xbd8   : > { %s1569_s13 = sadd.f32 1e-13, %s1568_s0 }
 0xbda   : > { %v1570_v22 = vstv %s1569_s13 }
 0xbdb   : > { %4473 = vrsqrt.f32 %v1570_v22 }
 0xbe5   : > { %v4474_v50 = vpop.eup %4473 }
 0xbe6   : > { %4320 = vpush %v4474_v50 }
 0xc17   : > { %s4321_s19 = spop %4320 }
 0xc18   : > { %v1578_v35 = vstv %s4321_s19 }
 0xc19   : > { %v1579_v54 = vmul.f32 %v1578_v35, %v1574_v30  ;;  %v1580_v36 = vmul.f32 %v1578_v35, %v1575_v31  ;;  %v1581_v55 = vmul.f32 %v1578_v35, %v1576_v32  ;;  %v1582_v37 = vmul.f32 %v1578_v35, %v1577_v34 }
 0xc1b   : > { %v1590_v25 = vmul.f32 %v3170_v33, %v1580_v36  ;;  %v1589_v3 = vmul.f32 %v3170_v33, %v1579_v54  ;;  %v1591_v2 = vmul.f32 %v3170_v33, %v1581_v55  ;;  %v1592_v41 = vmul.f32 %v3170_v33, %v1582_v37 }
 0xc1d   : > { %v1599_v11 = vadd.f32 %v3171_v39, %v1589_v3  ;;  %v1600_v5 = vadd.f32 %v3171_v39, %v1590_v25  ;;  %v1601_v42 = vadd.f32 %v3171_v39, %v1591_v2  ;;  %v1602_v38 = vadd.f32 %v3171_v39, %v1592_v41  ;;  %v3174_v2 = vld [vmem:[#allocation10 + $0x3] ss:$0 sm:$0xff] }
 0xc1f   : > { %3668 = vmatprep.mubr.f32.mxu1 %v1599_v11 }
 0xc20   : > { %3669 = vmatmul.mubr.f32.vlgmr.msra.gmra.mrb[8].mxu1 %v1600_v5 }
 0xc21   : > { %3671 = vmatprep.mubr.f32.mxu1 %v1601_v42 }
 0xc24   : > { %3672 = vmatmul.mubr.f32.gmra.mrb[10].mxu1 %v1602_v38 }
 0xcf3   : > { %v3670_v46 = vpop.f32.mrb[8].mxu1 }
 0xcf4   : > { %v1686_v47 = vpop.f32.mrb[9].mxu1  ;;  %v5220_v49 = vadd.f32 %v3670_v46, %v5166_v20 }
 0xcf5   : > { %v5217_v48 = vadd.f32 %v1686_v47, %v5163_v19  ;;  %v1813_v19 = vstv %s3172_s25  ;;  %s3182_s25 = sld [smem:[#allocation3 + $0x201]] }
 0xcf7   : > { %v3673_v52 = vpop.f32.mrb[10].mxu1  ;;  %3706 = vmatprep.mubr.f32.mxu0 %v5217_v48 }
 0xcf8   : > { %v1696_v53 = vpop.f32.mrb[11].mxu1  ;;  %3707 = vmatmul.mubr.f32.vlgmr.msra.gmra.mrb[12].mxu0 %v5220_v49  ;;  %v5228_v57 = vadd.f32 %v3673_v52, %v5174_v29 }
 0xcf9   : > { %v5225_v56 = vadd.f32 %v1696_v53, %v5171_v23 }
 0xcfb   : > { %3709 = vmatprep.mubr.f32.mxu0 %v5225_v56 }
 0xcfc   : > { %3710 = vmatmul.mubr.f32.gmra.mrb[14].mxu0 %v5228_v57 }
 0xdcb   : > { %v3708_v20 = vpop.f32.mrb[12].mxu0 }
 0xdcc   : > { %vm1810_vm8 = vcmp.ge.f32.partialorder %v3708_v20, 0.0  ;;  %v1815_v24 = vmul.f32 %v3708_v20, %v1813_v19  ;;  %v1790_v58 = vpop.f32.mrb[13].mxu0 }
 0xdcd   : > { %vm1809_vm9 = vcmp.ge.f32.partialorder %v1790_v58, 0.0  ;;  %v1814_v59 = vmul.f32 %v1813_v19, %v1790_v58 }
 0xdce   : > { %v1819_v60 = vsel %vm1810_vm8, %v3708_v20, %v1815_v24  ;;  %v3176_v24 = vld [vmem:[%s5439_s5 + $0xc] sm:$0x7] }
 0xdcf   : > { %v1818_v61 = vsel %vm1809_vm9, %v1790_v58, %v1814_v59  ;;  %v3711_v62 = vpop.f32.mrb[14].mxu0  ;;  %v1839_v23 = vmul.f32 %v1819_v60, %v1819_v60  ;;  %v1906_v58 = vrot.slane %v3176_v24, %v5065_v26  ;;  %v1922_v59 = vrot.slane %v3176_v24, %v5067_v27 }
 0xdd0   : > { %v1838_v63 = vmul.f32 %v1818_v61, %v1818_v61  ;;  %vm1812_vm10 = vcmp.ge.f32.partialorder %v3711_v62, 0.0  ;;  %v1817_v29 = vmul.f32 %v3711_v62, %v1813_v19  ;;  %v1800_v0 = vpop.f32.mrb[15].mxu0  ;;  %v1826_v7 = vadd.f32 %v1819_v60, %v1818_v61 }
 0xdd1   : > { %vm1811_vm11 = vcmp.ge.f32.partialorder %v1800_v0, 0.0  ;;  %v1816_v6 = vmul.f32 %v1813_v19, %v1800_v0 }
 0xdd2   : > { %v1821_v8 = vsel %vm1812_vm10, %v3711_v62, %v1817_v29  ;;  %v1842_v4 = vadd.f32 %v1839_v23, %v1838_v63  ;;  %v1938_v23 = vrot.slane %v3176_v24, %v5069_v28  ;;  %v2036_v24 = vld [vmem:[#allocation13 + $0x1a0] sm:$0xff] }
 0xdd3   : > { %v1820_v9 = vsel %vm1811_vm11, %v1800_v0, %v1816_v6  ;;  %v1841_v13 = vmul.f32 %v1821_v8, %v1821_v8 }
 0xdd4   : > { %v1827_v1 = vadd.f32 %v1826_v7, %v1820_v9  ;;  %v1840_v10 = vmul.f32 %v1820_v9, %v1820_v9 }
 0xdd6   : > { %v1828_v12 = vadd.f32 %v1827_v1, %v1821_v8  ;;  %v1843_v40 = vadd.f32 %v1842_v4, %v1840_v10 }
 0xdd8   : > { %1829 = vadd.xlane.f32.xlu0 %v1828_v12  ;;  %v1844_v14 = vadd.f32 %v1843_v40, %v1841_v13 }
 0xdda   : > { %1845 = vadd.xlane.f32.xlu1 %v1844_v14  ;;  %v1951_v14 = vstv %s3173_s27 }
 0xe65   : > { %v1830_v15 = vpop.xlane.xlu0 %1829 }
 0xe66   : > { %v1831_v16 = vrot.slane %v1830_v15, 4 }
 0xe67   : > { %v1846_v17 = vpop.xlane.xlu1 %1845 }
 0xe68   : > { %v1832_v18 = vadd.f32 %v1831_v16, %v1830_v15  ;;  %v1847_v21 = vrot.slane %v1846_v17, 4 }
 0xe6a   : > { %v1833_v22 = vrot.slane %v1832_v18, 2  ;;  %v1848_v50 = vadd.f32 %v1847_v21, %v1846_v17 }
 0xe6c   : > { %v1849_v51 = vrot.slane %v1848_v50, 2  ;;  %v1834_v30 = vadd.f32 %v1833_v22, %v1832_v18 }
 0xe6e   : > { %v1835_v31 = vrot.slane %v1834_v30, 1  ;;  %v1850_v32 = vadd.f32 %v1849_v51, %v1848_v50 }
 0xe70   : > { %v1836_v33 = vadd.f32 %v1835_v31, %v1834_v30  ;;  %v1851_v34 = vrot.slane %v1850_v32, 1 }
 0xe72   : > { %4322 = vpush %v1836_v33  ;;  %v1852_v35 = vadd.f32 %v1851_v34, %v1850_v32 }
 0xe74   : > { %4324 = vpush %v1852_v35 }
 0xea3   : > { %s4323_s26 = spop %4322 }
 0xea4   : > { %s1854_s20 = smul.f32 0.0009765625, %s4323_s26 }
 0xea5   : > { %s4325_s22 = spop %4324 }
 0xea6   : > { %s1856_s16 = smul.f32 %s1854_s20, %s1854_s20  ;;  %v1863_v55 = vstv %s1854_s20 }
 0xea7   : > { %s1855_s0 = smul.f32 0.0009765625, %s4325_s22  ;;  %v1864_v37 = vsub.f32 %v1818_v61, %v1863_v55  ;;  %v1865_v39 = vsub.f32 %v1819_v60, %v1863_v55  ;;  %v1866_v25 = vsub.f32 %v1820_v9, %v1863_v55  ;;  %v1867_v3 = vsub.f32 %v1821_v8, %v1863_v55 }
 0xea9   : > { %s1857_s13 = ssub.f32 %s1855_s0, %s1856_s16 }
 0xeab   : > { %s1858_s19 = smax.f32 %s4737_s14, %s1857_s13 }
 0xeac   : > { %s1859_s2 = sadd.f32 1e-13, %s1858_s19 }
 0xeae   : > { %v1860_v54 = vstv %s1859_s2 }
 0xeaf   : > { %4475 = vrsqrt.f32 %v1860_v54 }
 0xeb9   : > { %v4476_v36 = vpop.eup %4475 }
 0xeba   : > { %4326 = vpush %v4476_v36 }
 0xeeb   : > { %s4327_s21 = spop %4326 }
 0xeec   : > { %v1868_v11 = vstv %s4327_s21 }
 0xeed   : > { %v1869_v5 = vmul.f32 %v1868_v11, %v1864_v37  ;;  %v1870_v41 = vmul.f32 %v1868_v11, %v1865_v39  ;;  %v1871_v42 = vmul.f32 %v1868_v11, %v1866_v25  ;;  %v1872_v38 = vmul.f32 %v1868_v11, %v1867_v3 }
 0xeef   : > { %v1879_v44 = vmul.f32 %v3174_v2, %v1869_v5  ;;  %v1880_v45 = vmul.f32 %v3174_v2, %v1870_v41  ;;  %v1881_v46 = vmul.f32 %v3174_v2, %v1871_v42  ;;  %v1882_v47 = vmul.f32 %v3174_v2, %v1872_v38 }
 0xef1   : > { %v1889_v52 = vadd.f32 %v3175_v43, %v1879_v44  ;;  %v1890_v53 = vadd.f32 %v3175_v43, %v1880_v45  ;;  %v1891_v19 = vadd.f32 %v3175_v43, %v1881_v46  ;;  %v1892_v20 = vadd.f32 %v3175_v43, %v1882_v47  ;;  %v2032_v46 = vld [vmem:[#allocation13 + $0x180] sm:$0xff]  ;;  %v2033_v47 = vld [vmem:[#allocation13 + $0x188] sm:$0xff] }
 0xef3   : > { %1896 = vst [vmem:[#allocation2 + $0x20] sm:$0xff] %v1892_v20  ;;  %1893 = vst [vmem:[#allocation2 + $0x8] sm:$0xff] %v1889_v52  ;;  %v1939_v17 = vmul.f32 %v1938_v23, %v1889_v52  ;;  %v1940_v18 = vmul.f32 %v1938_v23, %v1890_v53  ;;  %v1941_v50 = vmul.f32 %v1938_v23, %v1891_v19  ;;  %v2034_v52 = vld [vmem:[#allocation13 + $0x190] sm:$0xff] }
 0xef4   : > { %1894 = vst [vmem:[#allocation2 + $0x10] sm:$0xff] %v1890_v53  ;;  %1895 = vst [vmem:[#allocation2 + $0x18] sm:$0xff] %v1891_v19  ;;  %v1942_v51 = vmul.f32 %v1938_v23, %v1892_v20  ;;  %v4126_v53 = vpack.c.bf16 %v2033_v47, %v2032_v46  ;;  %v2035_v19 = vld [vmem:[#allocation13 + $0x198] sm:$0xff]  ;;  %v2040_v23 = vld [vmem:[#allocation13 + $0x1c0] sm:$0xff] }
 0xef5   : > { %v4130_v20 = vpack.c.bf16 %v2035_v19, %v2034_v52  ;;  %v2146_v46 = vld [vmem:[#allocation8 + $0x250] sm:$0xff]  ;;  %v2147_v47 = vld [vmem:[#allocation8 + $0x258] sm:$0xff]  ;;  %v2149_v19 = vld [vmem:[#allocation8 + $0x268] sm:$0xff] }
 0xef6   : > { %4127 = vmatprep.subr.bf16.mxu1 %v4126_v53  ;;  %v4178_v52 = vpack.c.bf16 %v2147_v47, %v2146_v46 }
 0xef7   : > { %4129 = vmatpush3.bf16.msra.mxu1 %v4126_v53  ;;  %v2148_v53 = vld [vmem:[#allocation8 + $0x260] sm:$0xff] }
 0xef8   : > { %4131 = vmatprep.subr.bf16.mxu1 %v4130_v20 }
 0xefa   : > { %v1899_v60 = vld [vmem:[#allocation2 + $0x6] sm:$0xff] }
 0xefb   : > { %v1900_v61 = vld [vmem:[#allocation2 + $0xe] sm:$0xff]  ;;  %v1901_v62 = vld [vmem:[#allocation2 + $0x16] sm:$0xff]  ;;  %v1902_v63 = vld [vmem:[#allocation2 + $0x1e] sm:$0xff]  ;;  %v1907_v29 = vmul.f32 %v1906_v58, %v1899_v60  ;;  %4133 = vmatpush3.bf16.msra.mxu1 %v4130_v20  ;;  %v4182_v20 = vpack.c.bf16 %v2149_v19, %v2148_v53 }
 0xefc   : > { %v1908_v0 = vmul.f32 %v1906_v58, %v1900_v61  ;;  %v1909_v6 = vmul.f32 %v1906_v58, %v1901_v62  ;;  %v1915_v7 = vld [vmem:[#allocation2 + $0x7] sm:$0xff]  ;;  %v1916_v8 = vld [vmem:[#allocation2 + $0xf] sm:$0xff]  ;;  %v1910_v9 = vmul.f32 %v1906_v58, %v1902_v63  ;;  %v1917_v1 = vld [vmem:[#allocation2 + $0x17] sm:$0xff] }
 0xefd   : > { %v1918_v10 = vld [vmem:[#allocation2 + $0x1f] sm:$0xff]  ;;  %v1923_v4 = vmul.f32 %v1922_v59, %v1915_v7  ;;  %v1924_v12 = vmul.f32 %v1922_v59, %v1916_v8  ;;  %v1925_v13 = vmul.f32 %v1922_v59, %v1917_v1  ;;  %v2039_v61 = vld [vmem:[#allocation13 + $0x1b8] sm:$0xff] }
 0xefe   : > { %v1926_v40 = vmul.f32 %v1922_v59, %v1918_v10  ;;  %v2037_v58 = vld [vmem:[#allocation13 + $0x1a8] sm:$0xff]  ;;  %v2038_v60 = vld [vmem:[#allocation13 + $0x1b0] sm:$0xff] }
 0xeff   : > { %v1927_v15 = vadd.f32 %v1923_v4, %v1907_v29  ;;  %v1928_v16 = vadd.f32 %v1924_v12, %v1908_v0  ;;  %v1929_v21 = vadd.f32 %v1925_v13, %v1909_v6  ;;  %v4134_v59 = vpack.c.bf16 %v2037_v58, %v2036_v24  ;;  %v2041_v63 = vld [vmem:[#allocation13 + $0x1c8] sm:$0xff]  ;;  %v2042_v0 = vld [vmem:[#allocation13 + $0x1d0] sm:$0xff]  ;;  %v2043_v6 = vld [vmem:[#allocation13 + $0x1d8] sm:$0xff] }
 0xf00   : > { %v1930_v22 = vadd.f32 %v1926_v40, %v1910_v9  ;;  %v4138_v62 = vpack.c.bf16 %v2039_v61, %v2038_v60  ;;  %v4142_v29 = vpack.c.bf16 %v2041_v63, %v2040_v23  ;;  %v4146_v7 = vpack.c.bf16 %v2043_v6, %v2042_v0  ;;  %v2044_v12 = vld [vmem:[#allocation13 + $0x1e0] sm:$0xff]  ;;  %v2045_v13 = vld [vmem:[#allocation13 + $0x1e8] sm:$0xff]  ;;  %v3179_v23 = vld [vmem:[%s5440_s6 + $0x3] ss:$0 sm:$0xff] }
 0xf01   : > { %v1943_v30 = vadd.f32 %v1939_v17, %v1927_v15  ;;  %v1944_v31 = vadd.f32 %v1940_v18, %v1928_v16  ;;  %v1945_v32 = vadd.f32 %v1941_v50, %v1929_v21  ;;  %4135 = vmatprep.subr.bf16.mxu1 %v4134_v59  ;;  %v2046_v18 = vld [vmem:[#allocation13 + $0x1f0] sm:$0xff]  ;;  %v2047_v21 = vld [vmem:[#allocation13 + $0x1f8] sm:$0xff] }
 0xf02   : > { %v1946_v33 = vadd.f32 %v1942_v51, %v1930_v22  ;;  %4137 = vmatpush3.bf16.msra.mxu1 %v4134_v59  ;;  %v4154_v50 = vpack.c.bf16 %v2047_v21, %v2046_v18 }
 0xf03   : > { %vm1947_vm12 = vcmp.ge.f32.partialorder %v1943_v30, 0.0  ;;  %vm1948_vm13 = vcmp.ge.f32.partialorder %v1944_v31, 0.0  ;;  %v1952_v34 = vmul.f32 %v1951_v14, %v1943_v30  ;;  %v1953_v35 = vmul.f32 %v1951_v14, %v1944_v31  ;;  %4139 = vmatprep.subr.bf16.mxu1 %v4138_v62 }
 0xf04   : > { %vm1949_vm14 = vcmp.ge.f32.partialorder %v1945_v32, 0.0  ;;  %v1954_v54 = vmul.f32 %v1951_v14, %v1945_v32  ;;  %v1955_v36 = vmul.f32 %v1951_v14, %v1946_v33  ;;  %vm1950_vm15 = vcmp.ge.f32.partialorder %v1946_v33, 0.0 }
 0xf05   : > { %v5239_v55 = vsel %vm1947_vm12, %v1943_v30, %v1952_v34  ;;  %v5241_v37 = vsel %vm1948_vm13, %v1944_v31, %v1953_v35  ;;  %v4150_v14 = vpack.c.bf16 %v2045_v13, %v2044_v12  ;;  %v2137_v34 = vld [vmem:[#allocation8 + $0x208] sm:$0xff]  ;;  %v2138_v35 = vld [vmem:[#allocation8 + $0x210] sm:$0xff] }
 0xf06   : > { %v5243_v39 = vsel %vm1949_vm14, %v1945_v32, %v1954_v54  ;;  %v1964_v25 = vadd.f32 %v5241_v37, %v5239_v55  ;;  %v1976_v3 = vmul.f32 %v5239_v55, %v5239_v55  ;;  %v1977_v2 = vmul.f32 %v5241_v37, %v5241_v37  ;;  %4141 = vmatpush3.bf16.msra.mxu1 %v4138_v62  ;;  %v2150_v13 = vld [vmem:[#allocation8 + $0x270] sm:$0xff] }
 0xf07   : > { %v5251_v11 = vsel %vm1950_vm15, %v1946_v33, %v1955_v36  ;;  %v1978_v41 = vmul.f32 %v5243_v39, %v5243_v39  ;;  %4143 = vmatprep.subr.bf16.mxu1 %v4142_v29  ;;  %v2136_v33 = vld [vmem:[#allocation8 + $0x200] sm:$0xff]  ;;  %v2139_v36 = vld [vmem:[#allocation8 + $0x218] sm:$0xff] }
 0xf08   : > { %v1965_v5 = vadd.f32 %v1964_v25, %v5243_v39  ;;  %v1980_v42 = vadd.f32 %v1977_v2, %v1976_v3  ;;  %v1979_v43 = vmul.f32 %v5251_v11, %v5251_v11  ;;  %v4158_v54 = vpack.c.bf16 %v2137_v34, %v2136_v33  ;;  %v2140_v3 = vld [vmem:[#allocation8 + $0x220] sm:$0xff]  ;;  %v2141_v2 = vld [vmem:[#allocation8 + $0x228] sm:$0xff] }
 0xf09   : > { %v4162_v25 = vpack.c.bf16 %v2139_v36, %v2138_v35 }
 0xf0a   : > { %v1966_v38 = vadd.f32 %v1965_v5, %v5251_v11  ;;  %v1981_v44 = vadd.f32 %v1980_v42, %v1978_v41  ;;  %4145 = vmatpush3.bf16.msra.mxu1 %v4142_v29  ;;  %4159 = vmatprep.subr.bf16.mxu0 %v4158_v54  ;;  %v4166_v5 = vpack.c.bf16 %v2141_v2, %v2140_v3  ;;  %v2142_v41 = vld [vmem:[#allocation8 + $0x230] sm:$0xff]  ;;  %v2143_v42 = vld [vmem:[#allocation8 + $0x238] sm:$0xff] }
 0xf0b   : > { %4147 = vmatprep.subr.bf16.mxu1 %v4146_v7  ;;  %4161 = vmatpush3.bf16.msra.mxu0 %v4158_v54 }
 0xf0c   : > { %1967 = vadd.xlane.f32.xlu0 %v1966_v38  ;;  %v1982_v45 = vadd.f32 %v1981_v44, %v1979_v43  ;;  %4163 = vmatprep.subr.bf16.mxu0 %v4162_v25  ;;  %v4170_v38 = vpack.c.bf16 %v2143_v42, %v2142_v41  ;;  %v2144_v43 = vld [vmem:[#allocation8 + $0x240] sm:$0xff]  ;;  %v2145_v44 = vld [vmem:[#allocation8 + $0x248] sm:$0xff] }
 0xf0e   : > { %1983 = vadd.xlane.f32.xlu1 %v1982_v45  ;;  %4149 = vmatpush3.bf16.msra.mxu1 %v4146_v7  ;;  %v4174_v45 = vpack.c.bf16 %v2145_v44, %v2144_v43 }
 0xf0f   : > { %4151 = vmatprep.subr.bf16.mxu1 %v4150_v14  ;;  %4165 = vmatpush3.bf16.msra.mxu0 %v4162_v25 }
 0xf10   : > { %4167 = vmatprep.subr.bf16.mxu0 %v4166_v5 }
 0xf12   : > { %4153 = vmatpush3.bf16.msra.mxu1 %v4150_v14 }
 0xf13   : > { %4155 = vmatprep.subr.bf16.mxu1 %v4154_v50  ;;  %4169 = vmatpush3.bf16.msra.mxu0 %v4166_v5 }
 0xf14   : > { %4171 = vmatprep.subr.bf16.mxu0 %v4170_v38 }
 0xf16   : > { %4157 = vmatpush3.bf16.msra.mxu1 %v4154_v50 }
 0xf17   : > { %4173 = vmatpush3.bf16.msra.mxu0 %v4170_v38 }
 0xf18   : > { %4175 = vmatprep.subr.bf16.mxu0 %v4174_v45 }
 0xf1b   : > { %4177 = vmatpush3.bf16.msra.mxu0 %v4174_v45 }
 0xf1c   : > { %4179 = vmatprep.subr.bf16.mxu0 %v4178_v52 }
 0xf1f   : > { %4181 = vmatpush3.bf16.msra.mxu0 %v4178_v52 }
 0xf20   : > { %4183 = vmatprep.subr.bf16.mxu0 %v4182_v20 }
 0xf23   : > { %4185 = vmatpush3.bf16.msra.mxu0 %v4182_v20 }
 0xf99   : > { %v1968_v8 = vpop.xlane.xlu0 %1967 }
 0xf9a   : > { %v1969_v9 = vrot.slane %v1968_v8, 4 }
 0xf9b   : > { %v1984_v10 = vpop.xlane.xlu1 %1983 }
 0xf9c   : > { %v1970_v1 = vadd.f32 %v1969_v9, %v1968_v8  ;;  %v1985_v4 = vrot.slane %v1984_v10, 4  ;;  %v3180_v9 = vld [vmem:[%s5441_s7 + $0x3] ss:$0 sm:$0xff] }
 0xf9e   : > { %v1971_v40 = vrot.slane %v1970_v1, 2  ;;  %v1986_v15 = vadd.f32 %v1985_v4, %v1984_v10 }
 0xfa0   : > { %v1972_v16 = vadd.f32 %v1971_v40, %v1970_v1  ;;  %v1987_v17 = vrot.slane %v1986_v15, 2  ;;  %v2151_v40 = vld [vmem:[#allocation8 + $0x278] sm:$0xff] }
 0xfa1   : > { %v4186_v14 = vpack.c.bf16 %v2151_v40, %v2150_v13  ;;  %v3184_v13 = vld [vmem:[#allocation11 + $0x4] ss:$0 sm:$0xff] }
 0xfa2   : > { %v1973_v22 = vrot.slane %v1972_v16, 1  ;;  %v1988_v51 = vadd.f32 %v1987_v17, %v1986_v15 }
 0xfa3   : > { %4187 = vmatprep.subr.bf16.mxu0 %v4186_v14 }
 0xfa4   : > { %v1974_v30 = vadd.f32 %v1973_v22, %v1972_v16  ;;  %v1989_v31 = vrot.slane %v1988_v51, 1  ;;  %4189 = vmatpush3.bf16.msra.mxu0 %v4186_v14 }
 0xfa6   : > { %4328 = vpush %v1974_v30  ;;  %v1990_v32 = vadd.f32 %v1989_v31, %v1988_v51 }
 0xfa8   : > { %4330 = vpush %v1990_v32 }
 0xfd7   : > { %s4329_s26 = spop %4328 }
 0xfd8   : > { %s1992_s20 = smul.f32 0.0009765625, %s4329_s26 }
 0xfd9   : > { %s4331_s16 = spop %4330 }
 0xfda   : > { %s1994_s22 = smul.f32 %s1992_s20, %s1992_s20  ;;  %v2001_v59 = vstv %s1992_s20  ;;  %s3181_s20 = sld [smem:[#allocation3 + $0x200]] }
 0xfdb   : > { %s1993_s0 = smul.f32 0.0009765625, %s4331_s16  ;;  %v2002_v60 = vsub.f32 %v5239_v55, %v2001_v59  ;;  %v2003_v61 = vsub.f32 %v5241_v37, %v2001_v59  ;;  %v2004_v62 = vsub.f32 %v5243_v39, %v2001_v59  ;;  %v2005_v63 = vsub.f32 %v5251_v11, %v2001_v59 }
 0xfdd   : > { %s1995_s13 = ssub.f32 %s1993_s0, %s1994_s22 }
 0xfdf   : > { %s1996_s19 = smax.f32 %s4737_s14, %s1995_s13 }
 0xfe0   : > { %s1997_s2 = sadd.f32 1e-13, %s1996_s19 }
 0xfe2   : > { %v1998_v24 = vstv %s1997_s2 }
 0xfe3   : > { %4477 = vrsqrt.f32 %v1998_v24 }
 0xfed   : > { %v4478_v58 = vpop.eup %4477 }
 0xfee   : > { %4332 = vpush %v4478_v58 }
0x101f   : > { %s4333_s21 = spop %4332 }
0x1020   : > { %v2006_v29 = vstv %s4333_s21 }
0x1021   : > { %v2007_v0 = vmul.f32 %v2006_v29, %v2002_v60  ;;  %v2008_v6 = vmul.f32 %v2006_v29, %v2003_v61  ;;  %v2009_v7 = vmul.f32 %v2006_v29, %v2004_v62  ;;  %v2010_v8 = vmul.f32 %v2006_v29, %v2005_v63 }
0x1023   : > { %v2018_v55 = vmul.f32 %v3179_v23, %v2008_v6  ;;  %v2017_v1 = vmul.f32 %v3179_v23, %v2007_v0  ;;  %v2019_v37 = vmul.f32 %v3179_v23, %v2009_v7  ;;  %v2020_v4 = vmul.f32 %v3179_v23, %v2010_v8 }
0x1025   : > { %v2027_v10 = vadd.f32 %v3180_v9, %v2017_v1  ;;  %v2028_v39 = vadd.f32 %v3180_v9, %v2018_v55  ;;  %v2029_v12 = vadd.f32 %v3180_v9, %v2019_v37  ;;  %v2030_v11 = vadd.f32 %v3180_v9, %v2020_v4  ;;  %v3183_v37 = vld [vmem:[#allocation10 + $0x4] ss:$0 sm:$0xff] }
0x1027   : > { %3744 = vmatprep.mubr.f32.mxu1 %v2027_v10 }
0x1028   : > { %3745 = vmatmul.mubr.f32.vlgmr.msra.gmra.mrb[12].mxu1 %v2028_v39 }
0x1029   : > { %3747 = vmatprep.mubr.f32.mxu1 %v2029_v12 }
0x102c   : > { %3748 = vmatmul.mubr.f32.gmra.mrb[14].mxu1 %v2030_v11 }
0x10fb   : > { %v3746_v15 = vpop.f32.mrb[12].mxu1 }
0x10fc   : > { %v2114_v16 = vpop.f32.mrb[13].mxu1  ;;  %v5274_v18 = vadd.f32 %v3746_v15, %v5220_v49 }
0x10fd   : > { %v5271_v17 = vadd.f32 %v2114_v16, %v5217_v48  ;;  %v2241_v48 = vstv %s3181_s20 }
0x10ff   : > { %v3749_v21 = vpop.f32.mrb[14].mxu1  ;;  %3782 = vmatprep.mubr.f32.mxu0 %v5271_v17 }
0x1100   : > { %v2124_v22 = vpop.f32.mrb[15].mxu1  ;;  %3783 = vmatmul.mubr.f32.vlgmr.msra.gmra.mrb[16].mxu0 %v5274_v18  ;;  %v5282_v51 = vadd.f32 %v3749_v21, %v5228_v57 }
0x1101   : > { %v5279_v50 = vadd.f32 %v2124_v22, %v5225_v56 }
0x1103   : > { %3785 = vmatprep.mubr.f32.mxu0 %v5279_v50 }
0x1104   : > { %3786 = vmatmul.mubr.f32.gmra.mrb[18].mxu0 %v5282_v51 }
0x11d3   : > { %v3784_v49 = vpop.f32.mrb[16].mxu0 }
0x11d4   : > { %vm2238_vm0 = vcmp.ge.f32.partialorder %v3784_v49, 0.0  ;;  %v2243_v30 = vmul.f32 %v3784_v49, %v2241_v48  ;;  %v2218_v31 = vpop.f32.mrb[17].mxu0 }
0x11d5   : > { %vm2237_vm1 = vcmp.ge.f32.partialorder %v2218_v31, 0.0  ;;  %v2242_v32 = vmul.f32 %v2241_v48, %v2218_v31 }
0x11d6   : > { %v2247_v33 = vsel %vm2238_vm0, %v3784_v49, %v2243_v30  ;;  %v3185_v30 = vld [vmem:[%s5439_s5 + $0x10] sm:$0x7] }
0x11d7   : > { %v2246_v34 = vsel %vm2237_vm1, %v2218_v31, %v2242_v32  ;;  %v3787_v35 = vpop.f32.mrb[18].mxu0  ;;  %v2267_v56 = vmul.f32 %v2247_v33, %v2247_v33  ;;  %v2334_v31 = vrot.slane %v3185_v30, %v5065_v26  ;;  %v2350_v32 = vrot.slane %v3185_v30, %v5067_v27 }
0x11d8   : > { %v2266_v54 = vmul.f32 %v2246_v34, %v2246_v34  ;;  %vm2240_vm2 = vcmp.ge.f32.partialorder %v3787_v35, 0.0  ;;  %v2245_v57 = vmul.f32 %v3787_v35, %v2241_v48  ;;  %v2228_v36 = vpop.f32.mrb[19].mxu0  ;;  %v2254_v3 = vadd.f32 %v2247_v33, %v2246_v34 }
0x11d9   : > { %vm2239_vm3 = vcmp.ge.f32.partialorder %v2228_v36, 0.0  ;;  %v2244_v25 = vmul.f32 %v2241_v48, %v2228_v36 }
0x11da   : > { %v2249_v2 = vsel %vm2240_vm2, %v3787_v35, %v2245_v57  ;;  %v2270_v38 = vadd.f32 %v2267_v56, %v2266_v54  ;;  %v2366_v56 = vrot.slane %v3185_v30, %v5069_v28  ;;  %v2464_v30 = vld [vmem:[#allocation13 + $0x220] sm:$0xff] }
0x11db   : > { %v2248_v5 = vsel %vm2239_vm3, %v2228_v36, %v2244_v25  ;;  %v2269_v44 = vmul.f32 %v2249_v2, %v2249_v2 }
0x11dc   : > { %v2255_v41 = vadd.f32 %v2254_v3, %v2248_v5  ;;  %v2268_v42 = vmul.f32 %v2248_v5, %v2248_v5 }
0x11de   : > { %v2256_v43 = vadd.f32 %v2255_v41, %v2249_v2  ;;  %v2271_v45 = vadd.f32 %v2270_v38, %v2268_v42 }
0x11e0   : > { %2257 = vadd.xlane.f32.xlu0 %v2256_v43  ;;  %v2272_v46 = vadd.f32 %v2271_v45, %v2269_v44 }
0x11e2   : > { %2273 = vadd.xlane.f32.xlu1 %v2272_v46  ;;  %v2379_v46 = vstv %s3182_s25 }
0x126d   : > { %v2258_v47 = vpop.xlane.xlu0 %2257 }
0x126e   : > { %v2259_v52 = vrot.slane %v2258_v47, 4 }
0x126f   : > { %v2274_v53 = vpop.xlane.xlu1 %2273 }
0x1270   : > { %v2260_v19 = vadd.f32 %v2259_v52, %v2258_v47  ;;  %v2275_v20 = vrot.slane %v2274_v53, 4 }
0x1272   : > { %v2261_v24 = vrot.slane %v2260_v19, 2  ;;  %v2276_v58 = vadd.f32 %v2275_v20, %v2274_v53 }
0x1274   : > { %v2277_v59 = vrot.slane %v2276_v58, 2  ;;  %v2262_v60 = vadd.f32 %v2261_v24, %v2260_v19 }
0x1276   : > { %v2263_v61 = vrot.slane %v2262_v60, 1  ;;  %v2278_v62 = vadd.f32 %v2277_v59, %v2276_v58 }
0x1278   : > { %v2264_v23 = vadd.f32 %v2263_v61, %v2262_v60  ;;  %v2279_v63 = vrot.slane %v2278_v62, 1 }
0x127a   : > { %4334 = vpush %v2264_v23  ;;  %v2280_v29 = vadd.f32 %v2279_v63, %v2278_v62 }
0x127c   : > { %4336 = vpush %v2280_v29 }
0x12ab   : > { %s4335_s22 = spop %4334 }
0x12ac   : > { %s2282_s16 = smul.f32 0.0009765625, %s4335_s22 }
0x12ad   : > { %s4337_s0 = spop %4336 }
0x12ae   : > { %s2284_s13 = smul.f32 %s2282_s16, %s2282_s16  ;;  %v2291_v7 = vstv %s2282_s16 }
0x12af   : > { %s2283_s19 = smul.f32 0.0009765625, %s4337_s0  ;;  %v2292_v8 = vsub.f32 %v2246_v34, %v2291_v7  ;;  %v2293_v9 = vsub.f32 %v2247_v33, %v2291_v7  ;;  %v2294_v55 = vsub.f32 %v2248_v5, %v2291_v7  ;;  %v2295_v1 = vsub.f32 %v2249_v2, %v2291_v7 }
0x12b1   : > { %s2285_s2 = ssub.f32 %s2283_s19, %s2284_s13 }
0x12b3   : > { %s2286_s21 = smax.f32 %s4737_s14, %s2285_s2 }
0x12b4   : > { %s2287_s27 = sadd.f32 1e-13, %s2286_s21 }
0x12b6   : > { %v2288_v0 = vstv %s2287_s27 }
0x12b7   : > { %4479 = vrsqrt.f32 %v2288_v0 }
0x12c1   : > { %v4480_v6 = vpop.eup %4479 }
0x12c2   : > { %4338 = vpush %v4480_v6 }
0x12f3   : > { %s4339_s23 = spop %4338 }
0x12f4   : > { %v2296_v10 = vstv %s4339_s23 }
0x12f5   : > { %v2297_v39 = vmul.f32 %v2296_v10, %v2292_v8  ;;  %v2298_v4 = vmul.f32 %v2296_v10, %v2293_v9  ;;  %v2299_v12 = vmul.f32 %v2296_v10, %v2294_v55  ;;  %v2300_v11 = vmul.f32 %v2296_v10, %v2295_v1 }
0x12f7   : > { %v2307_v40 = vmul.f32 %v3183_v37, %v2297_v39  ;;  %v2308_v14 = vmul.f32 %v3183_v37, %v2298_v4  ;;  %v2309_v15 = vmul.f32 %v3183_v37, %v2299_v12  ;;  %v2310_v16 = vmul.f32 %v3183_v37, %v2300_v11 }
0x12f9   : > { %v2317_v21 = vadd.f32 %v3184_v13, %v2307_v40  ;;  %v2318_v22 = vadd.f32 %v3184_v13, %v2308_v14  ;;  %v2319_v48 = vadd.f32 %v3184_v13, %v2309_v15  ;;  %v2320_v49 = vadd.f32 %v3184_v13, %v2310_v16  ;;  %v2460_v15 = vld [vmem:[#allocation13 + $0x200] sm:$0xff]  ;;  %v2461_v16 = vld [vmem:[#allocation13 + $0x208] sm:$0xff] }
0x12fb   : > { %2321 = vst [vmem:[#allocation2 + $0x8] sm:$0xff] %v2317_v21  ;;  %2322 = vst [vmem:[#allocation2 + $0x10] sm:$0xff] %v2318_v22  ;;  %v2367_v53 = vmul.f32 %v2366_v56, %v2317_v21  ;;  %v2368_v19 = vmul.f32 %v2366_v56, %v2318_v22  ;;  %v2369_v58 = vmul.f32 %v2366_v56, %v2319_v48  ;;  %v2462_v21 = vld [vmem:[#allocation13 + $0x210] sm:$0xff] }
0x12fc   : > { %2323 = vst [vmem:[#allocation2 + $0x18] sm:$0xff] %v2319_v48  ;;  %2324 = vst [vmem:[#allocation2 + $0x20] sm:$0xff] %v2320_v49  ;;  %v2370_v59 = vmul.f32 %v2366_v56, %v2320_v49  ;;  %v4190_v22 = vpack.c.bf16 %v2461_v16, %v2460_v15  ;;  %v2463_v48 = vld [vmem:[#allocation13 + $0x218] sm:$0xff]  ;;  %v2468_v56 = vld [vmem:[#allocation13 + $0x240] sm:$0xff] }
0x12fd   : > { %v4194_v49 = vpack.c.bf16 %v2463_v48, %v2462_v21  ;;  %v2574_v15 = vld [vmem:[#allocation8 + $0x2d0] sm:$0xff]  ;;  %v2575_v16 = vld [vmem:[#allocation8 + $0x2d8] sm:$0xff]  ;;  %v2577_v48 = vld [vmem:[#allocation8 + $0x2e8] sm:$0xff] }
0x12fe   : > { %4191 = vmatprep.subr.bf16.mxu1 %v4190_v22  ;;  %v4242_v21 = vpack.c.bf16 %v2575_v16, %v2574_v15 }
0x12ff   : > { %4193 = vmatpush3.bf16.msra.mxu1 %v4190_v22  ;;  %v2576_v22 = vld [vmem:[#allocation8 + $0x2e0] sm:$0xff] }
0x1300   : > { %4195 = vmatprep.subr.bf16.mxu1 %v4194_v49 }
0x1302   : > { %v2327_v33 = vld [vmem:[#allocation2 + $0x4] sm:$0xff]  ;;  %v2328_v34 = vld [vmem:[#allocation2 + $0xc] sm:$0xff] }
0x1303   : > { %v2329_v35 = vld [vmem:[#allocation2 + $0x14] sm:$0xff]  ;;  %v2330_v54 = vld [vmem:[#allocation2 + $0x1c] sm:$0xff]  ;;  %v2335_v57 = vmul.f32 %v2334_v31, %v2327_v33  ;;  %v2336_v36 = vmul.f32 %v2334_v31, %v2328_v34  ;;  %v2343_v3 = vld [vmem:[#allocation2 + $0x6] sm:$0xff]  ;;  %4197 = vmatpush3.bf16.msra.mxu1 %v4194_v49  ;;  %v4246_v49 = vpack.c.bf16 %v2577_v48, %v2576_v22 }
0x1304   : > { %v2337_v25 = vmul.f32 %v2334_v31, %v2329_v35  ;;  %v2344_v2 = vld [vmem:[#allocation2 + $0xe] sm:$0xff]  ;;  %v2338_v5 = vmul.f32 %v2334_v31, %v2330_v54  ;;  %v2345_v41 = vld [vmem:[#allocation2 + $0x16] sm:$0xff]  ;;  %v2346_v42 = vld [vmem:[#allocation2 + $0x1e] sm:$0xff]  ;;  %v2351_v38 = vmul.f32 %v2350_v32, %v2343_v3 }
0x1305   : > { %v2352_v43 = vmul.f32 %v2350_v32, %v2344_v2  ;;  %v2353_v44 = vmul.f32 %v2350_v32, %v2345_v41  ;;  %v2354_v45 = vmul.f32 %v2350_v32, %v2346_v42  ;;  %v2465_v31 = vld [vmem:[#allocation13 + $0x228] sm:$0xff]  ;;  %v2466_v33 = vld [vmem:[#allocation13 + $0x230] sm:$0xff]  ;;  %v2467_v34 = vld [vmem:[#allocation13 + $0x238] sm:$0xff] }
0x1306   : > { %v2355_v47 = vadd.f32 %v2351_v38, %v2335_v57  ;;  %v4198_v32 = vpack.c.bf16 %v2465_v31, %v2464_v30  ;;  %v4202_v35 = vpack.c.bf16 %v2467_v34, %v2466_v33  ;;  %v2469_v54 = vld [vmem:[#allocation13 + $0x248] sm:$0xff] }
0x1307   : > { %v2356_v52 = vadd.f32 %v2352_v43, %v2336_v36  ;;  %v2357_v20 = vadd.f32 %v2353_v44, %v2337_v25  ;;  %v2358_v24 = vadd.f32 %v2354_v45, %v2338_v5  ;;  %v4206_v57 = vpack.c.bf16 %v2469_v54, %v2468_v56  ;;  %v2470_v36 = vld [vmem:[#allocation13 + $0x250] sm:$0xff]  ;;  %v2471_v25 = vld [vmem:[#allocation13 + $0x258] sm:$0xff]  ;;  %v2472_v43 = vld [vmem:[#allocation13 + $0x260] sm:$0xff] }
0x1308   : > { %v2371_v60 = vadd.f32 %v2367_v53, %v2355_v47  ;;  %4199 = vmatprep.subr.bf16.mxu1 %v4198_v32  ;;  %v4210_v3 = vpack.c.bf16 %v2471_v25, %v2470_v36  ;;  %v2473_v44 = vld [vmem:[#allocation13 + $0x268] sm:$0xff]  ;;  %v3188_v56 = vld [vmem:[%s5440_s6 + $0x4] ss:$0 sm:$0xff] }
0x1309   : > { %v2372_v61 = vadd.f32 %v2368_v19, %v2356_v52  ;;  %v2373_v62 = vadd.f32 %v2369_v58, %v2357_v20  ;;  %v2374_v23 = vadd.f32 %v2370_v59, %v2358_v24  ;;  %4201 = vmatpush3.bf16.msra.mxu1 %v4198_v32  ;;  %v2474_v19 = vld [vmem:[#allocation13 + $0x270] sm:$0xff]  ;;  %v2475_v20 = vld [vmem:[#allocation13 + $0x278] sm:$0xff] }
0x130a   : > { %vm2375_vm4 = vcmp.ge.f32.partialorder %v2371_v60, 0.0  ;;  %v2380_v63 = vmul.f32 %v2379_v46, %v2371_v60  ;;  %4203 = vmatprep.subr.bf16.mxu1 %v4202_v35  ;;  %v4218_v58 = vpack.c.bf16 %v2475_v20, %v2474_v19 }
0x130b   : > { %vm2376_vm5 = vcmp.ge.f32.partialorder %v2372_v61, 0.0  ;;  %v2381_v29 = vmul.f32 %v2379_v46, %v2372_v61  ;;  %vm2377_vm6 = vcmp.ge.f32.partialorder %v2373_v62, 0.0  ;;  %v2382_v0 = vmul.f32 %v2379_v46, %v2373_v62 }
0x130c   : > { %v2383_v6 = vmul.f32 %v2379_v46, %v2374_v23  ;;  %vm2378_vm7 = vcmp.ge.f32.partialorder %v2374_v23, 0.0  ;;  %v5293_v7 = vsel %vm2375_vm4, %v2371_v60, %v2380_v63  ;;  %v4214_v46 = vpack.c.bf16 %v2473_v44, %v2472_v43  ;;  %v2565_v63 = vld [vmem:[#allocation8 + $0x288] sm:$0xff]  ;;  %v2578_v44 = vld [vmem:[#allocation8 + $0x2f0] sm:$0xff] }
0x130d   : > { %v5295_v8 = vsel %vm2376_vm5, %v2372_v61, %v2381_v29  ;;  %v5297_v9 = vsel %vm2377_vm6, %v2373_v62, %v2382_v0  ;;  %v2404_v1 = vmul.f32 %v5293_v7, %v5293_v7  ;;  %4205 = vmatpush3.bf16.msra.mxu1 %v4202_v35  ;;  %v2566_v29 = vld [vmem:[#allocation8 + $0x290] sm:$0xff] }
0x130e   : > { %v2392_v55 = vadd.f32 %v5295_v8, %v5293_v7  ;;  %v2405_v37 = vmul.f32 %v5295_v8, %v5295_v8  ;;  %v5305_v10 = vsel %vm2378_vm7, %v2374_v23, %v2383_v6  ;;  %v2406_v4 = vmul.f32 %v5297_v9, %v5297_v9  ;;  %4207 = vmatprep.subr.bf16.mxu1 %v4206_v57  ;;  %v2564_v23 = vld [vmem:[#allocation8 + $0x280] sm:$0xff]  ;;  %v2567_v6 = vld [vmem:[#allocation8 + $0x298] sm:$0xff] }
0x130f   : > { %v2407_v13 = vmul.f32 %v5305_v10, %v5305_v10  ;;  %v4222_v0 = vpack.c.bf16 %v2565_v63, %v2564_v23 }
0x1310   : > { %v2393_v39 = vadd.f32 %v2392_v55, %v5297_v9  ;;  %v2408_v12 = vadd.f32 %v2405_v37, %v2404_v1  ;;  %v4226_v55 = vpack.c.bf16 %v2567_v6, %v2566_v29  ;;  %v2568_v1 = vld [vmem:[#allocation8 + $0x2a0] sm:$0xff]  ;;  %v2569_v37 = vld [vmem:[#allocation8 + $0x2a8] sm:$0xff] }
0x1311   : > { %4209 = vmatpush3.bf16.msra.mxu1 %v4206_v57  ;;  %4223 = vmatprep.subr.bf16.mxu0 %v4222_v0 }
0x1312   : > { %v2394_v11 = vadd.f32 %v2393_v39, %v5305_v10  ;;  %v2409_v40 = vadd.f32 %v2408_v12, %v2406_v4  ;;  %4211 = vmatprep.subr.bf16.mxu1 %v4210_v3  ;;  %4225 = vmatpush3.bf16.msra.mxu0 %v4222_v0  ;;  %v4230_v39 = vpack.c.bf16 %v2569_v37, %v2568_v1  ;;  %v2570_v4 = vld [vmem:[#allocation8 + $0x2b0] sm:$0xff]  ;;  %v2571_v12 = vld [vmem:[#allocation8 + $0x2b8] sm:$0xff] }
0x1313   : > { %4227 = vmatprep.subr.bf16.mxu0 %v4226_v55 }
0x1314   : > { %2395 = vadd.xlane.f32.xlu0 %v2394_v11  ;;  %v2410_v14 = vadd.f32 %v2409_v40, %v2407_v13  ;;  %v4234_v11 = vpack.c.bf16 %v2571_v12, %v2570_v4  ;;  %v2572_v13 = vld [vmem:[#allocation8 + $0x2c0] sm:$0xff]  ;;  %v2573_v40 = vld [vmem:[#allocation8 + $0x2c8] sm:$0xff] }
0x1315   : > { %4213 = vmatpush3.bf16.msra.mxu1 %v4210_v3 }
0x1316   : > { %2411 = vadd.xlane.f32.xlu1 %v2410_v14  ;;  %4215 = vmatprep.subr.bf16.mxu1 %v4214_v46  ;;  %v4238_v14 = vpack.c.bf16 %v2573_v40, %v2572_v13 }
0x1317   : > { %4229 = vmatpush3.bf16.msra.mxu0 %v4226_v55 }
0x1318   : > { %4231 = vmatprep.subr.bf16.mxu0 %v4230_v39 }
0x1319   : > { %4217 = vmatpush3.bf16.msra.mxu1 %v4214_v46 }
0x131a   : > { %4219 = vmatprep.subr.bf16.mxu1 %v4218_v58 }
0x131b   : > { %4233 = vmatpush3.bf16.msra.mxu0 %v4230_v39 }
0x131c   : > { %4235 = vmatprep.subr.bf16.mxu0 %v4234_v11 }
0x131d   : > { %4221 = vmatpush3.bf16.msra.mxu1 %v4218_v58 }
0x131f   : > { %4237 = vmatpush3.bf16.msra.mxu0 %v4234_v11 }
0x1320   : > { %4239 = vmatprep.subr.bf16.mxu0 %v4238_v14 }
0x1323   : > { %4241 = vmatpush3.bf16.msra.mxu0 %v4238_v14 }
0x1324   : > { %4243 = vmatprep.subr.bf16.mxu0 %v4242_v21 }
0x1327   : > { %4245 = vmatpush3.bf16.msra.mxu0 %v4242_v21 }
0x1328   : > { %4247 = vmatprep.subr.bf16.mxu0 %v4246_v49 }
0x132b   : > { %4249 = vmatpush3.bf16.msra.mxu0 %v4246_v49 }
0x13a1   : > { %v2396_v2 = vpop.xlane.xlu0 %2395 }
0x13a2   : > { %v2397_v5 = vrot.slane %v2396_v2, 4 }
0x13a3   : > { %v2412_v42 = vpop.xlane.xlu1 %2411 }
0x13a4   : > { %v2398_v41 = vadd.f32 %v2397_v5, %v2396_v2  ;;  %v2413_v38 = vrot.slane %v2412_v42, 4  ;;  %v3189_v5 = vld [vmem:[%s5441_s7 + $0x4] ss:$0 sm:$0xff] }
0x13a6   : > { %v2399_v45 = vrot.slane %v2398_v41, 2  ;;  %v2414_v47 = vadd.f32 %v2413_v38, %v2412_v42 }
0x13a8   : > { %v2400_v52 = vadd.f32 %v2399_v45, %v2398_v41  ;;  %v2415_v53 = vrot.slane %v2414_v47, 2  ;;  %v2579_v45 = vld [vmem:[#allocation8 + $0x2f8] sm:$0xff] }
0x13a9   : > { %v4250_v46 = vpack.c.bf16 %v2579_v45, %v2578_v44  ;;  %v3193_v44 = vld [vmem:[#allocation11 + $0x5] ss:$0 sm:$0xff] }
0x13aa   : > { %v2401_v24 = vrot.slane %v2400_v52, 1  ;;  %v2416_v59 = vadd.f32 %v2415_v53, %v2414_v47 }
0x13ab   : > { %4251 = vmatprep.subr.bf16.mxu0 %v4250_v46 }
0x13ac   : > { %v2402_v60 = vadd.f32 %v2401_v24, %v2400_v52  ;;  %v2417_v61 = vrot.slane %v2416_v59, 1  ;;  %4253 = vmatpush3.bf16.msra.mxu0 %v4250_v46 }
0x13ae   : > { %4340 = vpush %v2402_v60  ;;  %v2418_v62 = vadd.f32 %v2417_v61, %v2416_v59 }
0x13b0   : > { %4342 = vpush %v2418_v62 }
0x13df   : > { %s4341_s22 = spop %4340 }
0x13e0   : > { %s2420_s16 = smul.f32 0.0009765625, %s4341_s22 }
0x13e1   : > { %s4343_s13 = spop %4342 }
0x13e2   : > { %s2422_s0 = smul.f32 %s2420_s16, %s2420_s16  ;;  %v2429_v32 = vstv %s2420_s16  ;;  %s3190_s16 = sld [smem:[#allocation3 + $0x280]] }
0x13e3   : > { %s2421_s19 = smul.f32 0.0009765625, %s4343_s13  ;;  %v2430_v33 = vsub.f32 %v5293_v7, %v2429_v32  ;;  %v2431_v34 = vsub.f32 %v5295_v8, %v2429_v32  ;;  %v2432_v35 = vsub.f32 %v5297_v9, %v2429_v32  ;;  %v2433_v54 = vsub.f32 %v5305_v10, %v2429_v32 }
0x13e5   : > { %s2423_s2 = ssub.f32 %s2421_s19, %s2422_s0 }
0x13e7   : > { %s2424_s21 = smax.f32 %s4737_s14, %s2423_s2 }
0x13e8   : > { %s2425_s27 = sadd.f32 1e-13, %s2424_s21 }
0x13ea   : > { %v2426_v30 = vstv %s2425_s27 }
0x13eb   : > { %4481 = vrsqrt.f32 %v2426_v30 }
0x13f5   : > { %v4482_v31 = vpop.eup %4481 }
0x13f6   : > { %4344 = vpush %v4482_v31 }
0x1427   : > { %s4345_s23 = spop %4344 }
0x1428   : > { %v2434_v57 = vstv %s4345_s23 }
0x1429   : > { %v2435_v36 = vmul.f32 %v2434_v57, %v2430_v33  ;;  %v2436_v25 = vmul.f32 %v2434_v57, %v2431_v34  ;;  %v2437_v3 = vmul.f32 %v2434_v57, %v2432_v35  ;;  %v2438_v2 = vmul.f32 %v2434_v57, %v2433_v54 }
0x142b   : > { %v2446_v7 = vmul.f32 %v3188_v56, %v2436_v25  ;;  %v2445_v41 = vmul.f32 %v3188_v56, %v2435_v36  ;;  %v2447_v8 = vmul.f32 %v3188_v56, %v2437_v3  ;;  %v2448_v38 = vmul.f32 %v3188_v56, %v2438_v2 }
0x142d   : > { %v2455_v42 = vadd.f32 %v3189_v5, %v2445_v41  ;;  %v2456_v9 = vadd.f32 %v3189_v5, %v2446_v7  ;;  %v2457_v43 = vadd.f32 %v3189_v5, %v2447_v8  ;;  %v2458_v10 = vadd.f32 %v3189_v5, %v2448_v38  ;;  %v3192_v8 = vld [vmem:[#allocation10 + $0x5] ss:$0 sm:$0xff] }
0x142f   : > { %3820 = vmatprep.mubr.f32.mxu1 %v2455_v42 }
0x1430   : > { %3821 = vmatmul.mubr.f32.vlgmr.msra.gmra.mrb[16].mxu1 %v2456_v9 }
0x1431   : > { %3823 = vmatprep.mubr.f32.mxu1 %v2457_v43 }
0x1434   : > { %3824 = vmatmul.mubr.f32.gmra.mrb[18].mxu1 %v2458_v10 }
0x1503   : > { %v3822_v47 = vpop.f32.mrb[16].mxu1 }
0x1504   : > { %v2542_v52 = vpop.f32.mrb[17].mxu1  ;;  %v5328_v19 = vadd.f32 %v3822_v47, %v5274_v18 }
0x1505   : > { %v5325_v53 = vadd.f32 %v2542_v52, %v5271_v17  ;;  %v2669_v17 = vstv %s3190_s16  ;;  %s3191_s16 = sld [smem:[#allocation3 + $0x281]] }
0x1507   : > { %v3825_v20 = vpop.f32.mrb[18].mxu1  ;;  %3858 = vmatprep.mubr.f32.mxu0 %v5325_v53 }
0x1508   : > { %v2552_v24 = vpop.f32.mrb[19].mxu1  ;;  %3859 = vmatmul.mubr.f32.vlgmr.msra.gmra.mrb[20].mxu0 %v5328_v19  ;;  %v5336_v59 = vadd.f32 %v3825_v20, %v5282_v51 }
0x1509   : > { %v5333_v58 = vadd.f32 %v2552_v24, %v5279_v50 }
0x150b   : > { %3861 = vmatprep.mubr.f32.mxu0 %v5333_v58 }
0x150c   : > { %3862 = vmatmul.mubr.f32.gmra.mrb[22].mxu0 %v5336_v59 }
0x15db   : > { %v3860_v18 = vpop.f32.mrb[20].mxu0 }
0x15dc   : > { %vm2666_vm8 = vcmp.ge.f32.partialorder %v3860_v18, 0.0  ;;  %v2671_v60 = vmul.f32 %v3860_v18, %v2669_v17  ;;  %v2646_v61 = vpop.f32.mrb[21].mxu0 }
0x15dd   : > { %vm2665_vm9 = vcmp.ge.f32.partialorder %v2646_v61, 0.0  ;;  %v2670_v62 = vmul.f32 %v2669_v17, %v2646_v61 }
0x15de   : > { %v2675_v23 = vsel %vm2666_vm8, %v3860_v18, %v2671_v60  ;;  %v3194_v60 = vld [vmem:[%s5439_s5 + $0x14] sm:$0x7] }
0x15df   : > { %v2674_v63 = vsel %vm2665_vm9, %v2646_v61, %v2670_v62  ;;  %v3863_v29 = vpop.f32.mrb[22].mxu0  ;;  %v2695_v50 = vmul.f32 %v2675_v23, %v2675_v23  ;;  %v2762_v61 = vrot.slane %v3194_v60, %v5065_v26  ;;  %v2778_v62 = vrot.slane %v3194_v60, %v5067_v27 }
0x15e0   : > { %v2694_v0 = vmul.f32 %v2674_v63, %v2674_v63  ;;  %vm2668_vm10 = vcmp.ge.f32.partialorder %v3863_v29, 0.0  ;;  %v2673_v51 = vmul.f32 %v3863_v29, %v2669_v17  ;;  %v2656_v6 = vpop.f32.mrb[23].mxu0  ;;  %v2682_v1 = vadd.f32 %v2675_v23, %v2674_v63 }
0x15e1   : > { %vm2667_vm11 = vcmp.ge.f32.partialorder %v2656_v6, 0.0  ;;  %v2672_v55 = vmul.f32 %v2669_v17, %v2656_v6 }
0x15e2   : > { %v2677_v37 = vsel %vm2668_vm10, %v3863_v29, %v2673_v51  ;;  %v2698_v11 = vadd.f32 %v2695_v50, %v2694_v0 }
0x15e3   : > { %v2676_v39 = vsel %vm2667_vm11, %v2656_v6, %v2672_v55  ;;  %v2697_v40 = vmul.f32 %v2677_v37, %v2677_v37 }
0x15e4   : > { %v2696_v4 = vmul.f32 %v2676_v39, %v2676_v39  ;;  %v2683_v12 = vadd.f32 %v2682_v1, %v2676_v39 }
0x15e6   : > { %v2684_v13 = vadd.f32 %v2683_v12, %v2677_v37  ;;  %v2699_v14 = vadd.f32 %v2698_v11, %v2696_v4 }
0x15e8   : > { %2685 = vadd.xlane.f32.xlu0 %v2684_v13  ;;  %v2700_v15 = vadd.f32 %v2699_v14, %v2697_v40 }
0x15ea   : > { %2701 = vadd.xlane.f32.xlu1 %v2700_v15 }
0x1675   : > { %v2686_v16 = vpop.xlane.xlu0 %2685 }
0x1676   : > { %v2687_v21 = vrot.slane %v2686_v16, 4 }
0x1677   : > { %v2702_v22 = vpop.xlane.xlu1 %2701 }
0x1678   : > { %v2688_v48 = vadd.f32 %v2687_v21, %v2686_v16  ;;  %v2703_v49 = vrot.slane %v2702_v22, 4  ;;  %v2807_v21 = vstv %s3191_s16 }
0x167a   : > { %v2689_v30 = vrot.slane %v2688_v48, 2  ;;  %v2704_v31 = vadd.f32 %v2703_v49, %v2702_v22 }
0x167c   : > { %v2705_v32 = vrot.slane %v2704_v31, 2  ;;  %v2690_v33 = vadd.f32 %v2689_v30, %v2688_v48 }
0x167e   : > { %v2691_v34 = vrot.slane %v2690_v33, 1  ;;  %v2706_v35 = vadd.f32 %v2705_v32, %v2704_v31 }
0x1680   : > { %v2692_v56 = vadd.f32 %v2691_v34, %v2690_v33  ;;  %v2707_v54 = vrot.slane %v2706_v35, 1 }
0x1682   : > { %4346 = vpush %v2692_v56  ;;  %v2708_v57 = vadd.f32 %v2707_v54, %v2706_v35 }
0x1684   : > { %4348 = vpush %v2708_v57 }
0x16b3   : > { %s4347_s0 = spop %4346 }
0x16b4   : > { %s2710_s13 = smul.f32 0.0009765625, %s4347_s0 }
0x16b5   : > { %s4349_s19 = spop %4348 }
0x16b6   : > { %s2712_s2 = smul.f32 %s2710_s13, %s2710_s13  ;;  %v2719_v3 = vstv %s2710_s13 }
0x16b7   : > { %s2711_s21 = smul.f32 0.0009765625, %s4349_s19  ;;  %v2720_v2 = vsub.f32 %v2674_v63, %v2719_v3  ;;  %v2721_v5 = vsub.f32 %v2675_v23, %v2719_v3  ;;  %v2722_v7 = vsub.f32 %v2676_v39, %v2719_v3  ;;  %v2723_v41 = vsub.f32 %v2677_v37, %v2719_v3  ;;  %v4488_v63 = vld [vmem:[#allocation2] sm:$0xff] }
0x16b8   : > { %v2794_v23 = vrot.slane %v3194_v60, %v5069_v28  ;;  %v2763_v29 = vmul.f32 %v4488_v63, %v2762_v61  ;;  %v2896_v60 = vld [vmem:[#allocation13 + $0x2c0] sm:$0xff]  ;;  %v2899_v63 = vld [vmem:[#allocation13 + $0x2d8] sm:$0xff] }
0x16b9   : > { %s2713_s27 = ssub.f32 %s2711_s21, %s2712_s2 }
0x16bb   : > { %s2714_s23 = smax.f32 %s4737_s14, %s2713_s27 }
0x16bc   : > { %s2715_s25 = sadd.f32 1e-13, %s2714_s23 }
0x16be   : > { %v2716_v36 = vstv %s2715_s25 }
0x16bf   : > { %4483 = vrsqrt.f32 %v2716_v36 }
0x16c9   : > { %v4484_v25 = vpop.eup %4483 }
0x16ca   : > { %4350 = vpush %v4484_v25 }
0x16fb   : > { %s4351_s26 = spop %4350 }
0x16fc   : > { %v2724_v42 = vstv %s4351_s26 }
0x16fd   : > { %v2725_v9 = vmul.f32 %v2724_v42, %v2720_v2  ;;  %v2726_v38 = vmul.f32 %v2724_v42, %v2721_v5  ;;  %v2727_v43 = vmul.f32 %v2724_v42, %v2722_v7  ;;  %v2728_v10 = vmul.f32 %v2724_v42, %v2723_v41 }
0x16ff   : > { %v2735_v45 = vmul.f32 %v3192_v8, %v2725_v9  ;;  %v2736_v46 = vmul.f32 %v3192_v8, %v2726_v38  ;;  %v2737_v47 = vmul.f32 %v3192_v8, %v2727_v43  ;;  %v2738_v52 = vmul.f32 %v3192_v8, %v2728_v10  ;;  %v2888_v38 = vld [vmem:[#allocation13 + $0x280] sm:$0xff]  ;;  %v2889_v43 = vld [vmem:[#allocation13 + $0x288] sm:$0xff]  ;;  %v2890_v10 = vld [vmem:[#allocation13 + $0x290] sm:$0xff] }
0x1701   : > { %v2745_v20 = vadd.f32 %v3193_v44, %v2735_v45  ;;  %v2746_v24 = vadd.f32 %v3193_v44, %v2736_v46  ;;  %v2747_v17 = vadd.f32 %v3193_v44, %v2737_v47  ;;  %v2748_v18 = vadd.f32 %v3193_v44, %v2738_v52  ;;  %v2891_v45 = vld [vmem:[#allocation13 + $0x298] sm:$0xff]  ;;  %v2892_v47 = vld [vmem:[#allocation13 + $0x2a0] sm:$0xff]  ;;  %v2893_v52 = vld [vmem:[#allocation13 + $0x2a8] sm:$0xff] }
0x1702   : > { %v4254_v44 = vpack.c.bf16 %v2889_v43, %v2888_v38  ;;  %v4258_v46 = vpack.c.bf16 %v2891_v45, %v2890_v10 }
0x1703   : > { %2749 = vst [vmem:[#allocation2 + $0x8] sm:$0xff] %v2745_v20  ;;  %2750 = vst [vmem:[#allocation2 + $0x10] sm:$0xff] %v2746_v24  ;;  %v2764_v50 = vmul.f32 %v2762_v61, %v2745_v20  ;;  %v2765_v55 = vmul.f32 %v2762_v61, %v2746_v24  ;;  %v2766_v12 = vmul.f32 %v2762_v61, %v2747_v17  ;;  %v2897_v61 = vld [vmem:[#allocation13 + $0x2c8] sm:$0xff] }
0x1704   : > { %2751 = vst [vmem:[#allocation2 + $0x18] sm:$0xff] %v2747_v17  ;;  %2752 = vst [vmem:[#allocation2 + $0x20] sm:$0xff] %v2748_v18  ;;  %v2795_v13 = vmul.f32 %v2794_v23, %v2745_v20  ;;  %v2796_v40 = vmul.f32 %v2794_v23, %v2746_v24  ;;  %v2797_v15 = vmul.f32 %v2794_v23, %v2747_v17  ;;  %4255 = vmatprep.subr.bf16.mxu1 %v4254_v44  ;;  %v2894_v24 = vld [vmem:[#allocation13 + $0x2b0] sm:$0xff]  ;;  %v2895_v17 = vld [vmem:[#allocation13 + $0x2b8] sm:$0xff] }
0x1705   : > { %v2798_v16 = vmul.f32 %v2794_v23, %v2748_v18  ;;  %4257 = vmatpush3.bf16.msra.mxu1 %v4254_v44  ;;  %v4262_v20 = vpack.c.bf16 %v2893_v52, %v2892_v47  ;;  %v4266_v18 = vpack.c.bf16 %v2895_v17, %v2894_v24  ;;  %v2898_v23 = vld [vmem:[#allocation13 + $0x2d0] sm:$0xff] }
0x1706   : > { %4259 = vmatprep.subr.bf16.mxu1 %v4258_v46 }
0x1709   : > { %4261 = vmatpush3.bf16.msra.mxu1 %v4258_v46 }
0x170a   : > { %v2771_v0 = vld [vmem:[#allocation2 + $0x4] sm:$0xff]  ;;  %v2772_v51 = vld [vmem:[#allocation2 + $0xc] sm:$0xff]  ;;  %4263 = vmatprep.subr.bf16.mxu1 %v4262_v20 }
0x170b   : > { %v2773_v6 = vld [vmem:[#allocation2 + $0x14] sm:$0xff]  ;;  %v2774_v1 = vld [vmem:[#allocation2 + $0x1c] sm:$0xff]  ;;  %v2779_v37 = vmul.f32 %v2778_v62, %v2771_v0  ;;  %v2780_v39 = vmul.f32 %v2778_v62, %v2772_v51 }
0x170c   : > { %v2781_v4 = vmul.f32 %v2778_v62, %v2773_v6  ;;  %v2782_v11 = vmul.f32 %v2778_v62, %v2774_v1  ;;  %v4270_v62 = vpack.c.bf16 %v2897_v61, %v2896_v60  ;;  %v2900_v1 = vld [vmem:[#allocation13 + $0x2e0] sm:$0xff] }
0x170d   : > { %v2783_v26 = vadd.f32 %v2779_v37, %v2763_v29  ;;  %v2784_v14 = vadd.f32 %v2780_v39, %v2764_v50  ;;  %4265 = vmatpush3.bf16.msra.mxu1 %v4262_v20  ;;  %v4274_v29 = vpack.c.bf16 %v2899_v63, %v2898_v23  ;;  %v2901_v37 = vld [vmem:[#allocation13 + $0x2e8] sm:$0xff] }
0x170e   : > { %v2785_v27 = vadd.f32 %v2781_v4, %v2765_v55  ;;  %v2786_v28 = vadd.f32 %v2782_v11, %v2766_v12  ;;  %4267 = vmatprep.subr.bf16.mxu1 %v4266_v18  ;;  %v4278_v12 = vpack.c.bf16 %v2901_v37, %v2900_v1 }
0x170f   : > { %v2799_v22 = vadd.f32 %v2795_v13, %v2783_v26  ;;  %v2800_v48 = vadd.f32 %v2796_v40, %v2784_v14  ;;  %v2902_v40 = vld [vmem:[#allocation13 + $0x2f0] sm:$0xff]  ;;  %v2903_v26 = vld [vmem:[#allocation13 + $0x2f8] sm:$0xff] }
0x1710   : > { %v2801_v49 = vadd.f32 %v2797_v15, %v2785_v27  ;;  %v2802_v30 = vadd.f32 %v2798_v16, %v2786_v28  ;;  %v4282_v15 = vpack.c.bf16 %v2903_v26, %v2902_v40 }
0x1711   : > { %vm2803_vm12 = vcmp.ge.f32.partialorder %v2799_v22, 0.0  ;;  %vm2804_vm13 = vcmp.ge.f32.partialorder %v2800_v48, 0.0  ;;  %v2808_v31 = vmul.f32 %v2807_v21, %v2799_v22  ;;  %v2809_v32 = vmul.f32 %v2807_v21, %v2800_v48  ;;  %4269 = vmatpush3.bf16.msra.mxu1 %v4266_v18 }
0x1712   : > { %vm2805_vm14 = vcmp.ge.f32.partialorder %v2801_v49, 0.0  ;;  %v2810_v33 = vmul.f32 %v2807_v21, %v2801_v49  ;;  %v2811_v34 = vmul.f32 %v2807_v21, %v2802_v30  ;;  %vm2806_vm15 = vcmp.ge.f32.partialorder %v2802_v30, 0.0  ;;  %4271 = vmatprep.subr.bf16.mxu1 %v4270_v62 }
0x1713   : > { %v5347_v35 = vsel %vm2803_vm12, %v2799_v22, %v2808_v31  ;;  %v5349_v56 = vsel %vm2804_vm13, %v2800_v48, %v2809_v32 }
0x1714   : > { %v5351_v54 = vsel %vm2805_vm14, %v2801_v49, %v2810_v33  ;;  %v2832_v57 = vmul.f32 %v5347_v35, %v5347_v35  ;;  %v2820_v36 = vadd.f32 %v5349_v56, %v5347_v35  ;;  %v2833_v25 = vmul.f32 %v5349_v56, %v5349_v56  ;;  %v3197_v33 = vld [vmem:[%s5440_s6 + $0x5] ss:$0 sm:$0xff] }
0x1715   : > { %v5359_v3 = vsel %vm2806_vm15, %v2802_v30, %v2811_v34  ;;  %v2834_v5 = vmul.f32 %v5351_v54, %v5351_v54  ;;  %4273 = vmatpush3.bf16.msra.mxu1 %v4270_v62 }
0x1716   : > { %v2821_v2 = vadd.f32 %v2820_v36, %v5351_v54  ;;  %v2836_v7 = vadd.f32 %v2833_v25, %v2832_v57  ;;  %v2835_v8 = vmul.f32 %v5359_v3, %v5359_v3  ;;  %4275 = vmatprep.subr.bf16.mxu1 %v4274_v29 }
0x1718   : > { %v2822_v41 = vadd.f32 %v2821_v2, %v5359_v3  ;;  %v2837_v42 = vadd.f32 %v2836_v7, %v2834_v5  ;;  %v3198_v5 = vld [vmem:[%s5441_s7 + $0x5] ss:$0 sm:$0xff] }
0x1719   : > { %4277 = vmatpush3.bf16.msra.mxu1 %v4274_v29 }
0x171a   : > { %2823 = vadd.xlane.f32.xlu0 %v2822_v41  ;;  %v2838_v9 = vadd.f32 %v2837_v42, %v2835_v8  ;;  %4279 = vmatprep.subr.bf16.mxu1 %v4278_v12 }
0x171c   : > { %2839 = vadd.xlane.f32.xlu1 %v2838_v9 }
0x171d   : > { %4281 = vmatpush3.bf16.msra.mxu1 %v4278_v12 }
0x171e   : > { %4283 = vmatprep.subr.bf16.mxu1 %v4282_v15 }
0x1721   : > { %4285 = vmatpush3.bf16.msra.mxu1 %v4282_v15 }
0x17a7   : > { %v2824_v50 = vpop.xlane.xlu0 %2823 }
0x17a8   : > { %v2825_v0 = vrot.slane %v2824_v50, 4 }
0x17a9   : > { %v2840_v51 = vpop.xlane.xlu1 %2839 }
0x17aa   : > { %v2826_v6 = vadd.f32 %v2825_v0, %v2824_v50  ;;  %v2841_v55 = vrot.slane %v2840_v51, 4 }
0x17ac   : > { %v2827_v39 = vrot.slane %v2826_v6, 2  ;;  %v2842_v4 = vadd.f32 %v2841_v55, %v2840_v51 }
0x17ae   : > { %v2828_v11 = vadd.f32 %v2827_v39, %v2826_v6  ;;  %v2843_v13 = vrot.slane %v2842_v4, 2 }
0x17b0   : > { %v2844_v14 = vadd.f32 %v2843_v13, %v2842_v4  ;;  %v2829_v27 = vrot.slane %v2828_v11, 1 }
0x17b2   : > { %v2830_v28 = vadd.f32 %v2829_v27, %v2828_v11  ;;  %v2845_v16 = vrot.slane %v2844_v14, 1 }
0x17b4   : > { %4352 = vpush %v2830_v28  ;;  %v2846_v21 = vadd.f32 %v2845_v16, %v2844_v14 }
0x17b6   : > { %4354 = vpush %v2846_v21 }
0x17e5   : > { %s4353_s0 = spop %4352 }
0x17e6   : > { %s2848_s13 = smul.f32 0.0009765625, %s4353_s0  ;;  %s422_s0 = scalar_lea.vmem [#allocation14], %s3143_s17 }
0x17e7   : > { %s4355_s19 = spop %4354 }
0x17e8   : > { %s2850_s2 = smul.f32 %s2848_s13, %s2848_s13  ;;  %v2857_v49 = vstv %s2848_s13  ;;  %s3007_s13 = sshll.u32 %s422_s0, 4  ;;  %s5383_s13 = int_to_ptr.vmem [resolvable:$true] %s3007_s13 }
0x17e9   : > { %s2849_s21 = smul.f32 0.0009765625, %s4355_s19  ;;  %v2858_v30 = vsub.f32 %v5347_v35, %v2857_v49  ;;  %v2859_v31 = vsub.f32 %v5349_v56, %v2857_v49  ;;  %v2860_v32 = vsub.f32 %v5351_v54, %v2857_v49  ;;  %v2861_v34 = vsub.f32 %v5359_v3, %v2857_v49  ;;  %s3205_s19 = sshll.u32 %s4812_s15, 9 }
0x17ea   : > { %s5389_s17 = scalar_lea.hbm %s5443_s9, %s3205_s19  ;;  %s2994_s15 = scalar_lea.sflag [#allocation5], %s5030_s3 }
0x17eb   : > { %s2851_s27 = ssub.f32 %s2849_s21, %s2850_s2 }
0x17ed   : > { %s2852_s23 = smax.f32 %s4737_s14, %s2851_s27  ;;  %s4646_s27 = scalar_lea.vmem %s5383_s13, 512 }
0x17ee   : > { %s2853_s25 = sadd.f32 1e-13, %s2852_s23  ;;  %p4647_p12 = scmp.ne.s32.totalorder %s5383_s13, %s4646_s27 }
0x17ef   : > { %s4738_s23 = smov [#allocation14]  }
0x17f0   : > { %v2854_v22 = vstv %s2853_s25  ;;  %p4648_p7 = pnand %p4647_p12, %p5476_p0  ;;  %s4650_s25 = sshll.u32 %s4738_s23, 4  ;;  %s4651_s25 = int_to_ptr.vmem [resolvable:$false] %s4650_s25 }
0x17f1   : > { %4485 = vrsqrt.f32 %v2854_v22  ;;  %p4653_p9 = scmp.lt.s32.totalorder %s5383_s13, %s4651_s25 }
0x17f2   : > { %p4649_p1 = pneg %p4648_p7 }
0x17fb   : > { %v4486_v48 = vpop.eup %4485 }
0x17fc   : > { %4356 = vpush %v4486_v48 }
0x182d   : > { %s4357_s26 = spop %4356 }
0x182e   : > { %v2862_v57 = vstv %s4357_s26  ;;  %s4652_s26 = scalar_lea.vmem %s4651_s25, 1024 }
0x182f   : > { %v2863_v36 = vmul.f32 %v2862_v57, %v2858_v30  ;;  %v2864_v25 = vmul.f32 %v2862_v57, %v2859_v31  ;;  %v2865_v2 = vmul.f32 %v2862_v57, %v2860_v32  ;;  %v2866_v35 = vmul.f32 %v2862_v57, %v2861_v34  ;;  %p4654_p4 = scmp.lt.s32.totalorder %s4652_s26, %s4646_s27 }
0x1831   : > { %v2873_v7 = vmul.f32 %v3197_v33, %v2863_v36  ;;  %v2874_v56 = vmul.f32 %v3197_v33, %v2864_v25  ;;  %v2875_v41 = vmul.f32 %v3197_v33, %v2865_v2  ;;  %v2876_v42 = vmul.f32 %v3197_v33, %v2866_v35  ;;  %p4655_p10 = por %p4654_p4, %p4653_p9 }
0x1833   : > { %v2884_v54 = vadd.f32 %v3198_v5, %v2874_v56  ;;  %v2883_v8 = vadd.f32 %v3198_v5, %v2873_v7  ;;  %v2885_v9 = vadd.f32 %v3198_v5, %v2875_v41  ;;  %v2886_v3 = vadd.f32 %v3198_v5, %v2876_v42  ;;  %p4656_p8 = pnand %p4655_p10, %p4649_p1 }
0x1835   : > { %3896 = vmatprep.mubr.f32.mxu1 %v2883_v8 }
0x1836   : > { %3897 = vmatmul.mubr.f32.vlgmr.msra.gmra.mrb[20].mxu1 %v2884_v54 }
0x1837   : > { %3899 = vmatprep.mubr.f32.mxu1 %v2885_v9 }
0x183a   : > { %3900 = vmatmul.mubr.f32.gmra.mrb[22].mxu1 %v2886_v3 }
0x1909   : > { %v3898_v38 = vpop.f32.mrb[20].mxu1 }
0x190a   : > { %v2976_v43 = vadd.f32 %v3898_v38, %v5328_v19  ;;  %v2970_v10 = vpop.f32.mrb[21].mxu1 }
0x190b   : > { %v2971_v44 = vadd.f32 %v2970_v10, %v5325_v53 }
0x190c   : > { %2990 = vst [vmem:[%s422_s0 + $0x8] sm:$0xff] %v2976_v43 }
0x190d   : > { %2989 = vst [vmem:[%s422_s0] sm:$0xff] %v2971_v44  ;;  %v3901_v45 = vpop.f32.mrb[22].mxu1 }
0x190e   : > { %v2986_v46 = vadd.f32 %v3901_v45, %v5336_v59  ;;  %v2980_v19 = vpop.f32.mrb[23].mxu1 }
0x190f   : > { %v2981_v47 = vadd.f32 %v2980_v19, %v5333_v58 }
0x1910   : > { %2992 = vst [vmem:[%s422_s0 + $0x18] sm:$0xff] %v2986_v46 }
0x1911   : > { %2991 = vst [vmem:[%s422_s0 + $0x10] sm:$0xff] %v2981_v47 }
0x1912   : > { %4659 = shalt.err (!%p4656_p8)
}
0x1913   : > { %s4660_s20 = scalar_lea.hbm %s5389_s17, 512  ;;  %s4664_s16 = scalar_lea.hbm %s5443_s9, 1024 }
0x1914   : > { %p4661_p3 = scmp.ne.s32.totalorder %s5389_s17, %s4660_s20  ;;  %p4665_p2 = scmp.lt.u32.totalorder %s5389_s17, %s5443_s9 }
0x1915   : > { %p4666_p5 = scmp.lt.u32.totalorder %s4664_s16, %s4660_s20  ;;  %p4668_p12 = scmp.lt.u32.totalorder %s4660_s20, %s5389_s17 }
0x1916   : > { %p4662_p11 = pnand %p4661_p3, %p5476_p0 }
0x1917   : > { %p4667_p13 = por %p4666_p5, %p4665_p2 }
0x1918   : > { %p4663_p6 = pneg %p4662_p11 }
0x1919   : > { %p4669_p7 = por %p4668_p12, %p4667_p13 }
0x191b   : > { %p4670_p1 = pnand %p4669_p7, %p4663_p6 }
0x191d   : > { %4673 = shalt.err (!%p4670_p1)
}
0x191e   : > { %s4739_s2 = smov 128   ;;  %s4740_s21 = smov 8  }
0x191f   : > { %4380 = dma.vmem_to_hbm [thread:$0]  (%p5476_p0), %s5383_s13, 512, %s5389_s17, %s2994_s15, %s4739_s2, %s4739_s2, %s4740_s21  }
0x1920 PF: > { %s3022_s27 = sand.u32 1, %s4712_s30   ;;  %p5477_p9 = scmp.ne.s32.totalorder %s5467_s24, 0 }
0x1921   : > { %p5478_p4 = scmp.ge.s32.totalorder %s4724_s12, 2  ;;  %s3023_s23 = scalar_lea.sflag [#allocation5], %s3022_s27 }
0x1923   : > { %p4403_p10 = pnand %p5478_p4, %p5477_p9 }
0x1925   : > { %4707 = dma.done.wait (!%p4403_p10), %s3023_s23, 512  }
0x1926   : > { %4709 = vsyncadd (!%p4403_p10), %s3023_s23, 4294966784  ;;  %p25_p8 = scmp.ge.s32.totalorder %s4950_s28, 4   ;;  %s5479_s30 = smov %s4716_s10 }
0x1927   : > { %s5480_s10 = smov %s4720_s11  ;;  %s5481_s11 = smov %s4962_s29 }
0x1928   : > { %s5482_s12 = smov %s4950_s28  ;;  %27 = sbr.rel (!%p25_p8) target bundleno = 12 (0xc), region = 157 }
0x192f   :  { %3028 = vsyncpa [#allocation4], 1 }
0x1930   :  { %3030 = vsyncpa [#allocation4 + $0x1], 1 }
0x1931   :  { %3031 = vsyncpa [#allocation9], 1 }
0x1932   :  { %3032 = vsyncpa [#allocation12], 1 }
0x1933   :  { %3033 = vsyncpa [#allocation5], 1 }
0x1934   :  { %3035 = vsyncpa [#allocation5 + $0x1], 1 }
0x1935   :  { %3036 = vsyncpa [#allocation6], 1 }
0x1936   :  { %3038 = vsyncpa [#allocation6 + $0x1], 1 }

</bundles_post_ra>
